<compile_context>
chip_gen: v5e
topology: v5e:2x2
jax: 0.10.0
libtpu: 0.0.40
codegen_flags: <defaults>
</compile_context>

<pallas_src>
import functools

import numpy as np
import jax
import jax.numpy as jnp
from jax.experimental import pallas as pl
from jax.experimental.pallas import tpu as pltpu


# ----------------------------- Pallas kernel --------------------------------

def _wavenet_kernel(x_ref, w_init_ref, b_init_ref,
                    fg_w_ref, fg_b_ref, rs_w_ref, rs_b_ref,
                    post_w_ref, post_b_ref, fc_w_ref, fc_b_ref,
                    mask_ref, pool_ref, out_ref, *, n_blocks, kernel_size):
    C = w_init_ref.shape[1]
    K = kernel_size
    half = (K - 1) // 2
    N = x_ref.shape[1]                      # rows = batch-major time within chunk
    cdt = fg_w_ref.dtype                    # matmul operand dtype (f32 or bf16)

    x = x_ref[0]                                            # (N, 1)
    # initial 1x1 conv (1 -> C channels): pure VPU broadcast multiply-add
    h = x * w_init_ref[...] + b_init_ref[...]               # (N, C), f32

    skip_sum = jnp.zeros((N, C), jnp.float32)
    for i in range(n_blocks):                               # static unroll
        d = 2 ** i
        m = half * d                                        # max |shift| this block
        zp = jnp.zeros((m, C), jnp.float32)
        hp = jnp.concatenate([zp, h, zp], axis=0)           # (N + 2m, C)

        # 'same'-padding dilated shift = static slice of zero-padded h,
        # batch-boundary zeroing = precomputed (N, 1) 0/1 mask (VPU multiply).
        taps = []
        for k in range(K):                                  # static unroll
            off = (k - half) * d
            if off == 0:
                taps.append(h)
            else:
                taps.append(hp[m + off:m + off + N, :] * mask_ref[i, k])

        # ONE matmul per block covers all K taps of BOTH filter & gate convs:
        # (N, K*C) x (K*C, 2C) -- contraction depth K*C instead of C.
        fg_in = jnp.concatenate(taps, axis=1)               # (N, K*C)
        fg = jnp.dot(fg_in.astype(cdt), fg_w_ref[i],
                     preferred_element_type=jnp.float32) + fg_b_ref[i]
        f = fg[:, :C]
        g = fg[:, C:]
        z = jnp.tanh(f) * jax.nn.sigmoid(g)
        # TODO(synk): nn.Dropout is identity at inference; training-mode dropout not implemented.

        # fused residual + skip 1x1 convs: (N, C) x (C, 2C)
        rs = jnp.dot(z.astype(cdt), rs_w_ref[i],
                     preferred_element_type=jnp.float32) + rs_b_ref[i]
        h = rs[:, :C] + h                                   # residual
        skip_sum = skip_sum + rs[:, C:]                     # skip

    s = jnp.maximum(skip_sum, 0.0)
    s = jnp.dot(s.astype(cdt), post_w_ref[...],
                preferred_element_type=jnp.float32) + post_b_ref[...]
    s = jnp.maximum(s, 0.0)                                 # (N, C)
    # AdaptiveAvgPool1d(1): per-batch-element time mean via a (BB, N) matmul
    pooled = jnp.dot(pool_ref[...], s, preferred_element_type=jnp.float32)
    logits = jnp.dot(pooled.astype(cdt), fc_w_ref[...],
                     preferred_element_type=jnp.float32) + fc_b_ref[...]
    out_ref[0] = jax.nn.sigmoid(logits)                     # (BB, key_bits)


# ------------------------------- wrapper -------------------------------------

def _const_spec(shape, single_buffer):
    nd = len(shape)
    index_map = lambda g, _nd=nd: (0,) * _nd
    if single_buffer:
        # Constant index map => nothing to pipeline; single buffering halves
        # the constant-operand VMEM footprint vs. the default double buffer.
        return pl.BlockSpec(shape, index_map, pipeline_mode=pl.Buffered(1))
    return pl.BlockSpec(shape, index_map)


def _build_masks(n_blocks, kernel_size, T, BB):
    """mask[i,k][r,0] = 1 iff row r+off (off=(k-half)*2^i) is a valid in-range
    sample of the SAME batch element as row r (zero-pad / batch boundary)."""
    half = (kernel_size - 1) // 2
    N = BB * T
    m = np.zeros((n_blocks, kernel_size, N, 1), np.float32)
    for i in range(n_blocks):
        d = 2 ** i
        for k in range(kernel_size):
            off = (k - half) * d
            for r in range(N):
                rp = r + off
                if 0 <= rp < N and (r // T) == (rp // T):
                    m[i, k, r, 0] = 1.0
    return jnp.asarray(m)


def _build_pool_mat(T, BB):
    N = BB * T
    m = np.zeros((BB, N), np.float32)
    for b in range(BB):
        m[b, b * T:(b + 1) * T] = 1.0 / T
    return jnp.asarray(m)


def _pick_batch_chunks(B, T, C, kernel_size, budget_bytes=4 << 20):
    """Smallest batch split so per-chunk activations stay well under VMEM."""
    per_row_bytes = 4 * C * (kernel_size + 8)   # fg_in + hp + fg + z + rs + skips
    for g in range(1, B + 1):
        if B % g == 0 and (B // g) * T * per_row_bytes <= budget_bytes:
            return g
    return B


def wavenet_key_generation(x, packed, *, n_blocks, kernel_size, num_batch_chunks=None):
    """x: (B, T, 1) float32 — the tensor the PyTorch module receives (pre-permute)."""
    assert kernel_size % 2 == 1, "padding='same' shift logic requires odd kernel_size"
    B, T, _ = x.shape
    C = packed["w_init"].shape[1]
    KB = packed["fc_w"].shape[1]
    K = kernel_size

    if num_batch_chunks is None:
        num_batch_chunks = _pick_batch_chunks(B, T, C, K)
    G = num_batch_chunks                   # set to 2 on v7x to use both TensorCores
    assert G >= 1 and B % G == 0
    BB = B // G
    N = BB * T

    x_folded = x.reshape(G, N, 1)          # batch-major rows within each chunk
    masks = _build_masks(n_blocks, K, T, BB)
    pool_mat = _build_pool_mat(T, BB)

    order = ("w_init", "b_init", "fg_w", "fg_b", "rs_w", "rs_b",
             "post_w", "post_b", "fc_w", "fc_b")
    weight_args = [packed[k] for k in order] + [masks, pool_mat]

    # VMEM bookkeeping: only raise the scoped limit when we would exceed v5e's
    # 16 MiB default, and never ask for more than 48 MiB (< v7x's 64 MiB/TC).
    operand_bytes = sum(int(np.prod(w.shape)) * w.dtype.itemsize for w in weight_args)
    act_bytes = N * C * (K + 8) * 4
    est = 2 * (N * 4) + 2 * operand_bytes + act_bytes + (2 << 20)
    ckw = dict(dimension_semantics=("parallel",))
    if est > (14 << 20):
        ckw["vmem_limit_bytes"] = int(min(est + (4 << 20), 48 << 20))

    kernel = functools.partial(_wavenet_kernel, n_blocks=n_blocks, kernel_size=K)
    out_shape = jax.ShapeDtypeStruct((G, BB, KB), jnp.float32)

    def call(single_buffer_consts):
        in_specs = [pl.BlockSpec((1, N, 1), lambda g: (g, 0, 0))]
        in_specs += [_const_spec(w.shape, single_buffer_consts) for w in weight_args]
        return pl.pallas_call(
            kernel,
            out_shape=out_shape,
            grid=(G,),
            in_specs=in_specs,
            out_specs=pl.BlockSpec((1, BB, KB), lambda g: (g, 0, 0)),
            compiler_params=pltpu.CompilerParams(**ckw),
        )(x_folded, *weight_args)

    try:
        out = call(True)   # weights/masks single-buffered (constant index maps)
    except Exception:
        # This jax version rejects pipeline_mode=pl.Buffered(1) on pallas_call
        # BlockSpecs; fall back to default double-buffering (still correct).
        out = call(False)
    return out.reshape(B, KB)


# --------------------------- params & packing --------------------------------

def init_params(key, channels, n_blocks, kernel_size, key_bits):
    """Deterministic synthetic weights, already transposed to (C_in, C_out)."""
    C, NB, K, KB = channels, n_blocks, kernel_size, key_bits
    ks = jax.random.split(key, 14)

    def rnd(k, shape, scale=0.1):
        return jax.random.normal(k, shape, jnp.float32) * scale

    return dict(
        w_init=rnd(ks[0], (1, C)),   b_init=rnd(ks[1], (1, C)),
        filt_w=rnd(ks[2], (NB, K, C, C)), filt_b=rnd(ks[3], (NB, 1, C)),
        gate_w=rnd(ks[4], (NB, K, C, C)), gate_b=rnd(ks[5], (NB, 1, C)),
        res_w=rnd(ks[6], (NB, C, C)),     res_b=rnd(ks[7], (NB, 1, C)),
        skip_w=rnd(ks[8], (NB, C, C)),    skip_b=rnd(ks[9], (NB, 1, C)),
        post_w=rnd(ks[10], (C, C)),       post_b=rnd(ks[11], (1, C)),
        fc_w=rnd(ks[12], (C, KB)),        fc_b=rnd(ks[13], (1, KB)),
    )


def pack_params(p, compute_dtype=jnp.float32):
    """Host-side fusion: filter+gate over all taps -> (K*C, 2C); residual+skip
    -> (C, 2C). Matmul weights optionally cast to bf16 (f32 accumulation)."""
    NB, K, C, _ = p["filt_w"].shape
    fg = jnp.concatenate([p["filt_w"], p["gate_w"]], axis=-1)        # (NB, K, C, 2C)
    fg_w = fg.reshape(NB, K * C, 2 * C).astype(compute_dtype)        # rows = (k, c)
    fg_b = jnp.concatenate([p["filt_b"], p["gate_b"]], axis=-1)      # (NB, 1, 2C)
    rs_w = jnp.concatenate([p["res_w"], p["skip_w"]], axis=-1).astype(compute_dtype)
    rs_b = jnp.concatenate([p["res_b"], p["skip_b"]], axis=-1)       # (NB, 1, 2C)
    return dict(w_init=p["w_init"], b_init=p["b_init"],
                fg_w=fg_w, fg_b=fg_b, rs_w=rs_w, rs_b=rs_b,
                post_w=p["post_w"].astype(compute_dtype), post_b=p["post_b"],
                fc_w=p["fc_w"].astype(compute_dtype), fc_b=p["fc_b"])


# ------------------------------ reference -------------------------------------

def forward_ref(x, p, *, n_blocks, kernel_size):
    """Plain-JAX reference mirroring the PyTorch forward (inference mode)."""
    B, T, _ = x.shape
    C = p["w_init"].shape[1]
    half = (kernel_size - 1) // 2
    h = x * p["w_init"][None] + p["b_init"][None]        # (B, T, C)
    skip_sum = jnp.zeros_like(h)
    for i in range(n_blocks):
        d = 2 ** i
        f = jnp.zeros_like(h)
        g = jnp.zeros_like(h)
        for k in range(kernel_size):
            off = (k - half) * d
            if off == 0:
                hs = h
            elif off > 0:
                hs = jnp.concatenate([h[:, off:], jnp.zeros((B, off, C))], axis=1)
            else:
                hs = jnp.concatenate([jnp.zeros((B, -off, C)), h[:, :off]], axis=1)
            f = f + jnp.einsum("btc,cd->btd", hs, p["filt_w"][i, k])
            g = g + jnp.einsum("btc,cd->btd", hs, p["gate_w"][i, k])
        f = f + p["filt_b"][i][None]
        g = g + p["gate_b"][i][None]
        z = jnp.tanh(f) * jax.nn.sigmoid(g)
        h = jnp.einsum("btc,cd->btd", z, p["res_w"][i]) + p["res_b"][i][None] + h
        skip_sum = skip_sum + jnp.einsum("btc,cd->btd", z, p["skip_w"][i]) + p["skip_b"][i][None]
    s = jax.nn.relu(skip_sum)
    s = jnp.einsum("btc,cd->btd", s, p["post_w"]) + p["post_b"][None]
    s = jax.nn.relu(s)
    pooled = jnp.mean(s, axis=1)                          # (B, C)
    return jax.nn.sigmoid(pooled @ p["fc_w"] + p["fc_b"])


# --------------------------------- main --------------------------------------

if __name__ == "__main__":
    B, SEQ_LEN, CHANNELS = 2, 16, 32
    N_BLOCKS, KERNEL_SIZE, KEY_BITS = 3, 3, 8

    key = jax.random.PRNGKey(0)
    k_x, k_p = jax.random.split(key)
    x = jax.random.normal(k_x, (B, SEQ_LEN, 1), jnp.float32)
    params = init_params(k_p, CHANNELS, N_BLOCKS, KERNEL_SIZE, KEY_BITS)

    ref = forward_ref(x, params, n_blocks=N_BLOCKS, kernel_size=KERNEL_SIZE)

    # f32 matmul path (bit-close to the f32 reference)
    packed32 = pack_params(params, compute_dtype=jnp.float32)
    out32 = wavenet_key_generation(x, packed32, n_blocks=N_BLOCKS,
                                   kernel_size=KERNEL_SIZE)
    out32 = jax.block_until_ready(out32)
    assert out32.shape == (B, KEY_BITS)
    assert jnp.allclose(out32, ref, atol=1e-3, rtol=1e-3), (out32, ref)

    # bf16 matmul-operand path (per perf review; f32 accumulation throughout)
    packed16 = pack_params(params, compute_dtype=jnp.bfloat16)
    out16 = wavenet_key_generation(x, packed16, n_blocks=N_BLOCKS,
                                   kernel_size=KERNEL_SIZE)
    out16 = jax.block_until_ready(out16)
    assert out16.shape == (B, KEY_BITS)
    assert jnp.allclose(out16, ref, atol=5e-2, rtol=0.0), (out16, ref)

    print("KERNEL_OK")
</pallas_src>

<mosaic_0001>
module attributes {stable_mosaic.version = 11 : i64} {
  func.func @_wavenet_kernel(%arg0: i32, %arg1: memref<1x32x1xf32, #tpu.memory_space<vmem>>, %arg2: memref<1x32xf32, #tpu.memory_space<vmem>>, %arg3: memref<1x32xf32, #tpu.memory_space<vmem>>, %arg4: memref<3x96x64xf32, #tpu.memory_space<vmem>>, %arg5: memref<3x1x64xf32, #tpu.memory_space<vmem>>, %arg6: memref<3x32x64xf32, #tpu.memory_space<vmem>>, %arg7: memref<3x1x64xf32, #tpu.memory_space<vmem>>, %arg8: memref<32x32xf32, #tpu.memory_space<vmem>>, %arg9: memref<1x32xf32, #tpu.memory_space<vmem>>, %arg10: memref<32x8xf32, #tpu.memory_space<vmem>>, %arg11: memref<1x8xf32, #tpu.memory_space<vmem>>, %arg12: memref<3x3x32x1xf32, #tpu.memory_space<vmem>>, %arg13: memref<2x32xf32, #tpu.memory_space<vmem>>, %arg14: memref<1x2x8xf32, #tpu.memory_space<vmem>>) attributes {dimension_semantics = [#tpu.dimension_semantics<parallel>], iteration_bounds = array<i64: 1>, scalar_prefetch = 0 : i64, scratch_operands = 0 : i64, tpu.core_type = #tpu.core_type<tc>, window_params = [{transform_indices = @transform_0, window_bounds = array<i64: 1, 32, 1>}, {pipeline_mode = #tpu.pipeline_mode<synchronous>, transform_indices = @transform_1, window_bounds = array<i64: 1, 32>}, {pipeline_mode = #tpu.pipeline_mode<synchronous>, transform_indices = @transform_2, window_bounds = array<i64: 1, 32>}, {pipeline_mode = #tpu.pipeline_mode<synchronous>, transform_indices = @transform_3, window_bounds = array<i64: 3, 96, 64>}, {pipeline_mode = #tpu.pipeline_mode<synchronous>, transform_indices = @transform_4, window_bounds = array<i64: 3, 1, 64>}, {pipeline_mode = #tpu.pipeline_mode<synchronous>, transform_indices = @transform_5, window_bounds = array<i64: 3, 32, 64>}, {pipeline_mode = #tpu.pipeline_mode<synchronous>, transform_indices = @transform_6, window_bounds = array<i64: 3, 1, 64>}, {pipeline_mode = #tpu.pipeline_mode<synchronous>, transform_indices = @transform_7, window_bounds = array<i64: 32, 32>}, {pipeline_mode = #tpu.pipeline_mode<synchronous>, transform_indices = @transform_8, window_bounds = array<i64: 1, 32>}, {pipeline_mode = #tpu.pipeline_mode<synchronous>, transform_indices = @transform_9, window_bounds = array<i64: 32, 8>}, {pipeline_mode = #tpu.pipeline_mode<synchronous>, transform_indices = @transform_10, window_bounds = array<i64: 1, 8>}, {pipeline_mode = #tpu.pipeline_mode<synchronous>, transform_indices = @transform_11, window_bounds = array<i64: 3, 3, 32, 1>}, {pipeline_mode = #tpu.pipeline_mode<synchronous>, transform_indices = @transform_12, window_bounds = array<i64: 2, 32>}, {transform_indices = @transform_13, window_bounds = array<i64: 1, 2, 8>}]} {
    %c0 = arith.constant 0 : index
    %c0_0 = arith.constant 0 : index
    %c0_1 = arith.constant 0 : index
    %0 = vector.load %arg1[%c0, %c0_0, %c0_1] : memref<1x32x1xf32, #tpu.memory_space<vmem>>, vector<1x32x1xf32>
    %1 = vector.shape_cast %0 : vector<1x32x1xf32> to vector<32x1xf32>
    %c0_2 = arith.constant 0 : index
    %c0_3 = arith.constant 0 : index
    %2 = vector.load %arg2[%c0_2, %c0_3] : memref<1x32xf32, #tpu.memory_space<vmem>>, vector<1x32xf32>
    %3 = vector.broadcast %1 : vector<32x1xf32> to vector<32x32xf32>
    %4 = vector.broadcast %2 : vector<1x32xf32> to vector<32x32xf32>
    %5 = arith.mulf %3, %4 : vector<32x32xf32>
    %c0_4 = arith.constant 0 : index
    %c0_5 = arith.constant 0 : index
    %6 = vector.load %arg3[%c0_4, %c0_5] : memref<1x32xf32, #tpu.memory_space<vmem>>, vector<1x32xf32>
    %7 = vector.broadcast %6 : vector<1x32xf32> to vector<32x32xf32>
    %8 = arith.addf %5, %7 : vector<32x32xf32>
    %cst = arith.constant 0.000000e+00 : f32
    %9 = vector.broadcast %cst : f32 to vector<32x32xf32>
    %cst_6 = arith.constant 0.000000e+00 : f32
    %10 = vector.broadcast %cst_6 : f32 to vector<1x32xf32>
    %11 = tpu.concatenate %10, %8, %10 in 0 : vector<1x32xf32>, vector<32x32xf32>, vector<1x32xf32> -> vector<34x32xf32>
    %12 = vector.extract_strided_slice %11 {offsets = [0, 0], sizes = [32, 32], strides = [1, 1]} : vector<34x32xf32> to vector<32x32xf32>
    %c0_7 = arith.constant 0 : index
    %c0_8 = arith.constant 0 : index
    %c0_9 = arith.constant 0 : index
    %c0_10 = arith.constant 0 : index
    %13 = vector.load %arg12[%c0_7, %c0_8, %c0_9, %c0_10] : memref<3x3x32x1xf32, #tpu.memory_space<vmem>>, vector<1x1x32x1xf32>
    %14 = vector.shape_cast %13 : vector<1x1x32x1xf32> to vector<32x1xf32>
    %15 = vector.broadcast %14 : vector<32x1xf32> to vector<32x32xf32>
    %16 = arith.mulf %12, %15 : vector<32x32xf32>
    %17 = vector.extract_strided_slice %11 {offsets = [2, 0], sizes = [32, 32], strides = [1, 1]} : vector<34x32xf32> to vector<32x32xf32>
    %c0_11 = arith.constant 0 : index
    %c2 = arith.constant 2 : index
    %c0_12 = arith.constant 0 : index
    %c0_13 = arith.constant 0 : index
    %18 = vector.load %arg12[%c0_11, %c2, %c0_12, %c0_13] : memref<3x3x32x1xf32, #tpu.memory_space<vmem>>, vector<1x1x32x1xf32>
    %19 = vector.shape_cast %18 : vector<1x1x32x1xf32> to vector<32x1xf32>
    %20 = vector.broadcast %19 : vector<32x1xf32> to vector<32x32xf32>
    %21 = arith.mulf %17, %20 : vector<32x32xf32>
    %22 = tpu.concatenate %16, %8, %21 in 1 : vector<32x32xf32>, vector<32x32xf32>, vector<32x32xf32> -> vector<32x96xf32>
    %c0_14 = arith.constant 0 : index
    %c0_15 = arith.constant 0 : index
    %c0_16 = arith.constant 0 : index
    %23 = vector.load %arg4[%c0_14, %c0_15, %c0_16] : memref<3x96x64xf32, #tpu.memory_space<vmem>>, vector<1x96x64xf32>
    %24 = vector.shape_cast %23 : vector<1x96x64xf32> to vector<96x64xf32>
    %cst_17 = arith.constant dense<0.000000e+00> : vector<32x64xf32>
    %25 = tpu.matmul %22, %24, %cst_17 {dimension_numbers = #tpu.dot_dimension_numbers<[1], [0], [0], [1], [0, 0, 1, 1], [], []>} : vector<32x96xf32>, vector<96x64xf32>, vector<32x64xf32> -> vector<32x64xf32>
    %c0_18 = arith.constant 0 : index
    %c0_19 = arith.constant 0 : index
    %c0_20 = arith.constant 0 : index
    %26 = vector.load %arg5[%c0_18, %c0_19, %c0_20] : memref<3x1x64xf32, #tpu.memory_space<vmem>>, vector<1x1x64xf32>
    %27 = vector.shape_cast %26 : vector<1x1x64xf32> to vector<1x64xf32>
    %28 = vector.broadcast %27 : vector<1x64xf32> to vector<32x64xf32>
    %29 = arith.addf %25, %28 : vector<32x64xf32>
    %30 = vector.extract_strided_slice %29 {offsets = [0, 0], sizes = [32, 32], strides = [1, 1]} : vector<32x64xf32> to vector<32x32xf32>
    %31 = vector.extract_strided_slice %29 {offsets = [0, 32], sizes = [32, 32], strides = [1, 1]} : vector<32x64xf32> to vector<32x32xf32>
    %32 = math.tanh %30 : vector<32x32xf32>
    %33 = arith.negf %31 : vector<32x32xf32>
    %34 = math.exp %33 : vector<32x32xf32>
    %cst_21 = arith.constant 1.000000e+00 : f32
    %35 = vector.broadcast %cst_21 : f32 to vector<32x32xf32>
    %36 = arith.addf %35, %34 : vector<32x32xf32>
    %37 = arith.divf %35, %36 : vector<32x32xf32>
    %38 = arith.mulf %32, %37 : vector<32x32xf32>
    %c0_22 = arith.constant 0 : index
    %c0_23 = arith.constant 0 : index
    %c0_24 = arith.constant 0 : index
    %39 = vector.load %arg6[%c0_22, %c0_23, %c0_24] : memref<3x32x64xf32, #tpu.memory_space<vmem>>, vector<1x32x64xf32>
    %40 = vector.shape_cast %39 : vector<1x32x64xf32> to vector<32x64xf32>
    %cst_25 = arith.constant dense<0.000000e+00> : vector<32x64xf32>
    %41 = tpu.matmul %38, %40, %cst_25 {dimension_numbers = #tpu.dot_dimension_numbers<[1], [0], [0], [1], [0, 0, 1, 1], [], []>} : vector<32x32xf32>, vector<32x64xf32>, vector<32x64xf32> -> vector<32x64xf32>
    %c0_26 = arith.constant 0 : index
    %c0_27 = arith.constant 0 : index
    %c0_28 = arith.constant 0 : index
    %42 = vector.load %arg7[%c0_26, %c0_27, %c0_28] : memref<3x1x64xf32, #tpu.memory_space<vmem>>, vector<1x1x64xf32>
    %43 = vector.shape_cast %42 : vector<1x1x64xf32> to vector<1x64xf32>
    %44 = vector.broadcast %43 : vector<1x64xf32> to vector<32x64xf32>
    %45 = arith.addf %41, %44 : vector<32x64xf32>
    %46 = vector.extract_strided_slice %45 {offsets = [0, 0], sizes = [32, 32], strides = [1, 1]} : vector<32x64xf32> to vector<32x32xf32>
    %47 = arith.addf %46, %8 : vector<32x32xf32>
    %48 = vector.extract_strided_slice %45 {offsets = [0, 32], sizes = [32, 32], strides = [1, 1]} : vector<32x64xf32> to vector<32x32xf32>
    %49 = arith.addf %9, %48 : vector<32x32xf32>
    %cst_29 = arith.constant 0.000000e+00 : f32
    %50 = vector.broadcast %cst_29 : f32 to vector<2x32xf32>
    %51 = tpu.concatenate %50, %47, %50 in 0 : vector<2x32xf32>, vector<32x32xf32>, vector<2x32xf32> -> vector<36x32xf32>
    %52 = vector.extract_strided_slice %51 {offsets = [0, 0], sizes = [32, 32], strides = [1, 1]} : vector<36x32xf32> to vector<32x32xf32>
    %c1 = arith.constant 1 : index
    %c0_30 = arith.constant 0 : index
    %c0_31 = arith.constant 0 : index
    %c0_32 = arith.constant 0 : index
    %53 = vector.load %arg12[%c1, %c0_30, %c0_31, %c0_32] : memref<3x3x32x1xf32, #tpu.memory_space<vmem>>, vector<1x1x32x1xf32>
    %54 = vector.shape_cast %53 : vector<1x1x32x1xf32> to vector<32x1xf32>
    %55 = vector.broadcast %54 : vector<32x1xf32> to vector<32x32xf32>
    %56 = arith.mulf %52, %55 : vector<32x32xf32>
    %57 = vector.extract_strided_slice %51 {offsets = [4, 0], sizes = [32, 32], strides = [1, 1]} : vector<36x32xf32> to vector<32x32xf32>
    %c1_33 = arith.constant 1 : index
    %c2_34 = arith.constant 2 : index
    %c0_35 = arith.constant 0 : index
    %c0_36 = arith.constant 0 : index
    %58 = vector.load %arg12[%c1_33, %c2_34, %c0_35, %c0_36] : memref<3x3x32x1xf32, #tpu.memory_space<vmem>>, vector<1x1x32x1xf32>
    %59 = vector.shape_cast %58 : vector<1x1x32x1xf32> to vector<32x1xf32>
    %60 = vector.broadcast %59 : vector<32x1xf32> to vector<32x32xf32>
    %61 = arith.mulf %57, %60 : vector<32x32xf32>
    %62 = tpu.concatenate %56, %47, %61 in 1 : vector<32x32xf32>, vector<32x32xf32>, vector<32x32xf32> -> vector<32x96xf32>
    %c1_37 = arith.constant 1 : index
    %c0_38 = arith.constant 0 : index
    %c0_39 = arith.constant 0 : index
    %63 = vector.load %arg4[%c1_37, %c0_38, %c0_39] : memref<3x96x64xf32, #tpu.memory_space<vmem>>, vector<1x96x64xf32>
    %64 = vector.shape_cast %63 : vector<1x96x64xf32> to vector<96x64xf32>
    %cst_40 = arith.constant dense<0.000000e+00> : vector<32x64xf32>
    %65 = tpu.matmul %62, %64, %cst_40 {dimension_numbers = #tpu.dot_dimension_numbers<[1], [0], [0], [1], [0, 0, 1, 1], [], []>} : vector<32x96xf32>, vector<96x64xf32>, vector<32x64xf32> -> vector<32x64xf32>
    %c1_41 = arith.constant 1 : index
    %c0_42 = arith.constant 0 : index
    %c0_43 = arith.constant 0 : index
    %66 = vector.load %arg5[%c1_41, %c0_42, %c0_43] : memref<3x1x64xf32, #tpu.memory_space<vmem>>, vector<1x1x64xf32>
    %67 = vector.shape_cast %66 : vector<1x1x64xf32> to vector<1x64xf32>
    %68 = vector.broadcast %67 : vector<1x64xf32> to vector<32x64xf32>
    %69 = arith.addf %65, %68 : vector<32x64xf32>
    %70 = vector.extract_strided_slice %69 {offsets = [0, 0], sizes = [32, 32], strides = [1, 1]} : vector<32x64xf32> to vector<32x32xf32>
    %71 = vector.extract_strided_slice %69 {offsets = [0, 32], sizes = [32, 32], strides = [1, 1]} : vector<32x64xf32> to vector<32x32xf32>
    %72 = math.tanh %70 : vector<32x32xf32>
    %73 = arith.negf %71 : vector<32x32xf32>
    %74 = math.exp %73 : vector<32x32xf32>
    %cst_44 = arith.constant 1.000000e+00 : f32
    %75 = vector.broadcast %cst_44 : f32 to vector<32x32xf32>
    %76 = arith.addf %75, %74 : vector<32x32xf32>
    %77 = arith.divf %75, %76 : vector<32x32xf32>
    %78 = arith.mulf %72, %77 : vector<32x32xf32>
    %c1_45 = arith.constant 1 : index
    %c0_46 = arith.constant 0 : index
    %c0_47 = arith.constant 0 : index
    %79 = vector.load %arg6[%c1_45, %c0_46, %c0_47] : memref<3x32x64xf32, #tpu.memory_space<vmem>>, vector<1x32x64xf32>
    %80 = vector.shape_cast %79 : vector<1x32x64xf32> to vector<32x64xf32>
    %cst_48 = arith.constant dense<0.000000e+00> : vector<32x64xf32>
    %81 = tpu.matmul %78, %80, %cst_48 {dimension_numbers = #tpu.dot_dimension_numbers<[1], [0], [0], [1], [0, 0, 1, 1], [], []>} : vector<32x32xf32>, vector<32x64xf32>, vector<32x64xf32> -> vector<32x64xf32>
    %c1_49 = arith.constant 1 : index
    %c0_50 = arith.constant 0 : index
    %c0_51 = arith.constant 0 : index
    %82 = vector.load %arg7[%c1_49, %c0_50, %c0_51] : memref<3x1x64xf32, #tpu.memory_space<vmem>>, vector<1x1x64xf32>
    %83 = vector.shape_cast %82 : vector<1x1x64xf32> to vector<1x64xf32>
    %84 = vector.broadcast %83 : vector<1x64xf32> to vector<32x64xf32>
    %85 = arith.addf %81, %84 : vector<32x64xf32>
    %86 = vector.extract_strided_slice %85 {offsets = [0, 0], sizes = [32, 32], strides = [1, 1]} : vector<32x64xf32> to vector<32x32xf32>
    %87 = arith.addf %86, %47 : vector<32x32xf32>
    %88 = vector.extract_strided_slice %85 {offsets = [0, 32], sizes = [32, 32], strides = [1, 1]} : vector<32x64xf32> to vector<32x32xf32>
    %89 = arith.addf %49, %88 : vector<32x32xf32>
    %cst_52 = arith.constant 0.000000e+00 : f32
    %90 = vector.broadcast %cst_52 : f32 to vector<4x32xf32>
    %91 = tpu.concatenate %90, %87, %90 in 0 : vector<4x32xf32>, vector<32x32xf32>, vector<4x32xf32> -> vector<40x32xf32>
    %92 = vector.extract_strided_slice %91 {offsets = [0, 0], sizes = [32, 32], strides = [1, 1]} : vector<40x32xf32> to vector<32x32xf32>
    %c2_53 = arith.constant 2 : index
    %c0_54 = arith.constant 0 : index
    %c0_55 = arith.constant 0 : index
    %c0_56 = arith.constant 0 : index
    %93 = vector.load %arg12[%c2_53, %c0_54, %c0_55, %c0_56] : memref<3x3x32x1xf32, #tpu.memory_space<vmem>>, vector<1x1x32x1xf32>
    %94 = vector.shape_cast %93 : vector<1x1x32x1xf32> to vector<32x1xf32>
    %95 = vector.broadcast %94 : vector<32x1xf32> to vector<32x32xf32>
    %96 = arith.mulf %92, %95 : vector<32x32xf32>
    %97 = vector.extract_strided_slice %91 {offsets = [8, 0], sizes = [32, 32], strides = [1, 1]} : vector<40x32xf32> to vector<32x32xf32>
    %c2_57 = arith.constant 2 : index
    %c2_58 = arith.constant 2 : index
    %c0_59 = arith.constant 0 : index
    %c0_60 = arith.constant 0 : index
    %98 = vector.load %arg12[%c2_57, %c2_58, %c0_59, %c0_60] : memref<3x3x32x1xf32, #tpu.memory_space<vmem>>, vector<1x1x32x1xf32>
    %99 = vector.shape_cast %98 : vector<1x1x32x1xf32> to vector<32x1xf32>
    %100 = vector.broadcast %99 : vector<32x1xf32> to vector<32x32xf32>
    %101 = arith.mulf %97, %100 : vector<32x32xf32>
    %102 = tpu.concatenate %96, %87, %101 in 1 : vector<32x32xf32>, vector<32x32xf32>, vector<32x32xf32> -> vector<32x96xf32>
    %c2_61 = arith.constant 2 : index
    %c0_62 = arith.constant 0 : index
    %c0_63 = arith.constant 0 : index
    %103 = vector.load %arg4[%c2_61, %c0_62, %c0_63] : memref<3x96x64xf32, #tpu.memory_space<vmem>>, vector<1x96x64xf32>
    %104 = vector.shape_cast %103 : vector<1x96x64xf32> to vector<96x64xf32>
    %cst_64 = arith.constant dense<0.000000e+00> : vector<32x64xf32>
    %105 = tpu.matmul %102, %104, %cst_64 {dimension_numbers = #tpu.dot_dimension_numbers<[1], [0], [0], [1], [0, 0, 1, 1], [], []>} : vector<32x96xf32>, vector<96x64xf32>, vector<32x64xf32> -> vector<32x64xf32>
    %c2_65 = arith.constant 2 : index
    %c0_66 = arith.constant 0 : index
    %c0_67 = arith.constant 0 : index
    %106 = vector.load %arg5[%c2_65, %c0_66, %c0_67] : memref<3x1x64xf32, #tpu.memory_space<vmem>>, vector<1x1x64xf32>
    %107 = vector.shape_cast %106 : vector<1x1x64xf32> to vector<1x64xf32>
    %108 = vector.broadcast %107 : vector<1x64xf32> to vector<32x64xf32>
    %109 = arith.addf %105, %108 : vector<32x64xf32>
    %110 = vector.extract_strided_slice %109 {offsets = [0, 0], sizes = [32, 32], strides = [1, 1]} : vector<32x64xf32> to vector<32x32xf32>
    %111 = vector.extract_strided_slice %109 {offsets = [0, 32], sizes = [32, 32], strides = [1, 1]} : vector<32x64xf32> to vector<32x32xf32>
    %112 = math.tanh %110 : vector<32x32xf32>
    %113 = arith.negf %111 : vector<32x32xf32>
    %114 = math.exp %113 : vector<32x32xf32>
    %cst_68 = arith.constant 1.000000e+00 : f32
    %115 = vector.broadcast %cst_68 : f32 to vector<32x32xf32>
    %116 = arith.addf %115, %114 : vector<32x32xf32>
    %117 = arith.divf %115, %116 : vector<32x32xf32>
    %118 = arith.mulf %112, %117 : vector<32x32xf32>
    %c2_69 = arith.constant 2 : index
    %c0_70 = arith.constant 0 : index
    %c0_71 = arith.constant 0 : index
    %119 = vector.load %arg6[%c2_69, %c0_70, %c0_71] : memref<3x32x64xf32, #tpu.memory_space<vmem>>, vector<1x32x64xf32>
    %120 = vector.shape_cast %119 : vector<1x32x64xf32> to vector<32x64xf32>
    %cst_72 = arith.constant dense<0.000000e+00> : vector<32x64xf32>
    %121 = tpu.matmul %118, %120, %cst_72 {dimension_numbers = #tpu.dot_dimension_numbers<[1], [0], [0], [1], [0, 0, 1, 1], [], []>} : vector<32x32xf32>, vector<32x64xf32>, vector<32x64xf32> -> vector<32x64xf32>
    %c2_73 = arith.constant 2 : index
    %c0_74 = arith.constant 0 : index
    %c0_75 = arith.constant 0 : index
    %122 = vector.load %arg7[%c2_73, %c0_74, %c0_75] : memref<3x1x64xf32, #tpu.memory_space<vmem>>, vector<1x1x64xf32>
    %123 = vector.shape_cast %122 : vector<1x1x64xf32> to vector<1x64xf32>
    %124 = vector.broadcast %123 : vector<1x64xf32> to vector<32x64xf32>
    %125 = arith.addf %121, %124 : vector<32x64xf32>
    %126 = vector.extract_strided_slice %125 {offsets = [0, 32], sizes = [32, 32], strides = [1, 1]} : vector<32x64xf32> to vector<32x32xf32>
    %127 = arith.addf %89, %126 : vector<32x32xf32>
    %cst_76 = arith.constant 0.000000e+00 : f32
    %128 = vector.broadcast %cst_76 : f32 to vector<32x32xf32>
    %129 = arith.maximumf %127, %128 : vector<32x32xf32>
    %c0_77 = arith.constant 0 : index
    %c0_78 = arith.constant 0 : index
    %130 = vector.load %arg8[%c0_77, %c0_78] : memref<32x32xf32, #tpu.memory_space<vmem>>, vector<32x32xf32>
    %cst_79 = arith.constant dense<0.000000e+00> : vector<32x32xf32>
    %131 = tpu.matmul %129, %130, %cst_79 {dimension_numbers = #tpu.dot_dimension_numbers<[1], [0], [0], [1], [0, 0, 1, 1], [], []>} : vector<32x32xf32>, vector<32x32xf32>, vector<32x32xf32> -> vector<32x32xf32>
    %c0_80 = arith.constant 0 : index
    %c0_81 = arith.constant 0 : index
    %132 = vector.load %arg9[%c0_80, %c0_81] : memref<1x32xf32, #tpu.memory_space<vmem>>, vector<1x32xf32>
    %133 = vector.broadcast %132 : vector<1x32xf32> to vector<32x32xf32>
    %134 = arith.addf %131, %133 : vector<32x32xf32>
    %cst_82 = arith.constant 0.000000e+00 : f32
    %135 = vector.broadcast %cst_82 : f32 to vector<32x32xf32>
    %136 = arith.maximumf %134, %135 : vector<32x32xf32>
    %c0_83 = arith.constant 0 : index
    %c0_84 = arith.constant 0 : index
    %137 = vector.load %arg13[%c0_83, %c0_84] : memref<2x32xf32, #tpu.memory_space<vmem>>, vector<2x32xf32>
    %cst_85 = arith.constant dense<0.000000e+00> : vector<2x32xf32>
    %138 = tpu.matmul %137, %136, %cst_85 {dimension_numbers = #tpu.dot_dimension_numbers<[1], [0], [0], [1], [0, 0, 1, 1], [], []>} : vector<2x32xf32>, vector<32x32xf32>, vector<2x32xf32> -> vector<2x32xf32>
    %c0_86 = arith.constant 0 : index
    %c0_87 = arith.constant 0 : index
    %139 = vector.load %arg10[%c0_86, %c0_87] : memref<32x8xf32, #tpu.memory_space<vmem>>, vector<32x8xf32>
    %cst_88 = arith.constant dense<0.000000e+00> : vector<2x8xf32>
    %140 = tpu.matmul %138, %139, %cst_88 {dimension_numbers = #tpu.dot_dimension_numbers<[1], [0], [0], [1], [0, 0, 1, 1], [], []>} : vector<2x32xf32>, vector<32x8xf32>, vector<2x8xf32> -> vector<2x8xf32>
    %c0_89 = arith.constant 0 : index
    %c0_90 = arith.constant 0 : index
    %141 = vector.load %arg11[%c0_89, %c0_90] : memref<1x8xf32, #tpu.memory_space<vmem>>, vector<1x8xf32>
    %142 = vector.broadcast %141 : vector<1x8xf32> to vector<2x8xf32>
    %143 = arith.addf %140, %142 : vector<2x8xf32>
    %144 = arith.negf %143 : vector<2x8xf32>
    %145 = math.exp %144 : vector<2x8xf32>
    %cst_91 = arith.constant 1.000000e+00 : f32
    %146 = vector.broadcast %cst_91 : f32 to vector<2x8xf32>
    %147 = arith.addf %146, %145 : vector<2x8xf32>
    %148 = arith.divf %146, %147 : vector<2x8xf32>
    %c0_92 = arith.constant 0 : index
    %c0_93 = arith.constant 0 : index
    %c0_94 = arith.constant 0 : index
    %149 = vector.load %arg14[%c0_92, %c0_93, %c0_94] : memref<1x2x8xf32, #tpu.memory_space<vmem>>, vector<1x2x8xf32>
    %150 = vector.shape_cast %149 : vector<1x2x8xf32> to vector<2x8xf32>
    %151 = vector.shape_cast %148 : vector<2x8xf32> to vector<1x2x8xf32>
    tpu.vector_store %arg14[%c0_92, %c0_93, %c0_94], %151 {strides = array<i32>} : memref<1x2x8xf32, #tpu.memory_space<vmem>>, vector<1x2x8xf32>,
    return
  }
  func.func @transform_0(%arg0: i32) -> (i32, i32, i32) {
    %c0_i32 = arith.constant 0 : i32
    %c0_i32_0 = arith.constant 0 : i32
    %c0_i32_1 = arith.constant 0 : i32
    return %arg0, %c0_i32, %c0_i32_0 : i32, i32, i32
  }
  func.func @transform_1(%arg0: i32) -> (i32, i32) {
    %c0_i32 = arith.constant 0 : i32
    %c0_i32_0 = arith.constant 0 : i32
    %c0_i32_1 = arith.constant 0 : i32
    return %c0_i32, %c0_i32_0 : i32, i32
  }
  func.func @transform_2(%arg0: i32) -> (i32, i32) {
    %c0_i32 = arith.constant 0 : i32
    %c0_i32_0 = arith.constant 0 : i32
    %c0_i32_1 = arith.constant 0 : i32
    return %c0_i32, %c0_i32_0 : i32, i32
  }
  func.func @transform_3(%arg0: i32) -> (i32, i32, i32) {
    %c0_i32 = arith.constant 0 : i32
    %c0_i32_0 = arith.constant 0 : i32
    %c0_i32_1 = arith.constant 0 : i32
    %c0_i32_2 = arith.constant 0 : i32
    return %c0_i32, %c0_i32_0, %c0_i32_1 : i32, i32, i32
  }
  func.func @transform_4(%arg0: i32) -> (i32, i32, i32) {
    %c0_i32 = arith.constant 0 : i32
    %c0_i32_0 = arith.constant 0 : i32
    %c0_i32_1 = arith.constant 0 : i32
    %c0_i32_2 = arith.constant 0 : i32
    return %c0_i32, %c0_i32_0, %c0_i32_1 : i32, i32, i32
  }
  func.func @transform_5(%arg0: i32) -> (i32, i32, i32) {
    %c0_i32 = arith.constant 0 : i32
    %c0_i32_0 = arith.constant 0 : i32
    %c0_i32_1 = arith.constant 0 : i32
    %c0_i32_2 = arith.constant 0 : i32
    return %c0_i32, %c0_i32_0, %c0_i32_1 : i32, i32, i32
  }
  func.func @transform_6(%arg0: i32) -> (i32, i32, i32) {
    %c0_i32 = arith.constant 0 : i32
    %c0_i32_0 = arith.constant 0 : i32
    %c0_i32_1 = arith.constant 0 : i32
    %c0_i32_2 = arith.constant 0 : i32
    return %c0_i32, %c0_i32_0, %c0_i32_1 : i32, i32, i32
  }
  func.func @transform_7(%arg0: i32) -> (i32, i32) {
    %c0_i32 = arith.constant 0 : i32
    %c0_i32_0 = arith.constant 0 : i32
    %c0_i32_1 = arith.constant 0 : i32
    return %c0_i32, %c0_i32_0 : i32, i32
  }
  func.func @transform_8(%arg0: i32) -> (i32, i32) {
    %c0_i32 = arith.constant 0 : i32
    %c0_i32_0 = arith.constant 0 : i32
    %c0_i32_1 = arith.constant 0 : i32
    return %c0_i32, %c0_i32_0 : i32, i32
  }
  func.func @transform_9(%arg0: i32) -> (i32, i32) {
    %c0_i32 = arith.constant 0 : i32
    %c0_i32_0 = arith.constant 0 : i32
    %c0_i32_1 = arith.constant 0 : i32
    return %c0_i32, %c0_i32_0 : i32, i32
  }
  func.func @transform_10(%arg0: i32) -> (i32, i32) {
    %c0_i32 = arith.constant 0 : i32
    %c0_i32_0 = arith.constant 0 : i32
    %c0_i32_1 = arith.constant 0 : i32
    return %c0_i32, %c0_i32_0 : i32, i32
  }
  func.func @transform_11(%arg0: i32) -> (i32, i32, i32, i32) {
    %c0_i32 = arith.constant 0 : i32
    %c0_i32_0 = arith.constant 0 : i32
    %c0_i32_1 = arith.constant 0 : i32
    %c0_i32_2 = arith.constant 0 : i32
    %c0_i32_3 = arith.constant 0 : i32
    return %c0_i32, %c0_i32_0, %c0_i32_1, %c0_i32_2 : i32, i32, i32, i32
  }
  func.func @transform_12(%arg0: i32) -> (i32, i32) {
    %c0_i32 = arith.constant 0 : i32
    %c0_i32_0 = arith.constant 0 : i32
    %c0_i32_1 = arith.constant 0 : i32
    return %c0_i32, %c0_i32_0 : i32, i32
  }
  func.func @transform_13(%arg0: i32) -> (i32, i32, i32) {
    %c0_i32 = arith.constant 0 : i32
    %c0_i32_0 = arith.constant 0 : i32
    %c0_i32_1 = arith.constant 0 : i32
    return %arg0, %c0_i32, %c0_i32_0 : i32, i32, i32
  }
}

module attributes {stable_mosaic.version = 11 : i64} {
  func.func @_wavenet_kernel(%arg0: i32, %arg1: memref<1x32x1xf32, #tpu.memory_space<vmem>>, %arg2: memref<1x32xf32, #tpu.memory_space<vmem>>, %arg3: memref<1x32xf32, #tpu.memory_space<vmem>>, %arg4: memref<3x96x64xf32, #tpu.memory_space<vmem>>, %arg5: memref<3x1x64xf32, #tpu.memory_space<vmem>>, %arg6: memref<3x32x64xf32, #tpu.memory_space<vmem>>, %arg7: memref<3x1x64xf32, #tpu.memory_space<vmem>>, %arg8: memref<32x32xf32, #tpu.memory_space<vmem>>, %arg9: memref<1x32xf32, #tpu.memory_space<vmem>>, %arg10: memref<32x8xf32, #tpu.memory_space<vmem>>, %arg11: memref<1x8xf32, #tpu.memory_space<vmem>>, %arg12: memref<3x3x32x1xf32, #tpu.memory_space<vmem>>, %arg13: memref<2x32xf32, #tpu.memory_space<vmem>>, %arg14: memref<1x2x8xf32, #tpu.memory_space<vmem>>) attributes {dimension_semantics = [#tpu.dimension_semantics<parallel>], iteration_bounds = array<i64: 1>, scalar_prefetch = 0 : i64, scratch_operands = 0 : i64, tpu.core_type = #tpu.core_type<tc>, window_params = [{transform_indices = @transform_0, window_bounds = array<i64: 1, 32, 1>}, {pipeline_mode = #tpu.pipeline_mode<synchronous>, transform_indices = @transform_1, window_bounds = array<i64: 1, 32>}, {pipeline_mode = #tpu.pipeline_mode<synchronous>, transform_indices = @transform_2, window_bounds = array<i64: 1, 32>}, {pipeline_mode = #tpu.pipeline_mode<synchronous>, transform_indices = @transform_3, window_bounds = array<i64: 3, 96, 64>}, {pipeline_mode = #tpu.pipeline_mode<synchronous>, transform_indices = @transform_4, window_bounds = array<i64: 3, 1, 64>}, {pipeline_mode = #tpu.pipeline_mode<synchronous>, transform_indices = @transform_5, window_bounds = array<i64: 3, 32, 64>}, {pipeline_mode = #tpu.pipeline_mode<synchronous>, transform_indices = @transform_6, window_bounds = array<i64: 3, 1, 64>}, {pipeline_mode = #tpu.pipeline_mode<synchronous>, transform_indices = @transform_7, window_bounds = array<i64: 32, 32>}, {pipeline_mode = #tpu.pipeline_mode<synchronous>, transform_indices = @transform_8, window_bounds = array<i64: 1, 32>}, {pipeline_mode = #tpu.pipeline_mode<synchronous>, transform_indices = @transform_9, window_bounds = array<i64: 32, 8>}, {pipeline_mode = #tpu.pipeline_mode<synchronous>, transform_indices = @transform_10, window_bounds = array<i64: 1, 8>}, {pipeline_mode = #tpu.pipeline_mode<synchronous>, transform_indices = @transform_11, window_bounds = array<i64: 3, 3, 32, 1>}, {pipeline_mode = #tpu.pipeline_mode<synchronous>, transform_indices = @transform_12, window_bounds = array<i64: 2, 32>}, {transform_indices = @transform_13, window_bounds = array<i64: 1, 2, 8>}]} {
    %c0 = arith.constant 0 : index
    %c0_0 = arith.constant 0 : index
    %c0_1 = arith.constant 0 : index
    %0 = vector.load %arg1[%c0, %c0_0, %c0_1] : memref<1x32x1xf32, #tpu.memory_space<vmem>>, vector<1x32x1xf32>
    %1 = vector.shape_cast %0 : vector<1x32x1xf32> to vector<32x1xf32>
    %c0_2 = arith.constant 0 : index
    %c0_3 = arith.constant 0 : index
    %2 = vector.load %arg2[%c0_2, %c0_3] : memref<1x32xf32, #tpu.memory_space<vmem>>, vector<1x32xf32>
    %3 = vector.broadcast %1 : vector<32x1xf32> to vector<32x32xf32>
    %4 = vector.broadcast %2 : vector<1x32xf32> to vector<32x32xf32>
    %5 = arith.mulf %3, %4 : vector<32x32xf32>
    %c0_4 = arith.constant 0 : index
    %c0_5 = arith.constant 0 : index
    %6 = vector.load %arg3[%c0_4, %c0_5] : memref<1x32xf32, #tpu.memory_space<vmem>>, vector<1x32xf32>
    %7 = vector.broadcast %6 : vector<1x32xf32> to vector<32x32xf32>
    %8 = arith.addf %5, %7 : vector<32x32xf32>
    %cst = arith.constant 0.000000e+00 : f32
    %9 = vector.broadcast %cst : f32 to vector<32x32xf32>
    %cst_6 = arith.constant 0.000000e+00 : f32
    %10 = vector.broadcast %cst_6 : f32 to vector<1x32xf32>
    %11 = tpu.concatenate %10, %8, %10 in 0 : vector<1x32xf32>, vector<32x32xf32>, vector<1x32xf32> -> vector<34x32xf32>
    %12 = vector.extract_strided_slice %11 {offsets = [0, 0], sizes = [32, 32], strides = [1, 1]} : vector<34x32xf32> to vector<32x32xf32>
    %c0_7 = arith.constant 0 : index
    %c0_8 = arith.constant 0 : index
    %c0_9 = arith.constant 0 : index
    %c0_10 = arith.constant 0 : index
    %13 = vector.load %arg12[%c0_7, %c0_8, %c0_9, %c0_10] : memref<3x3x32x1xf32, #tpu.memory_space<vmem>>, vector<1x1x32x1xf32>
    %14 = vector.shape_cast %13 : vector<1x1x32x1xf32> to vector<32x1xf32>
    %15 = vector.broadcast %14 : vector<32x1xf32> to vector<32x32xf32>
    %16 = arith.mulf %12, %15 : vector<32x32xf32>
    %17 = vector.extract_strided_slice %11 {offsets = [2, 0], sizes = [32, 32], strides = [1, 1]} : vector<34x32xf32> to vector<32x32xf32>
    %c0_11 = arith.constant 0 : index
    %c2 = arith.constant 2 : index
    %c0_12 = arith.constant 0 : index
    %c0_13 = arith.constant 0 : index
    %18 = vector.load %arg12[%c0_11, %c2, %c0_12, %c0_13] : memref<3x3x32x1xf32, #tpu.memory_space<vmem>>, vector<1x1x32x1xf32>
    %19 = vector.shape_cast %18 : vector<1x1x32x1xf32> to vector<32x1xf32>
    %20 = vector.broadcast %19 : vector<32x1xf32> to vector<32x32xf32>
    %21 = arith.mulf %17, %20 : vector<32x32xf32>
    %22 = tpu.concatenate %16, %8, %21 in 1 : vector<32x32xf32>, vector<32x32xf32>, vector<32x32xf32> -> vector<32x96xf32>
    %c0_14 = arith.constant 0 : index
    %c0_15 = arith.constant 0 : index
    %c0_16 = arith.constant 0 : index
    %23 = vector.load %arg4[%c0_14, %c0_15, %c0_16] : memref<3x96x64xf32, #tpu.memory_space<vmem>>, vector<1x96x64xf32>
    %24 = vector.shape_cast %23 : vector<1x96x64xf32> to vector<96x64xf32>
    %cst_17 = arith.constant dense<0.000000e+00> : vector<32x64xf32>
    %25 = tpu.matmul %22, %24, %cst_17 {dimension_numbers = #tpu.dot_dimension_numbers<[1], [0], [0], [1], [0, 0, 1, 1], [], []>} : vector<32x96xf32>, vector<96x64xf32>, vector<32x64xf32> -> vector<32x64xf32>
    %c0_18 = arith.constant 0 : index
    %c0_19 = arith.constant 0 : index
    %c0_20 = arith.constant 0 : index
    %26 = vector.load %arg5[%c0_18, %c0_19, %c0_20] : memref<3x1x64xf32, #tpu.memory_space<vmem>>, vector<1x1x64xf32>
    %27 = vector.shape_cast %26 : vector<1x1x64xf32> to vector<1x64xf32>
    %28 = vector.broadcast %27 : vector<1x64xf32> to vector<32x64xf32>
    %29 = arith.addf %25, %28 : vector<32x64xf32>
    %30 = vector.extract_strided_slice %29 {offsets = [0, 0], sizes = [32, 32], strides = [1, 1]} : vector<32x64xf32> to vector<32x32xf32>
    %31 = vector.extract_strided_slice %29 {offsets = [0, 32], sizes = [32, 32], strides = [1, 1]} : vector<32x64xf32> to vector<32x32xf32>
    %32 = math.tanh %30 : vector<32x32xf32>
    %33 = arith.negf %31 : vector<32x32xf32>
    %34 = math.exp %33 : vector<32x32xf32>
    %cst_21 = arith.constant 1.000000e+00 : f32
    %35 = vector.broadcast %cst_21 : f32 to vector<32x32xf32>
    %36 = arith.addf %35, %34 : vector<32x32xf32>
    %37 = arith.divf %35, %36 : vector<32x32xf32>
    %38 = arith.mulf %32, %37 : vector<32x32xf32>
    %c0_22 = arith.constant 0 : index
    %c0_23 = arith.constant 0 : index
    %c0_24 = arith.constant 0 : index
    %39 = vector.load %arg6[%c0_22, %c0_23, %c0_24] : memref<3x32x64xf32, #tpu.memory_space<vmem>>, vector<1x32x64xf32>
    %40 = vector.shape_cast %39 : vector<1x32x64xf32> to vector<32x64xf32>
    %cst_25 = arith.constant dense<0.000000e+00> : vector<32x64xf32>
    %41 = tpu.matmul %38, %40, %cst_25 {dimension_numbers = #tpu.dot_dimension_numbers<[1], [0], [0], [1], [0, 0, 1, 1], [], []>} : vector<32x32xf32>, vector<32x64xf32>, vector<32x64xf32> -> vector<32x64xf32>
    %c0_26 = arith.constant 0 : index
    %c0_27 = arith.constant 0 : index
    %c0_28 = arith.constant 0 : index
    %42 = vector.load %arg7[%c0_26, %c0_27, %c0_28] : memref<3x1x64xf32, #tpu.memory_space<vmem>>, vector<1x1x64xf32>
    %43 = vector.shape_cast %42 : vector<1x1x64xf32> to vector<1x64xf32>
    %44 = vector.broadcast %43 : vector<1x64xf32> to vector<32x64xf32>
    %45 = arith.addf %41, %44 : vector<32x64xf32>
    %46 = vector.extract_strided_slice %45 {offsets = [0, 0], sizes = [32, 32], strides = [1, 1]} : vector<32x64xf32> to vector<32x32xf32>
    %47 = arith.addf %46, %8 : vector<32x32xf32>
    %48 = vector.extract_strided_slice %45 {offsets = [0, 32], sizes = [32, 32], strides = [1, 1]} : vector<32x64xf32> to vector<32x32xf32>
    %49 = arith.addf %9, %48 : vector<32x32xf32>
    %cst_29 = arith.constant 0.000000e+00 : f32
    %50 = vector.broadcast %cst_29 : f32 to vector<2x32xf32>
    %51 = tpu.concatenate %50, %47, %50 in 0 : vector<2x32xf32>, vector<32x32xf32>, vector<2x32xf32> -> vector<36x32xf32>
    %52 = vector.extract_strided_slice %51 {offsets = [0, 0], sizes = [32, 32], strides = [1, 1]} : vector<36x32xf32> to vector<32x32xf32>
    %c1 = arith.constant 1 : index
    %c0_30 = arith.constant 0 : index
    %c0_31 = arith.constant 0 : index
    %c0_32 = arith.constant 0 : index
    %53 = vector.load %arg12[%c1, %c0_30, %c0_31, %c0_32] : memref<3x3x32x1xf32, #tpu.memory_space<vmem>>, vector<1x1x32x1xf32>
    %54 = vector.shape_cast %53 : vector<1x1x32x1xf32> to vector<32x1xf32>
    %55 = vector.broadcast %54 : vector<32x1xf32> to vector<32x32xf32>
    %56 = arith.mulf %52, %55 : vector<32x32xf32>
    %57 = vector.extract_strided_slice %51 {offsets = [4, 0], sizes = [32, 32], strides = [1, 1]} : vector<36x32xf32> to vector<32x32xf32>
    %c1_33 = arith.constant 1 : index
    %c2_34 = arith.constant 2 : index
    %c0_35 = arith.constant 0 : index
    %c0_36 = arith.constant 0 : index
    %58 = vector.load %arg12[%c1_33, %c2_34, %c0_35, %c0_36] : memref<3x3x32x1xf32, #tpu.memory_space<vmem>>, vector<1x1x32x1xf32>
    %59 = vector.shape_cast %58 : vector<1x1x32x1xf32> to vector<32x1xf32>
    %60 = vector.broadcast %59 : vector<32x1xf32> to vector<32x32xf32>
    %61 = arith.mulf %57, %60 : vector<32x32xf32>
    %62 = tpu.concatenate %56, %47, %61 in 1 : vector<32x32xf32>, vector<32x32xf32>, vector<32x32xf32> -> vector<32x96xf32>
    %c1_37 = arith.constant 1 : index
    %c0_38 = arith.constant 0 : index
    %c0_39 = arith.constant 0 : index
    %63 = vector.load %arg4[%c1_37, %c0_38, %c0_39] : memref<3x96x64xf32, #tpu.memory_space<vmem>>, vector<1x96x64xf32>
    %64 = vector.shape_cast %63 : vector<1x96x64xf32> to vector<96x64xf32>
    %cst_40 = arith.constant dense<0.000000e+00> : vector<32x64xf32>
    %65 = tpu.matmul %62, %64, %cst_40 {dimension_numbers = #tpu.dot_dimension_numbers<[1], [0], [0], [1], [0, 0, 1, 1], [], []>} : vector<32x96xf32>, vector<96x64xf32>, vector<32x64xf32> -> vector<32x64xf32>
    %c1_41 = arith.constant 1 : index
    %c0_42 = arith.constant 0 : index
    %c0_43 = arith.constant 0 : index
    %66 = vector.load %arg5[%c1_41, %c0_42, %c0_43] : memref<3x1x64xf32, #tpu.memory_space<vmem>>, vector<1x1x64xf32>
    %67 = vector.shape_cast %66 : vector<1x1x64xf32> to vector<1x64xf32>
    %68 = vector.broadcast %67 : vector<1x64xf32> to vector<32x64xf32>
    %69 = arith.addf %65, %68 : vector<32x64xf32>
    %70 = vector.extract_strided_slice %69 {offsets = [0, 0], sizes = [32, 32], strides = [1, 1]} : vector<32x64xf32> to vector<32x32xf32>
    %71 = vector.extract_strided_slice %69 {offsets = [0, 32], sizes = [32, 32], strides = [1, 1]} : vector<32x64xf32> to vector<32x32xf32>
    %72 = math.tanh %70 : vector<32x32xf32>
    %73 = arith.negf %71 : vector<32x32xf32>
    %74 = math.exp %73 : vector<32x32xf32>
    %cst_44 = arith.constant 1.000000e+00 : f32
    %75 = vector.broadcast %cst_44 : f32 to vector<32x32xf32>
    %76 = arith.addf %75, %74 : vector<32x32xf32>
    %77 = arith.divf %75, %76 : vector<32x32xf32>
    %78 = arith.mulf %72, %77 : vector<32x32xf32>
    %c1_45 = arith.constant 1 : index
    %c0_46 = arith.constant 0 : index
    %c0_47 = arith.constant 0 : index
    %79 = vector.load %arg6[%c1_45, %c0_46, %c0_47] : memref<3x32x64xf32, #tpu.memory_space<vmem>>, vector<1x32x64xf32>
    %80 = vector.shape_cast %79 : vector<1x32x64xf32> to vector<32x64xf32>
    %cst_48 = arith.constant dense<0.000000e+00> : vector<32x64xf32>
    %81 = tpu.matmul %78, %80, %cst_48 {dimension_numbers = #tpu.dot_dimension_numbers<[1], [0], [0], [1], [0, 0, 1, 1], [], []>} : vector<32x32xf32>, vector<32x64xf32>, vector<32x64xf32> -> vector<32x64xf32>
    %c1_49 = arith.constant 1 : index
    %c0_50 = arith.constant 0 : index
    %c0_51 = arith.constant 0 : index
    %82 = vector.load %arg7[%c1_49, %c0_50, %c0_51] : memref<3x1x64xf32, #tpu.memory_space<vmem>>, vector<1x1x64xf32>
    %83 = vector.shape_cast %82 : vector<1x1x64xf32> to vector<1x64xf32>
    %84 = vector.broadcast %83 : vector<1x64xf32> to vector<32x64xf32>
    %85 = arith.addf %81, %84 : vector<32x64xf32>
    %86 = vector.extract_strided_slice %85 {offsets = [0, 0], sizes = [32, 32], strides = [1, 1]} : vector<32x64xf32> to vector<32x32xf32>
    %87 = arith.addf %86, %47 : vector<32x32xf32>
    %88 = vector.extract_strided_slice %85 {offsets = [0, 32], sizes = [32, 32], strides = [1, 1]} : vector<32x64xf32> to vector<32x32xf32>
    %89 = arith.addf %49, %88 : vector<32x32xf32>
    %cst_52 = arith.constant 0.000000e+00 : f32
    %90 = vector.broadcast %cst_52 : f32 to vector<4x32xf32>
    %91 = tpu.concatenate %90, %87, %90 in 0 : vector<4x32xf32>, vector<32x32xf32>, vector<4x32xf32> -> vector<40x32xf32>
    %92 = vector.extract_strided_slice %91 {offsets = [0, 0], sizes = [32, 32], strides = [1, 1]} : vector<40x32xf32> to vector<32x32xf32>
    %c2_53 = arith.constant 2 : index
    %c0_54 = arith.constant 0 : index
    %c0_55 = arith.constant 0 : index
    %c0_56 = arith.constant 0 : index
    %93 = vector.load %arg12[%c2_53, %c0_54, %c0_55, %c0_56] : memref<3x3x32x1xf32, #tpu.memory_space<vmem>>, vector<1x1x32x1xf32>
    %94 = vector.shape_cast %93 : vector<1x1x32x1xf32> to vector<32x1xf32>
    %95 = vector.broadcast %94 : vector<32x1xf32> to vector<32x32xf32>
    %96 = arith.mulf %92, %95 : vector<32x32xf32>
    %97 = vector.extract_strided_slice %91 {offsets = [8, 0], sizes = [32, 32], strides = [1, 1]} : vector<40x32xf32> to vector<32x32xf32>
    %c2_57 = arith.constant 2 : index
    %c2_58 = arith.constant 2 : index
    %c0_59 = arith.constant 0 : index
    %c0_60 = arith.constant 0 : index
    %98 = vector.load %arg12[%c2_57, %c2_58, %c0_59, %c0_60] : memref<3x3x32x1xf32, #tpu.memory_space<vmem>>, vector<1x1x32x1xf32>
    %99 = vector.shape_cast %98 : vector<1x1x32x1xf32> to vector<32x1xf32>
    %100 = vector.broadcast %99 : vector<32x1xf32> to vector<32x32xf32>
    %101 = arith.mulf %97, %100 : vector<32x32xf32>
    %102 = tpu.concatenate %96, %87, %101 in 1 : vector<32x32xf32>, vector<32x32xf32>, vector<32x32xf32> -> vector<32x96xf32>
    %c2_61 = arith.constant 2 : index
    %c0_62 = arith.constant 0 : index
    %c0_63 = arith.constant 0 : index
    %103 = vector.load %arg4[%c2_61, %c0_62, %c0_63] : memref<3x96x64xf32, #tpu.memory_space<vmem>>, vector<1x96x64xf32>
    %104 = vector.shape_cast %103 : vector<1x96x64xf32> to vector<96x64xf32>
    %cst_64 = arith.constant dense<0.000000e+00> : vector<32x64xf32>
    %105 = tpu.matmul %102, %104, %cst_64 {dimension_numbers = #tpu.dot_dimension_numbers<[1], [0], [0], [1], [0, 0, 1, 1], [], []>} : vector<32x96xf32>, vector<96x64xf32>, vector<32x64xf32> -> vector<32x64xf32>
    %c2_65 = arith.constant 2 : index
    %c0_66 = arith.constant 0 : index
    %c0_67 = arith.constant 0 : index
    %106 = vector.load %arg5[%c2_65, %c0_66, %c0_67] : memref<3x1x64xf32, #tpu.memory_space<vmem>>, vector<1x1x64xf32>
    %107 = vector.shape_cast %106 : vector<1x1x64xf32> to vector<1x64xf32>
    %108 = vector.broadcast %107 : vector<1x64xf32> to vector<32x64xf32>
    %109 = arith.addf %105, %108 : vector<32x64xf32>
    %110 = vector.extract_strided_slice %109 {offsets = [0, 0], sizes = [32, 32], strides = [1, 1]} : vector<32x64xf32> to vector<32x32xf32>
    %111 = vector.extract_strided_slice %109 {offsets = [0, 32], sizes = [32, 32], strides = [1, 1]} : vector<32x64xf32> to vector<32x32xf32>
    %112 = math.tanh %110 : vector<32x32xf32>
    %113 = arith.negf %111 : vector<32x32xf32>
    %114 = math.exp %113 : vector<32x32xf32>
    %cst_68 = arith.constant 1.000000e+00 : f32
    %115 = vector.broadcast %cst_68 : f32 to vector<32x32xf32>
    %116 = arith.addf %115, %114 : vector<32x32xf32>
    %117 = arith.divf %115, %116 : vector<32x32xf32>
    %118 = arith.mulf %112, %117 : vector<32x32xf32>
    %c2_69 = arith.constant 2 : index
    %c0_70 = arith.constant 0 : index
    %c0_71 = arith.constant 0 : index
    %119 = vector.load %arg6[%c2_69, %c0_70, %c0_71] : memref<3x32x64xf32, #tpu.memory_space<vmem>>, vector<1x32x64xf32>
    %120 = vector.shape_cast %119 : vector<1x32x64xf32> to vector<32x64xf32>
    %cst_72 = arith.constant dense<0.000000e+00> : vector<32x64xf32>
    %121 = tpu.matmul %118, %120, %cst_72 {dimension_numbers = #tpu.dot_dimension_numbers<[1], [0], [0], [1], [0, 0, 1, 1], [], []>} : vector<32x32xf32>, vector<32x64xf32>, vector<32x64xf32> -> vector<32x64xf32>
    %c2_73 = arith.constant 2 : index
    %c0_74 = arith.constant 0 : index
    %c0_75 = arith.constant 0 : index
    %122 = vector.load %arg7[%c2_73, %c0_74, %c0_75] : memref<3x1x64xf32, #tpu.memory_space<vmem>>, vector<1x1x64xf32>
    %123 = vector.shape_cast %122 : vector<1x1x64xf32> to vector<1x64xf32>
    %124 = vector.broadcast %123 : vector<1x64xf32> to vector<32x64xf32>
    %125 = arith.addf %121, %124 : vector<32x64xf32>
    %126 = vector.extract_strided_slice %125 {offsets = [0, 32], sizes = [32, 32], strides = [1, 1]} : vector<32x64xf32> to vector<32x32xf32>
    %127 = arith.addf %89, %126 : vector<32x32xf32>
    %cst_76 = arith.constant 0.000000e+00 : f32
    %128 = vector.broadcast %cst_76 : f32 to vector<32x32xf32>
    %129 = arith.maximumf %127, %128 : vector<32x32xf32>
    %c0_77 = arith.constant 0 : index
    %c0_78 = arith.constant 0 : index
    %130 = vector.load %arg8[%c0_77, %c0_78] : memref<32x32xf32, #tpu.memory_space<vmem>>, vector<32x32xf32>
    %cst_79 = arith.constant dense<0.000000e+00> : vector<32x32xf32>
    %131 = tpu.matmul %129, %130, %cst_79 {dimension_numbers = #tpu.dot_dimension_numbers<[1], [0], [0], [1], [0, 0, 1, 1], [], []>} : vector<32x32xf32>, vector<32x32xf32>, vector<32x32xf32> -> vector<32x32xf32>
    %c0_80 = arith.constant 0 : index
    %c0_81 = arith.constant 0 : index
    %132 = vector.load %arg9[%c0_80, %c0_81] : memref<1x32xf32, #tpu.memory_space<vmem>>, vector<1x32xf32>
    %133 = vector.broadcast %132 : vector<1x32xf32> to vector<32x32xf32>
    %134 = arith.addf %131, %133 : vector<32x32xf32>
    %cst_82 = arith.constant 0.000000e+00 : f32
    %135 = vector.broadcast %cst_82 : f32 to vector<32x32xf32>
    %136 = arith.maximumf %134, %135 : vector<32x32xf32>
    %c0_83 = arith.constant 0 : index
    %c0_84 = arith.constant 0 : index
    %137 = vector.load %arg13[%c0_83, %c0_84] : memref<2x32xf32, #tpu.memory_space<vmem>>, vector<2x32xf32>
    %cst_85 = arith.constant dense<0.000000e+00> : vector<2x32xf32>
    %138 = tpu.matmul %137, %136, %cst_85 {dimension_numbers = #tpu.dot_dimension_numbers<[1], [0], [0], [1], [0, 0, 1, 1], [], []>} : vector<2x32xf32>, vector<32x32xf32>, vector<2x32xf32> -> vector<2x32xf32>
    %c0_86 = arith.constant 0 : index
    %c0_87 = arith.constant 0 : index
    %139 = vector.load %arg10[%c0_86, %c0_87] : memref<32x8xf32, #tpu.memory_space<vmem>>, vector<32x8xf32>
    %cst_88 = arith.constant dense<0.000000e+00> : vector<2x8xf32>
    %140 = tpu.matmul %138, %139, %cst_88 {dimension_numbers = #tpu.dot_dimension_numbers<[1], [0], [0], [1], [0, 0, 1, 1], [], []>} : vector<2x32xf32>, vector<32x8xf32>, vector<2x8xf32> -> vector<2x8xf32>
    %c0_89 = arith.constant 0 : index
    %c0_90 = arith.constant 0 : index
    %141 = vector.load %arg11[%c0_89, %c0_90] : memref<1x8xf32, #tpu.memory_space<vmem>>, vector<1x8xf32>
    %142 = vector.broadcast %141 : vector<1x8xf32> to vector<2x8xf32>
    %143 = arith.addf %140, %142 : vector<2x8xf32>
    %144 = arith.negf %143 : vector<2x8xf32>
    %145 = math.exp %144 : vector<2x8xf32>
    %cst_91 = arith.constant 1.000000e+00 : f32
    %146 = vector.broadcast %cst_91 : f32 to vector<2x8xf32>
    %147 = arith.addf %146, %145 : vector<2x8xf32>
    %148 = arith.divf %146, %147 : vector<2x8xf32>
    %c0_92 = arith.constant 0 : index
    %c0_93 = arith.constant 0 : index
    %c0_94 = arith.constant 0 : index
    %149 = vector.load %arg14[%c0_92, %c0_93, %c0_94] : memref<1x2x8xf32, #tpu.memory_space<vmem>>, vector<1x2x8xf32>
    %150 = vector.shape_cast %149 : vector<1x2x8xf32> to vector<2x8xf32>
    %151 = vector.shape_cast %148 : vector<2x8xf32> to vector<1x2x8xf32>
    tpu.vector_store %arg14[%c0_92, %c0_93, %c0_94], %151 {strides = array<i32>} : memref<1x2x8xf32, #tpu.memory_space<vmem>>, vector<1x2x8xf32>,
    return
  }
  func.func @transform_0(%arg0: i32) -> (i32, i32, i32) {
    %c0_i32 = arith.constant 0 : i32
    %c0_i32_0 = arith.constant 0 : i32
    %c0_i32_1 = arith.constant 0 : i32
    return %arg0, %c0_i32, %c0_i32_0 : i32, i32, i32
  }
  func.func @transform_1(%arg0: i32) -> (i32, i32) {
    %c0_i32 = arith.constant 0 : i32
    %c0_i32_0 = arith.constant 0 : i32
    %c0_i32_1 = arith.constant 0 : i32
    return %c0_i32, %c0_i32_0 : i32, i32
  }
  func.func @transform_2(%arg0: i32) -> (i32, i32) {
    %c0_i32 = arith.constant 0 : i32
    %c0_i32_0 = arith.constant 0 : i32
    %c0_i32_1 = arith.constant 0 : i32
    return %c0_i32, %c0_i32_0 : i32, i32
  }
  func.func @transform_3(%arg0: i32) -> (i32, i32, i32) {
    %c0_i32 = arith.constant 0 : i32
    %c0_i32_0 = arith.constant 0 : i32
    %c0_i32_1 = arith.constant 0 : i32
    %c0_i32_2 = arith.constant 0 : i32
    return %c0_i32, %c0_i32_0, %c0_i32_1 : i32, i32, i32
  }
  func.func @transform_4(%arg0: i32) -> (i32, i32, i32) {
    %c0_i32 = arith.constant 0 : i32
    %c0_i32_0 = arith.constant 0 : i32
    %c0_i32_1 = arith.constant 0 : i32
    %c0_i32_2 = arith.constant 0 : i32
    return %c0_i32, %c0_i32_0, %c0_i32_1 : i32, i32, i32
  }
  func.func @transform_5(%arg0: i32) -> (i32, i32, i32) {
    %c0_i32 = arith.constant 0 : i32
    %c0_i32_0 = arith.constant 0 : i32
    %c0_i32_1 = arith.constant 0 : i32
    %c0_i32_2 = arith.constant 0 : i32
    return %c0_i32, %c0_i32_0, %c0_i32_1 : i32, i32, i32
  }
  func.func @transform_6(%arg0: i32) -> (i32, i32, i32) {
    %c0_i32 = arith.constant 0 : i32
    %c0_i32_0 = arith.constant 0 : i32
    %c0_i32_1 = arith.constant 0 : i32
    %c0_i32_2 = arith.constant 0 : i32
    return %c0_i32, %c0_i32_0, %c0_i32_1 : i32, i32, i32
  }
  func.func @transform_7(%arg0: i32) -> (i32, i32) {
    %c0_i32 = arith.constant 0 : i32
    %c0_i32_0 = arith.constant 0 : i32
    %c0_i32_1 = arith.constant 0 : i32
    return %c0_i32, %c0_i32_0 : i32, i32
  }
  func.func @transform_8(%arg0: i32) -> (i32, i32) {
    %c0_i32 = arith.constant 0 : i32
    %c0_i32_0 = arith.constant 0 : i32
    %c0_i32_1 = arith.constant 0 : i32
    return %c0_i32, %c0_i32_0 : i32, i32
  }
  func.func @transform_9(%arg0: i32) -> (i32, i32) {
    %c0_i32 = arith.constant 0 : i32
    %c0_i32_0 = arith.constant 0 : i32
    %c0_i32_1 = arith.constant 0 : i32
    return %c0_i32, %c0_i32_0 : i32, i32
  }
  func.func @transform_10(%arg0: i32) -> (i32, i32) {
    %c0_i32 = arith.constant 0 : i32
    %c0_i32_0 = arith.constant 0 : i32
    %c0_i32_1 = arith.constant 0 : i32
    return %c0_i32, %c0_i32_0 : i32, i32
  }
  func.func @transform_11(%arg0: i32) -> (i32, i32, i32, i32) {
    %c0_i32 = arith.constant 0 : i32
    %c0_i32_0 = arith.constant 0 : i32
    %c0_i32_1 = arith.constant 0 : i32
    %c0_i32_2 = arith.constant 0 : i32
    %c0_i32_3 = arith.constant 0 : i32
    return %c0_i32, %c0_i32_0, %c0_i32_1, %c0_i32_2 : i32, i32, i32, i32
  }
  func.func @transform_12(%arg0: i32) -> (i32, i32) {
    %c0_i32 = arith.constant 0 : i32
    %c0_i32_0 = arith.constant 0 : i32
    %c0_i32_1 = arith.constant 0 : i32
    return %c0_i32, %c0_i32_0 : i32, i32
  }
  func.func @transform_13(%arg0: i32) -> (i32, i32, i32) {
    %c0_i32 = arith.constant 0 : i32
    %c0_i32_0 = arith.constant 0 : i32
    %c0_i32_1 = arith.constant 0 : i32
    return %arg0, %c0_i32, %c0_i32_0 : i32, i32, i32
  }
}

</mosaic_0001>

<bundles_post_ra>
// kernel: tpu_custom_call.1
= control target key start
LH: loop header
LB: loop body
LE: loop exit
PB: predicated region body
PF: predicated region fallthrough
CT: control target
= control target key end

     0   :  { %v1491_v3 = vmov 0   ;;  %s2121_s0 = inlined_call_operand.vmem [shape: f32[1,32,1], index: 0, kind: input, shape index: {}]   ;;  %s2122_s1 = inlined_call_operand.vmem [shape: f32[1,32], index: 1, kind: input, shape index: {}]   ;;  %s2123_s2 = inlined_call_operand.vmem [shape: f32[1,32], index: 2, kind: input, shape index: {}]   ;;  %s2124_s3 = inlined_call_operand.vmem [shape: f32[3,96,64], index: 3, kind: input, shape index: {}]   ;;  %s2125_s4 = inlined_call_operand.vmem [shape: f32[3,1,64], index: 4, kind: input, shape index: {}]   ;;  %s2126_s5 = inlined_call_operand.vmem [shape: f32[3,32,64], index: 5, kind: input, shape index: {}]   ;;  %s2127_s6 = inlined_call_operand.vmem [shape: f32[3,1,64], index: 6, kind: input, shape index: {}]   ;;  %s2128_s7 = inlined_call_operand.vmem [shape: f32[32,32], index: 7, kind: input, shape index: {}]   ;;  %s2129_s8 = inlined_call_operand.vmem [shape: f32[1,32], index: 8, kind: input, shape index: {}]   ;;  %s2130_s9 = inlined_call_operand.vmem [shape: f32[32,8], index: 9, kind: input, shape index: {}]   ;;  %s2131_s10 = inlined_call_operand.vmem [shape: f32[1,8], index: 10, kind: input, shape index: {}]   ;;  %s2132_s11 = inlined_call_operand.vmem [shape: f32[3,3,32,1], index: 11, kind: input, shape index: {}]   ;;  %s2133_s12 = inlined_call_operand.vmem [shape: f32[2,32], index: 12, kind: input, shape index: {}]   ;;  %s2134_s13 = inlined_call_operand.hbm [shape: f32[1,2,8], index: 13, kind: output, shape index: {}]  }
   0x1   :  { %v1268_v0 = vld [vmem:[%s2132_s11 + $0x40] sm:$0xff]  ;;  %v47_v1 = vld [vmem:[%s2121_s0 + $0x10] sm:$0xff]  ;;  %1378 = vset.pattern.permute.xlu2 %v1491_v3  ;;  %1377 = vset.pattern.permute.xlu1 %v1491_v3  ;;  %v1269_v4 = vld [vmem:[%s2132_s11 + $0x48] sm:$0xff] }
   0x2   :  { %v45_v2 = vld [vmem:[%s2121_s0] sm:$0xff]  ;;  %1376 = vset.pattern.permute.xlu0 %v1491_v3  ;;  %139 = vperm.xlu1 %1377, %v1268_v0  }
   0x3   :  { %62 = vperm.xlu2 %1378, %v47_v1   ;;  %52 = vperm.xlu0 %1376, %v45_v2  }
   0x4   :  { %18 = vsyncpa [#allocation3], 0  ;;  %v1270_v5 = vld [vmem:[%s2132_s11 + $0x50] sm:$0xff]  ;;  %v46_v6 = vld [vmem:[%s2121_s0 + $0x8] sm:$0xff]  ;;  %s1492_s18 = smov 32   ;;  %vm89_vm0 = vcmask 1040384  }
   0x5   :  { %v1271_v7 = vld [vmem:[%s2132_s11 + $0x58] sm:$0xff]  ;;  %v104_v8 = vld [vmem:[%s2132_s11] sm:$0xff]  ;;  %v105_v10 = vld [vmem:[%s2132_s11 + $0x8] sm:$0xff]  ;;  %vm153_vm1 = vcmask 1041408   ;;  %vm188_vm2 = vcmask 1045504   ;;  %s1493_s23 = smov 64  }
   0x6   :  { %v48_v9 = vld [vmem:[%s2121_s0 + $0x18] sm:$0xff]  ;;  %v106_v11 = vld [vmem:[%s2132_s11 + $0x10] sm:$0xff]  ;;  %v1379_v13 = vld [vmem:[%s2122_s1] ss:$0 sm:$0xff]  ;;  %vm210_vm3 = vcmask 261120   ;;  %vm215_vm4 = vcmask 523264  }
   0x7   :  { %v107_v12 = vld [vmem:[%s2132_s11 + $0x18] sm:$0xff]  ;;  %v1380_v14 = vld [vmem:[%s2123_s2] ss:$0 sm:$0xff]  ;;  %v230_v33 = vld [vmem:[%s2124_s3 + $0x50] sm:$0xff]  ;;  %vm236_vm5 = vcmask 785408   ;;  %s1494_s26 = smov 96  }
   0x8   :  { %v231_v32 = vld [vmem:[%s2124_s3 + $0x58] sm:$0xff]  ;;  %v229_v39 = vld [vmem:[%s2124_s3 + $0x48] sm:$0xff]  ;;  %v228_v0 = vld [vmem:[%s2124_s3 + $0x40] sm:$0xff] }
   0x9   :  { %253 = vmatpush.msra.mxu0 %v231_v32  ;;  %v227_v1 = vld [vmem:[%s2124_s3 + $0x38] sm:$0xff]  ;;  %v226_v2 = vld [vmem:[%s2124_s3 + $0x30] sm:$0xff]  ;;  %v225_v3 = vld [vmem:[%s2124_s3 + $0x28] sm:$0xff] }
   0xa   :  { %143 = vperm.xlu1 %1377, %v1269_v4   ;;  %v224_v4 = vld [vmem:[%s2124_s3 + $0x20] sm:$0xff] }
   0xb   :  { %147 = vperm.xlu2 %1378, %v1270_v5   ;;  %57 = vperm.xlu0 %1376, %v46_v6   ;;  %v223_v5 = vld [vmem:[%s2124_s3 + $0x18] sm:$0xff]  ;;  %v222_v6 = vld [vmem:[%s2124_s3 + $0x10] sm:$0xff] }
   0xc   :  { %254 = vmatpush.msra.mxu0 %v230_v33 }
   0xe   :  { %255 = vmatpush.msra.mxu0 %v229_v39 }
  0x10   :  { %256 = vmatpush.msra.mxu0 %v228_v0 }
  0x12   :  { %151 = vperm.xlu1 %1377, %v1271_v7   ;;  %257 = vmatpush.msra.mxu0 %v227_v1  ;;  %v221_v7 = vld [vmem:[%s2124_s3 + $0x8] sm:$0xff] }
  0x13   :  { %110 = vperm.xlu2 %1378, %v104_v8   ;;  %67 = vperm.xlu0 %1376, %v48_v9   ;;  %v220_v8 = vld [vmem:[%s2124_s3] sm:$0xff] }
  0x14   :  { %258 = vmatpush.msra.mxu0 %v226_v2 }
  0x16   :  { %259 = vmatpush.msra.mxu0 %v225_v3 }
  0x18   :  { %260 = vmatpush.msra.mxu0 %v224_v4 }
  0x1a   :  { %261 = vmatpush.msra.mxu0 %v223_v5 }
  0x1b   :  { %115 = vperm.xlu2 %1378, %v105_v10  }
  0x1c   :  { %262 = vmatpush.msra.mxu0 %v222_v6 }
  0x1e   :  { %263 = vmatpush.msra.mxu0 %v221_v7 }
  0x20   :  { %264 = vmatpush.msra.mxu0 %v220_v8 }
  0x23   :  { %120 = vperm.xlu2 %1378, %v106_v11  }
  0x2b   :  { %125 = vperm.xlu2 %1378, %v107_v12  }
  0x5d   :  { %v63_v19 = vpop.permute.xlu2 %62 }
  0x5e   :  { %v75_v20 = vmul.f32 %v1379_v13, %v63_v19 }
  0x60   :  { %v1613_v24 = vadd.f32 %v1380_v14, %v75_v20 }
  0x62   :  { %v93_v30 = vrot.slane %v1613_v24, 7 }
  0x65   :  { %v148_v34 = vpop.permute.xlu2 %147 }
  0x66   :  { %v157_v36 = vrot.slane %v148_v34, 6 }
  0x6d   :  { %v111_v9 = vpop.permute.xlu2 %110 }
  0x74   :  { %v140_v15 = vpop.permute.xlu1 %139 }
  0x75   :  { %v53_v16 = vpop.permute.xlu0 %52  ;;  %v154_v26 = vrot.slane %v140_v15, 6 }
  0x76   :  { %v73_v17 = vmul.f32 %v1379_v13, %v53_v16 }
  0x78   :  { %v1608_v18 = vadd.f32 %v1380_v14, %v73_v17 }
  0x7a   :  { %171 = vrot.lane.b32.xlu0 %v1608_v18, %s1492_s18  ;;  %v90_v21 = vrot.slane %v1608_v18, 7 }
  0x7c   :  { %v144_v22 = vpop.permute.xlu1 %143  ;;  %v1618_v29 = vsel %vm89_vm0, 0.0, %v90_v21 }
  0x7d   :  { %v58_v23 = vpop.permute.xlu0 %57  ;;  %v155_v27 = vrot.slane %v144_v22, 6  ;;  %v166_v35 = vmul.f32 %v154_v26, %v1618_v29  ;;  %v128_v11 = vmul.f32 %v111_v9, %v1618_v29 }
  0x7e   :  { %v74_v25 = vmul.f32 %v1379_v13, %v58_v23 }
  0x7f   :  { %v156_v37 = vsel %vm153_vm1, %v154_v26, %v155_v27  ;;  %v189_v44 = vrot.slane %v166_v35, 2  ;;  %v158_v46 = vsel %vm153_vm1, %v155_v27, %v157_v36 }
  0x80   :  { %v1615_v28 = vadd.f32 %v1380_v14, %v74_v25 }
  0x82   :  { %v91_v31 = vrot.slane %v1615_v28, 7  ;;  %173 = vrot.lane.b32.xlu0 %v1615_v28, %s1492_s18 }
  0x84   :  { %v1633_v38 = vsel %vm89_vm0, %v90_v21, %v91_v31  ;;  %v1640_v43 = vsel %vm89_vm0, %v91_v31, %v93_v30  ;;  %v152_v48 = vpop.permute.xlu1 %151 }
  0x85   :  { %v68_v40 = vpop.permute.xlu0 %67  ;;  %v167_v41 = vmul.f32 %v156_v37, %v1633_v38  ;;  %v168_v50 = vmul.f32 %v158_v46, %v1640_v43  ;;  %v159_v52 = vrot.slane %v152_v48, 6 }
  0x86   :  { %v76_v42 = vmul.f32 %v1379_v13, %v68_v40 }
  0x87   :  { %v190_v45 = vrot.slane %v167_v41, 2  ;;  %v192_v53 = vrot.slane %v168_v50, 2  ;;  %v160_v55 = vsel %vm153_vm1, %v157_v36, %v159_v52  ;;  %v1381_v36 = vld [vmem:[%s2125_s4] ss:$0 sm:$0xff] }
  0x88   :  { %v1643_v47 = vadd.f32 %v1380_v14, %v76_v42  ;;  %v116_v14 = vpop.permute.xlu2 %115 }
  0x89   :  { %v191_v49 = vsel %vm188_vm2, %v189_v44, %v190_v45  ;;  %v193_v56 = vsel %vm188_vm2, %v190_v45, %v192_v53  ;;  %v129_v17 = vmul.f32 %v116_v14, %v1633_v38 }
  0x8a   :  { %v95_v51 = vrot.slane %v1643_v47, 7  ;;  %175 = vrot.lane.b32.xlu0 %v1613_v24, %s1492_s18  ;;  %198 = vrot.lane.b32.xlu1 %v191_v49, %s1493_s23 }
  0x8c   :  { %v96_v54 = vsel %vm89_vm0, %v93_v30, %v95_v51  ;;  %v103_v59 = vsel %vm89_vm0, %v95_v51, 0.0 }
  0x8d   :  { %v169_v57 = vmul.f32 %v160_v55, %v96_v54  ;;  %v170_v61 = vmul.f32 %v159_v52, %v103_v59 }
  0x8f   :  { %v194_v58 = vrot.slane %v169_v57, 2  ;;  %v196_v62 = vrot.slane %v170_v61, 2 }
  0x90   :  { %v121_v22 = vpop.permute.xlu2 %120 }
  0x91   :  { %v195_v60 = vsel %vm188_vm2, %v192_v53, %v194_v58  ;;  %v197_v63 = vsel %vm188_vm2, %v194_v58, %v196_v62  ;;  %v130_v25 = vmul.f32 %v121_v22, %v1640_v43 }
  0x92   :  { %200 = vrot.lane.b32.xlu1 %v193_v56, %s1493_s23  ;;  %177 = vrot.lane.b32.xlu0 %v1643_v47, %s1492_s18 }
  0x98   :  { %v126_v30 = vpop.permute.xlu2 %125 }
  0x99   :  { %v131_v32 = vmul.f32 %v126_v30, %v96_v54 }
  0x9a   :  { %202 = vrot.lane.b32.xlu1 %v195_v60, %s1493_s23 }
  0xa2   :  { %204 = vrot.lane.b32.xlu1 %v197_v63, %s1493_s23 }
  0xec   :  { %v172_v10 = vpop.permute.xlu0 %171 }
  0xed   :  { %v211_v12 = vsel %vm210_vm3, %v128_v11, %v172_v10 }
  0xf4   :  { %v174_v15 = vpop.permute.xlu0 %173 }
  0xf5   :  { %v212_v19 = vsel %vm210_vm3, %v129_v17, %v174_v15 }
  0xfc   :  { %v199_v13 = vpop.permute.xlu1 %198  ;;  %v176_v23 = vpop.permute.xlu0 %175 }
  0xfd   :  { %v216_v16 = vsel %vm215_vm4, %v211_v12, %v199_v13  ;;  %v213_v26 = vsel %vm210_vm3, %v130_v25, %v176_v23  ;;  %v1288_v23 = vld [vmem:[%s2132_s11 + $0xa0] sm:$0xff] }
  0xfe   :  { %1272 = vmatmul.msk.f32.vlgmr.msra.gmra.mxu0 %vm236_vm5, %v216_v16 }
 0x104   :  { %v201_v20 = vpop.permute.xlu1 %200  ;;  %v178_v31 = vpop.permute.xlu0 %177 }
 0x105   :  { %v217_v21 = vsel %vm215_vm4, %v212_v19, %v201_v20  ;;  %v214_v33 = vsel %vm210_vm3, %v131_v32, %v178_v31 }
 0x106   :  { %1273 = vmatmul.msk.f32.gmra.mxu0 %vm236_vm5, %v217_v21 }
 0x10c   :  { %v203_v27 = vpop.permute.xlu1 %202 }
 0x10d   :  { %v218_v29 = vsel %vm215_vm4, %v213_v26, %v203_v27 }
 0x10e   :  { %1274 = vmatmul.msk.f32.gmra.mxu0 %vm236_vm5, %v218_v29 }
 0x114   :  { %v205_v34 = vpop.permute.xlu1 %204 }
 0x115   :  { %v219_v35 = vsel %vm215_vm4, %v214_v33, %v205_v34 }
 0x116   :  { %1275 = vmatmul.msk.f32.gmra.mxu0 %vm236_vm5, %v219_v35  ;;  %v1291_v35 = vld [vmem:[%s2132_s11 + $0xb8] sm:$0xff] }
 0x17b   :  { %v266_v37 = vpop.f32.mrf.mxu0 }
 0x17c   :  { %v1707_v38 = vadd.f32 %v1381_v36, %v266_v37 }
 0x17e   :  { %v1276_v39 = vmul.f32 -1.442695, %v1707_v38 }
 0x180   :  { %1389 = vpow2.f32 %v1276_v39 }
 0x183   :  { %v269_v40 = vpop.f32.mrf.mxu0 }
 0x184   :  { %v1710_v41 = vadd.f32 %v1381_v36, %v269_v40 }
 0x186   :  { %v1390_v42 = vpop.eup %1389  ;;  %v1277_v43 = vmul.f32 -1.442695, %v1710_v41 }
 0x187   :  { %v294_v44 = vadd.f32 1.0, %v1390_v42  ;;  %v381_v42 = vld [vmem:[%s2126_s5 + $0x18] sm:$0xff] }
 0x188   :  { %1391 = vpow2.f32 %v1277_v43  ;;  %v380_v43 = vld [vmem:[%s2126_s5 + $0x10] sm:$0xff]  ;;  %410 = vmatpush.msra.mxu1 %v381_v42 }
 0x189   :  { %1393 = vrcp.f32 %v294_v44  ;;  %v309_v55 = vand.u32 2147483648, %v294_v44  ;;  %v307_v58 = vand.u32 2147483647, %v294_v44  ;;  %vm303_vm7 = vweird.f32 %v294_v44 }
 0x18a   :  { %411 = vmatpush.msra.mxu1 %v380_v43 }
 0x18b   :  { %v272_v45 = vpop.f32.mrf.mxu0  ;;  %v310_v0 = vor.u32 1.1754944e-38, %v309_v55  ;;  %vm308_vm9 = vcmp.eq.f32.partialorder %v307_v58, 8.507059e+37 }
 0x18c   :  { %v1713_v46 = vadd.f32 %v1381_v36, %v272_v45  ;;  %v1284_v45 = vld [vmem:[%s2132_s11 + $0x60] sm:$0xff] }
 0x18e   :  { %v1392_v48 = vpop.eup %1391  ;;  %v1278_v49 = vmul.f32 -1.442695, %v1713_v46 }
 0x18f   :  { %v1394_v50 = vpop.eup %1393  ;;  %v295_v51 = vadd.f32 1.0, %v1392_v48  ;;  %v1290_v48 = vld [vmem:[%s2132_s11 + $0xb0] sm:$0xff] }
 0x190   :  { %1395 = vpow2.f32 %v1278_v49  ;;  %v299_v52 = vmul.f32 %v1394_v50, %v294_v44  ;;  %vm304_vm6 = vweird.f32 %v1394_v50  ;;  %v379_v44 = vld [vmem:[%s2126_s5 + $0x8] sm:$0xff] }
 0x191   :  { %1397 = vrcp.f32 %v295_v51  ;;  %vm305_vm8 = vmor %vm303_vm7, %vm304_vm6  ;;  %v324_v5 = vand.u32 2147483648, %v295_v51  ;;  %v322_v7 = vand.u32 2147483647, %v295_v51  ;;  %vm318_vm11 = vweird.f32 %v295_v51  ;;  %412 = vmatpush.msra.mxu1 %v379_v44  ;;  %v1285_v49 = vld [vmem:[%s2132_s11 + $0x68] sm:$0xff] }
 0x192   :  { %v300_v53 = vsub.f32 1.0, %v299_v52  ;;  %v378_v52 = vld [vmem:[%s2126_s5] sm:$0xff] }
 0x193   :  { %v275_v54 = vpop.f32.mrf.mxu0  ;;  %v325_v12 = vor.u32 1.1754944e-38, %v324_v5  ;;  %vm323_vm13 = vcmp.eq.f32.partialorder %v322_v7, 8.507059e+37  ;;  %413 = vmatpush.msra.mxu1 %v378_v52  ;;  %v1299_v52 = vld [vmem:[%s2124_s3 + $0x98] sm:$0xff] }
 0x194   :  { %v1716_v56 = vadd.f32 %v1381_v36, %v275_v54  ;;  %v301_v57 = vmul.f32 %v1394_v50, %v300_v53  ;;  %v1289_v36 = vld [vmem:[%s2132_s11 + $0xa8] sm:$0xff] }
 0x196   :  { %v1396_v59 = vpop.eup %1395  ;;  %v1279_v60 = vmul.f32 -1.442695, %v1716_v56  ;;  %v302_v61 = vadd.f32 %v1394_v50, %v301_v57 }
 0x197   :  { %v1398_v62 = vpop.eup %1397  ;;  %v296_v63 = vadd.f32 1.0, %v1396_v59 }
 0x198   :  { %1399 = vpow2.f32 %v1279_v60  ;;  %v306_v1 = vsel %vm305_vm8, %v1394_v50, %v302_v61  ;;  %v314_v2 = vmul.f32 %v1398_v62, %v295_v51  ;;  %vm319_vm10 = vweird.f32 %v1398_v62  ;;  %v1286_v50 = vld [vmem:[%s2132_s11 + $0x70] sm:$0xff]  ;;  %v1287_v51 = vld [vmem:[%s2132_s11 + $0x78] sm:$0xff] }
 0x199   :  { %1401 = vrcp.f32 %v296_v63  ;;  %v311_v3 = vsel %vm308_vm9, %v310_v0, %v306_v1  ;;  %vm320_vm12 = vmor %vm318_vm11, %vm319_vm10  ;;  %v339_v17 = vand.u32 2147483648, %v296_v63  ;;  %v337_v20 = vand.u32 2147483647, %v296_v63 }
 0x19a   :  { %362 = vrot.lane.b32.xlu2 %v311_v3, %s1494_s26  ;;  %v315_v4 = vsub.f32 1.0, %v314_v2  ;;  %vm333_vm15 = vweird.f32 %v296_v63  ;;  %vm503_vm10 = vcmask 1043456  }
 0x19b   :  { %v340_v25 = vor.u32 1.1754944e-38, %v339_v17  ;;  %vm338_vm2 = vcmp.eq.f32.partialorder %v337_v20, 8.507059e+37 }
 0x19c   :  { %v316_v6 = vmul.f32 %v1398_v62, %v315_v4 }
 0x19e   :  { %v1400_v8 = vpop.eup %1399  ;;  %v317_v9 = vadd.f32 %v1398_v62, %v316_v6 }
 0x19f   :  { %v1402_v10 = vpop.eup %1401  ;;  %v297_v11 = vadd.f32 1.0, %v1400_v8 }
 0x1a0   :  { %v321_v13 = vsel %vm320_vm12, %v1398_v62, %v317_v9  ;;  %v329_v14 = vmul.f32 %v1402_v10, %v296_v63  ;;  %vm334_vm14 = vweird.f32 %v1402_v10 }
 0x1a1   :  { %1403 = vrcp.f32 %v297_v11  ;;  %v326_v15 = vsel %vm323_vm13, %v325_v12, %v321_v13  ;;  %vm335_vm0 = vmor %vm333_vm15, %vm334_vm14  ;;  %v354_v31 = vand.u32 2147483648, %v297_v11  ;;  %v352_v33 = vand.u32 2147483647, %v297_v11 }
 0x1a2   :  { %364 = vrot.lane.b32.xlu0 %v326_v15, %s1494_s26  ;;  %v330_v16 = vsub.f32 1.0, %v329_v14  ;;  %vm348_vm7 = vweird.f32 %v297_v11  ;;  %1405 = vtanh.f32 %v1707_v38 }
 0x1a3   :  { %v355_v37 = vor.u32 1.1754944e-38, %v354_v31  ;;  %vm353_vm9 = vcmp.eq.f32.partialorder %v352_v33, 8.507059e+37  ;;  %1407 = vtanh.f32 %v1710_v41  ;;  %v1382_v41 = vld [vmem:[%s2127_s6] ss:$0 sm:$0xff] }
 0x1a4   :  { %v331_v19 = vmul.f32 %v1402_v10, %v330_v16  ;;  %1409 = vtanh.f32 %v1713_v46 }
 0x1a5   :  { %1411 = vtanh.f32 %v1716_v56 }
 0x1a6   :  { %v332_v21 = vadd.f32 %v1402_v10, %v331_v19 }
 0x1a7   :  { %v1404_v22 = vpop.eup %1403 }
 0x1a8   :  { %v336_v26 = vsel %vm335_vm0, %v1402_v10, %v332_v21  ;;  %v344_v27 = vmul.f32 %v1404_v22, %v297_v11  ;;  %vm349_vm6 = vweird.f32 %v1404_v22  ;;  %v1406_v53 = vpop.eup %1405 }
 0x1a9   :  { %v341_v29 = vsel %vm338_vm2, %v340_v25, %v336_v26  ;;  %vm350_vm8 = vmor %vm348_vm7, %vm349_vm6  ;;  %v1408_v57 = vpop.eup %1407 }
 0x1aa   :  { %489 = vperm.xlu0 %1376, %v1288_v23   ;;  %366 = vrot.lane.b32.xlu1 %v341_v29, %s1494_s26  ;;  %v345_v30 = vsub.f32 1.0, %v344_v27  ;;  %v1410_v60 = vpop.eup %1409 }
 0x1ab   :  { %v1412_v63 = vpop.eup %1411 }
 0x1ac   :  { %v346_v32 = vmul.f32 %v1404_v22, %v345_v30 }
 0x1ae   :  { %v347_v34 = vadd.f32 %v1404_v22, %v346_v32 }
 0x1b0   :  { %v351_v39 = vsel %vm350_vm8, %v1404_v22, %v347_v34 }
 0x1b1   :  { %v356_v40 = vsel %vm353_vm9, %v355_v37, %v351_v39 }
 0x1b2   :  { %501 = vperm.xlu0 %1376, %v1291_v35   ;;  %493 = vperm.xlu1 %1377, %v1289_v36  }
 0x1b3   :  { %368 = vrot.lane.b32.xlu2 %v356_v40, %s1494_s26 }
 0x1ba   :  { %460 = vperm.xlu1 %1377, %v1284_v45  }
 0x1bb   :  { %497 = vperm.xlu2 %1378, %v1290_v48   ;;  %v1303_v48 = vld [vmem:[%s2124_s3 + $0xb8] sm:$0xff] }
 0x1bc   :  { %601 = vmatpush.msra.mxu2 %v1303_v48 }
 0x1c2   :  { %465 = vperm.xlu1 %1377, %v1285_v49   ;;  %v1302_v49 = vld [vmem:[%s2124_s3 + $0xb0] sm:$0xff] }
 0x1c3   :  { %602 = vmatpush.msra.mxu2 %v1302_v49 }
 0x1ca   :  { %470 = vperm.xlu1 %1377, %v1286_v50   ;;  %v1301_v50 = vld [vmem:[%s2124_s3 + $0xa8] sm:$0xff] }
 0x1cb   :  { %603 = vmatpush.msra.mxu2 %v1301_v50 }
 0x1d2   :  { %475 = vperm.xlu1 %1377, %v1287_v51   ;;  %v1300_v51 = vld [vmem:[%s2124_s3 + $0xa0] sm:$0xff] }
 0x1d3   :  { %604 = vmatpush.msra.mxu2 %v1300_v51 }
 0x1d5   :  { %605 = vmatpush.msra.mxu2 %v1299_v52 }
 0x1f4   :  { %v363_v54 = vpop.permute.xlu2 %362 }
 0x1f5   :  { %v374_v55 = vmul.f32 %v1406_v53, %v363_v54  ;;  %v1298_v53 = vld [vmem:[%s2124_s3 + $0x90] sm:$0xff]  ;;  %v1297_v54 = vld [vmem:[%s2124_s3 + $0x88] sm:$0xff] }
 0x1f6   :  { %606 = vmatpush.msra.mxu2 %v1298_v53 }
 0x1f7   :  { %1280 = vmatmul.msk.f32.vlgmr.msra.gmra.mxu1 %vm210_vm3, %v374_v55  ;;  %v1296_v55 = vld [vmem:[%s2124_s3 + $0x80] sm:$0xff] }
 0x1f8   :  { %607 = vmatpush.msra.mxu2 %v1297_v54 }
 0x1fa   :  { %608 = vmatpush.msra.mxu2 %v1296_v55 }
 0x20d   :  { %v369_v38 = vpop.permute.xlu2 %368 }
 0x20e   :  { %v377_v0 = vmul.f32 %v1412_v63, %v369_v38 }
 0x214   :  { %v365_v58 = vpop.permute.xlu0 %364 }
 0x215   :  { %v375_v59 = vmul.f32 %v1408_v57, %v365_v58  ;;  %v498_v16 = vpop.permute.xlu2 %497  ;;  %v1295_v57 = vld [vmem:[%s2124_s3 + $0x78] sm:$0xff]  ;;  %v1294_v58 = vld [vmem:[%s2124_s3 + $0x70] sm:$0xff] }
 0x216   :  { %v507_v22 = vrot.slane %v498_v16, 4  ;;  %609 = vmatpush.msra.mxu2 %v1295_v57 }
 0x217   :  { %1281 = vmatmul.msk.f32.gmra.mxu1 %vm210_vm3, %v375_v59  ;;  %v1293_v59 = vld [vmem:[%s2124_s3 + $0x68] sm:$0xff] }
 0x218   :  { %610 = vmatpush.msra.mxu2 %v1294_v58 }
 0x21a   :  { %611 = vmatpush.msra.mxu2 %v1293_v59 }
 0x21c   :  { %v367_v61 = vpop.permute.xlu1 %366  ;;  %v490_v5 = vpop.permute.xlu0 %489 }
 0x21d   :  { %v376_v62 = vmul.f32 %v1410_v60, %v367_v61  ;;  %v1292_v60 = vld [vmem:[%s2124_s3 + $0x60] sm:$0xff] }
 0x21e   :  { %612 = vmatpush.msra.mxu2 %v1292_v60 }
 0x21f   :  { %1282 = vmatmul.msk.f32.gmra.mxu1 %vm210_vm3, %v376_v62 }
 0x224   :  { %v494_v3 = vpop.permute.xlu1 %493  ;;  %v502_v27 = vpop.permute.xlu0 %501 }
 0x225   :  { %v505_v7 = vrot.slane %v494_v3, 4  ;;  %v509_v32 = vrot.slane %v502_v27, 4 }
 0x227   :  { %1283 = vmatmul.msk.f32.gmra.mxu1 %vm210_vm3, %v377_v0  ;;  %v508_v25 = vsel %vm503_vm10, %v505_v7, %v507_v22  ;;  %v510_v36 = vsel %vm503_vm10, %v507_v22, %v509_v32  ;;  %v1383_v22 = vld [vmem:[%s2125_s4 + $0x1] ss:$0 sm:$0xff] }
 0x22c   :  { %v461_v61 = vpop.permute.xlu1 %460 }
 0x274   :  { %v415_v1 = vpop.f32.mrf.mxu1 }
 0x275   :  { %v1770_v46 = vadd.f32 %v1382_v41, %v415_v1 }
 0x277   :  { %v1774_v2 = vadd.f32 %v1770_v46, %v1608_v18  ;;  %v504_v18 = vrot.slane %v490_v5, 4 }
 0x279   :  { %521 = vrot.lane.b32.xlu2 %v1774_v2, %s1492_s18  ;;  %v439_v56 = vrot.slane %v1774_v2, 6  ;;  %v506_v12 = vsel %vm503_vm10, %v504_v18, %v505_v7 }
 0x27b   :  { %v1786_v9 = vsel %vm153_vm1, 0.0, %v439_v56 }
 0x27c   :  { %v516_v11 = vmul.f32 %v504_v18, %v1786_v9  ;;  %v478_v38 = vmul.f32 %v461_v61, %v1786_v9 }
 0x27e   :  { %v538_v17 = vrot.slane %v516_v11, 4 }
 0x294   :  { %v418_v4 = vpop.f32.mrf.mxu1 }
 0x295   :  { %v1779_v6 = vadd.f32 %v1382_v41, %v418_v4 }
 0x297   :  { %v1783_v8 = vadd.f32 %v1779_v6, %v1615_v28 }
 0x299   :  { %v440_v10 = vrot.slane %v1783_v8, 6  ;;  %523 = vrot.lane.b32.xlu2 %v1783_v8, %s1492_s18 }
 0x29b   :  { %v1794_v13 = vsel %vm153_vm1, %v439_v56, %v440_v10 }
 0x29c   :  { %v421_v14 = vpop.f32.mrf.mxu1  ;;  %v517_v28 = vmul.f32 %v506_v12, %v1794_v13 }
 0x29d   :  { %v1797_v15 = vadd.f32 %v1382_v41, %v421_v14 }
 0x29e   :  { %v539_v19 = vrot.slane %v517_v28, 4 }
 0x29f   :  { %v1801_v20 = vadd.f32 %v1797_v15, %v1613_v24 }
 0x2a0   :  { %v540_v21 = vsel %vm503_vm10, %v538_v17, %v539_v19 }
 0x2a1   :  { %v442_v23 = vrot.slane %v1801_v20, 6  ;;  %525 = vrot.lane.b32.xlu2 %v1801_v20, %s1492_s18  ;;  %547 = vrot.lane.b32.xlu0 %v540_v21, %s1493_s23 }
 0x2a3   :  { %v1810_v26 = vsel %vm153_vm1, %v440_v10, %v442_v23 }
 0x2a4   :  { %v424_v29 = vpop.f32.mrf.mxu1  ;;  %v518_v24 = vmul.f32 %v508_v25, %v1810_v26 }
 0x2a5   :  { %v1813_v30 = vadd.f32 %v1382_v41, %v424_v29  ;;  %v466_v41 = vpop.permute.xlu1 %465 }
 0x2a6   :  { %v541_v31 = vrot.slane %v518_v24, 4  ;;  %v479_v3 = vmul.f32 %v466_v41, %v1794_v13 }
 0x2a7   :  { %v1817_v33 = vadd.f32 %v1813_v30, %v1643_v47 }
 0x2a8   :  { %v542_v34 = vsel %vm503_vm10, %v539_v19, %v541_v31 }
 0x2a9   :  { %v444_v35 = vrot.slane %v1817_v33, 6  ;;  %527 = vrot.lane.b32.xlu2 %v1817_v33, %s1492_s18  ;;  %549 = vrot.lane.b32.xlu0 %v542_v34, %s1493_s23 }
 0x2ab   :  { %v445_v37 = vsel %vm153_vm1, %v442_v23, %v444_v35  ;;  %v452_v40 = vsel %vm153_vm1, %v444_v35, 0.0 }
 0x2ac   :  { %v519_v39 = vmul.f32 %v510_v36, %v445_v37  ;;  %v520_v43 = vmul.f32 %v509_v32, %v452_v40 }
 0x2ad   :  { %v471_v18 = vpop.permute.xlu1 %470 }
 0x2ae   :  { %v543_v42 = vrot.slane %v519_v39, 4  ;;  %v545_v44 = vrot.slane %v520_v43, 4  ;;  %v480_v10 = vmul.f32 %v471_v18, %v1810_v26 }
 0x2b0   :  { %v544_v47 = vsel %vm503_vm10, %v541_v31, %v543_v42  ;;  %v546_v45 = vsel %vm503_vm10, %v543_v42, %v545_v44 }
 0x2b1   :  { %551 = vrot.lane.b32.xlu0 %v544_v47, %s1493_s23 }
 0x2b5   :  { %v476_v28 = vpop.permute.xlu1 %475 }
 0x2b6   :  { %v481_v16 = vmul.f32 %v476_v28, %v445_v37 }
 0x2b9   :  { %553 = vrot.lane.b32.xlu0 %v546_v45, %s1493_s23 }
 0x2d3   :  { %v522_v62 = vpop.permute.xlu2 %521 }
 0x2d4   :  { %v559_v63 = vsel %vm210_vm3, %v478_v38, %v522_v62 }
 0x2f3   :  { %v524_v1 = vpop.permute.xlu2 %523 }
 0x2f4   :  { %v560_v4 = vsel %vm210_vm3, %v479_v3, %v524_v1 }
 0x2fb   :  { %v526_v9 = vpop.permute.xlu2 %525 }
 0x2fc   :  { %v561_v11 = vsel %vm210_vm3, %v480_v10, %v526_v9 }
 0x303   :  { %v528_v13 = vpop.permute.xlu2 %527 }
 0x304   :  { %v562_v17 = vsel %vm210_vm3, %v481_v16, %v528_v13 }
 0x313   :  { %v548_v0 = vpop.permute.xlu0 %547 }
 0x314   :  { %v563_v56 = vsel %vm215_vm4, %v559_v63, %v548_v0 }
 0x315   :  { %1305 = vmatmul.msk.f32.vlgmr.msra.gmra.mxu2 %vm236_vm5, %v563_v56 }
 0x31b   :  { %v550_v5 = vpop.permute.xlu0 %549 }
 0x31c   :  { %v564_v7 = vsel %vm215_vm4, %v560_v4, %v550_v5 }
 0x31d   :  { %1306 = vmatmul.msk.f32.gmra.mxu2 %vm236_vm5, %v564_v7 }
 0x323   :  { %v552_v12 = vpop.permute.xlu0 %551 }
 0x324   :  { %v565_v14 = vsel %vm215_vm4, %v561_v11, %v552_v12 }
 0x325   :  { %1307 = vmatmul.msk.f32.gmra.mxu2 %vm236_vm5, %v565_v14  ;;  %v1326_v14 = vld [vmem:[%s2132_s11 + $0x100] sm:$0xff] }
 0x32b   :  { %v554_v19 = vpop.permute.xlu0 %553 }
 0x32c   :  { %v566_v21 = vsel %vm215_vm4, %v562_v17, %v554_v19 }
 0x32d   :  { %1308 = vmatmul.msk.f32.gmra.mxu2 %vm236_vm5, %v566_v21 }
 0x398   :  { %v614_v23 = vpop.f32.mrf.mxu2 }
 0x399   :  { %v1885_v25 = vadd.f32 %v1383_v22, %v614_v23 }
 0x39b   :  { %v1309_v26 = vmul.f32 -1.442695, %v1885_v25 }
 0x39d   :  { %1413 = vpow2.f32 %v1309_v26 }
 0x3a0   :  { %v617_v27 = vpop.f32.mrf.mxu2 }
 0x3a1   :  { %v1888_v29 = vadd.f32 %v1383_v22, %v617_v27  ;;  %v1329_v27 = vld [vmem:[%s2132_s11 + $0x118] sm:$0xff] }
 0x3a3   :  { %v1414_v24 = vpop.eup %1413  ;;  %v1310_v31 = vmul.f32 -1.442695, %v1888_v29 }
 0x3a4   :  { %v642_v32 = vadd.f32 1.0, %v1414_v24  ;;  %v1327_v24 = vld [vmem:[%s2132_s11 + $0x108] sm:$0xff] }
 0x3a5   :  { %1415 = vpow2.f32 %v1310_v31 }
 0x3a6   :  { %1417 = vrcp.f32 %v642_v32  ;;  %v657_v44 = vand.u32 2147483648, %v642_v32  ;;  %v655_v49 = vand.u32 2147483647, %v642_v32  ;;  %vm651_vm11 = vweird.f32 %v642_v32 }
 0x3a8   :  { %v620_v34 = vpop.f32.mrf.mxu2  ;;  %v658_v55 = vor.u32 1.1754944e-38, %v657_v44  ;;  %vm656_vm13 = vcmp.eq.f32.partialorder %v655_v49, 8.507059e+37  ;;  %v1314_v44 = vld [vmem:[%s2126_s5 + $0x28] sm:$0xff] }
 0x3a9   :  { %v1891_v35 = vadd.f32 %v1383_v22, %v620_v34 }
 0x3ab   :  { %v1416_v36 = vpop.eup %1415  ;;  %v1311_v37 = vmul.f32 -1.442695, %v1891_v35 }
 0x3ac   :  { %v1418_v39 = vpop.eup %1417  ;;  %v643_v40 = vadd.f32 1.0, %v1416_v36  ;;  %v1322_v36 = vld [vmem:[%s2132_s11 + $0xc0] sm:$0xff] }
 0x3ad   :  { %1419 = vpow2.f32 %v1311_v37  ;;  %v647_v42 = vmul.f32 %v1418_v39, %v642_v32  ;;  %vm652_vm1 = vweird.f32 %v1418_v39  ;;  %v1328_v37 = vld [vmem:[%s2132_s11 + $0x110] sm:$0xff] }
 0x3ae   :  { %1421 = vrcp.f32 %v643_v40  ;;  %vm653_vm12 = vmor %vm651_vm11, %vm652_vm1  ;;  %v672_v61 = vand.u32 2147483648, %v643_v40  ;;  %v670_v38 = vand.u32 2147483647, %v643_v40  ;;  %vm666_vm15 = vweird.f32 %v643_v40 }
 0x3af   :  { %v648_v47 = vsub.f32 1.0, %v647_v42  ;;  %v1325_v42 = vld [vmem:[%s2132_s11 + $0xd8] sm:$0xff] }
 0x3b0   :  { %v623_v43 = vpop.f32.mrf.mxu2  ;;  %v673_v56 = vor.u32 1.1754944e-38, %v672_v61  ;;  %vm671_vm2 = vcmp.eq.f32.partialorder %v670_v38, 8.507059e+37 }
 0x3b1   :  { %v1894_v45 = vadd.f32 %v1383_v22, %v623_v43  ;;  %v649_v48 = vmul.f32 %v1418_v39, %v648_v47  ;;  %v1316_v47 = vld [vmem:[%s2126_s5 + $0x38] sm:$0xff]  ;;  %v1315_v43 = vld [vmem:[%s2126_s5 + $0x30] sm:$0xff] }
 0x3b2   :  { %760 = vmatpush.msra.mxu3 %v1316_v47 }
 0x3b3   :  { %v1420_v50 = vpop.eup %1419  ;;  %v1312_v51 = vmul.f32 -1.442695, %v1894_v45  ;;  %v650_v52 = vadd.f32 %v1418_v39, %v649_v48  ;;  %v1313_v48 = vld [vmem:[%s2126_s5 + $0x20] sm:$0xff] }
 0x3b4   :  { %v1422_v53 = vpop.eup %1421  ;;  %v644_v54 = vadd.f32 1.0, %v1420_v50  ;;  %761 = vmatpush.msra.mxu3 %v1315_v43 }
 0x3b5   :  { %1423 = vpow2.f32 %v1312_v51  ;;  %v654_v57 = vsel %vm653_vm12, %v1418_v39, %v650_v52  ;;  %v662_v58 = vmul.f32 %v1422_v53, %v643_v40  ;;  %vm667_vm14 = vweird.f32 %v1422_v53  ;;  %v1323_v39 = vld [vmem:[%s2132_s11 + $0xc8] sm:$0xff]  ;;  %v1324_v40 = vld [vmem:[%s2132_s11 + $0xd0] sm:$0xff] }
 0x3b6   :  { %1425 = vrcp.f32 %v644_v54  ;;  %v659_v59 = vsel %vm656_vm13, %v658_v55, %v654_v57  ;;  %vm668_vm0 = vmor %vm666_vm15, %vm667_vm14  ;;  %v687_v18 = vand.u32 2147483648, %v644_v54  ;;  %v685_v10 = vand.u32 2147483647, %v644_v54  ;;  %762 = vmatpush.msra.mxu3 %v1314_v44 }
 0x3b7   :  { %710 = vrot.lane.b32.xlu1 %v659_v59, %s1494_s26  ;;  %v663_v60 = vsub.f32 1.0, %v662_v58  ;;  %vm681_vm7 = vweird.f32 %v644_v54 }
 0x3b8   :  { %v688_v28 = vor.u32 1.1754944e-38, %v687_v18  ;;  %vm686_vm9 = vcmp.eq.f32.partialorder %v685_v10, 8.507059e+37  ;;  %763 = vmatpush.msra.mxu3 %v1313_v48 }
 0x3b9   :  { %v664_v62 = vmul.f32 %v1422_v53, %v663_v60 }
 0x3bb   :  { %v1424_v63 = vpop.eup %1423  ;;  %v665_v0 = vadd.f32 %v1422_v53, %v664_v62 }
 0x3bc   :  { %v1426_v41 = vpop.eup %1425  ;;  %v645_v1 = vadd.f32 1.0, %v1424_v63 }
 0x3bd   :  { %v669_v3 = vsel %vm668_vm0, %v1422_v53, %v665_v0  ;;  %v677_v4 = vmul.f32 %v1426_v41, %v644_v54  ;;  %vm682_vm6 = vweird.f32 %v1426_v41  ;;  %v1341_v0 = vld [vmem:[%s2124_s3 + $0x118] sm:$0xff] }
 0x3be   :  { %1427 = vrcp.f32 %v645_v1  ;;  %v674_v5 = vsel %vm671_vm2, %v673_v56, %v669_v3  ;;  %vm683_vm8 = vmor %vm681_vm7, %vm682_vm6  ;;  %v702_v21 = vand.u32 2147483648, %v645_v1  ;;  %v700_v23 = vand.u32 2147483647, %v645_v1  ;;  %931 = vmatpush.msrb.mxu1 %v1341_v0 }
 0x3bf   :  { %712 = vrot.lane.b32.xlu2 %v674_v5, %s1494_s26  ;;  %v678_v7 = vsub.f32 1.0, %v677_v4  ;;  %vm696_vm11 = vweird.f32 %v645_v1  ;;  %1429 = vtanh.f32 %v1885_v25  ;;  %v1338_v4 = vld [vmem:[%s2124_s3 + $0x100] sm:$0xff] }
 0x3c0   :  { %v703_v31 = vor.u32 1.1754944e-38, %v702_v21  ;;  %vm701_vm13 = vcmp.eq.f32.partialorder %v700_v23, 8.507059e+37  ;;  %1431 = vtanh.f32 %v1888_v29  ;;  %v1384_v29 = vld [vmem:[%s2127_s6 + $0x1] ss:$0 sm:$0xff] }
 0x3c1   :  { %v679_v9 = vmul.f32 %v1426_v41, %v678_v7  ;;  %1433 = vtanh.f32 %v1891_v35 }
 0x3c2   :  { %1435 = vtanh.f32 %v1894_v45 }
 0x3c3   :  { %v680_v11 = vadd.f32 %v1426_v41, %v679_v9  ;;  %v1337_v9 = vld [vmem:[%s2124_s3 + $0xf8] sm:$0xff] }
 0x3c4   :  { %v1428_v12 = vpop.eup %1427 }
 0x3c5   :  { %v684_v13 = vsel %vm683_vm8, %v1426_v41, %v680_v11  ;;  %v692_v16 = vmul.f32 %v1428_v12, %v645_v1  ;;  %vm697_vm1 = vweird.f32 %v1428_v12  ;;  %v1430_v49 = vpop.eup %1429  ;;  %v1340_v41 = vld [vmem:[%s2124_s3 + $0x110] sm:$0xff] }
 0x3c6   :  { %v689_v17 = vsel %vm686_vm9, %v688_v28, %v684_v13  ;;  %vm698_vm12 = vmor %vm696_vm11, %vm697_vm1  ;;  %v1432_v53 = vpop.eup %1431  ;;  %932 = vmatpush.msrb.mxu1 %v1340_v41  ;;  %v1385_v41 = vld [vmem:[%s2125_s4 + $0x2] ss:$0 sm:$0xff] }
 0x3c7   :  { %839 = vperm.xlu2 %1378, %v1326_v14   ;;  %714 = vrot.lane.b32.xlu0 %v689_v17, %s1494_s26  ;;  %v693_v19 = vsub.f32 1.0, %v692_v16  ;;  %v1434_v55 = vpop.eup %1433 }
 0x3c8   :  { %v1436_v25 = vpop.eup %1435 }
 0x3c9   :  { %v694_v22 = vmul.f32 %v1428_v12, %v693_v19 }
 0x3cb   :  { %v695_v26 = vadd.f32 %v1428_v12, %v694_v22 }
 0x3cd   :  { %v699_v32 = vsel %vm698_vm12, %v1428_v12, %v695_v26 }
 0x3ce   :  { %v704_v34 = vsel %vm701_vm13, %v703_v31, %v699_v32  ;;  %v1334_v31 = vld [vmem:[%s2124_s3 + $0xe0] sm:$0xff]  ;;  %v1333_v32 = vld [vmem:[%s2124_s3 + $0xd8] sm:$0xff] }
 0x3cf   :  { %854 = vperm.xlu2 %1378, %v1329_v27   ;;  %844 = vperm.xlu0 %1376, %v1327_v24   ;;  %v1336_v24 = vld [vmem:[%s2124_s3 + $0xf0] sm:$0xff] }
 0x3d0   :  { %716 = vrot.lane.b32.xlu1 %v704_v34, %s1494_s26  ;;  %v1332_v34 = vld [vmem:[%s2124_s3 + $0xd0] sm:$0xff] }
 0x3d7   :  { %810 = vperm.xlu0 %1376, %v1322_v36   ;;  %v1331_v36 = vld [vmem:[%s2124_s3 + $0xc8] sm:$0xff] }
 0x3d8   :  { %849 = vperm.xlu1 %1377, %v1328_v37   ;;  %v1330_v37 = vld [vmem:[%s2124_s3 + $0xc0] sm:$0xff] }
 0x3df   :  { %815 = vperm.xlu0 %1376, %v1323_v39  }
 0x3e7   :  { %820 = vperm.xlu0 %1376, %v1324_v40  }
 0x3ef   :  { %825 = vperm.xlu0 %1376, %v1325_v42  }
 0x419   :  { %v713_v52 = vpop.permute.xlu2 %712 }
 0x41a   :  { %v723_v54 = vmul.f32 %v1432_v53, %v713_v52 }
 0x421   :  { %v840_v3 = vpop.permute.xlu2 %839 }
 0x429   :  { %v711_v50 = vpop.permute.xlu1 %710  ;;  %v855_v26 = vpop.permute.xlu2 %854 }
 0x42a   :  { %v722_v51 = vmul.f32 %v1430_v49, %v711_v50 }
 0x42c   :  { %1318 = vmatmul.msk.f32.vlgmr.msra.gmra.mxu3 %vm210_vm3, %v722_v51 }
 0x434   :  { %1319 = vmatmul.msk.f32.gmra.mxu3 %vm210_vm3, %v723_v54 }
 0x439   :  { %v715_v57 = vpop.permute.xlu0 %714 }
 0x43a   :  { %v724_v58 = vmul.f32 %v1434_v55, %v715_v57 }
 0x43c   :  { %1320 = vmatmul.msk.f32.gmra.mxu3 %vm210_vm3, %v724_v58 }
 0x441   :  { %v845_v12 = vpop.permute.xlu0 %844 }
 0x442   :  { %v717_v59 = vpop.permute.xlu1 %716 }
 0x443   :  { %v725_v60 = vmul.f32 %v1436_v25, %v717_v59 }
 0x445   :  { %1321 = vmatmul.msk.f32.gmra.mxu3 %vm210_vm3, %v725_v60 }
 0x449   :  { %v811_v39 = vpop.permute.xlu0 %810 }
 0x451   :  { %v816_v49 = vpop.permute.xlu0 %815 }
 0x459   :  { %v821_v55 = vpop.permute.xlu0 %820 }
 0x4af   :  { %v765_v61 = vpop.f32.mrf.mxu3 }
 0x4b0   :  { %v1948_v35 = vadd.f32 %v1384_v29, %v765_v61 }
 0x4b2   :  { %v777_v62 = vadd.f32 %v1948_v35, %v1774_v2  ;;  %v1339_v2 = vld [vmem:[%s2124_s3 + $0x108] sm:$0xff] }
 0x4b3   :  { %933 = vmatpush.msrb.mxu1 %v1339_v2 }
 0x4b4   :  { %861 = vrot.lane.b32.xlu1 %v777_v62, %s1492_s18  ;;  %v789_v1 = vrot.slane %v777_v62, 4 }
 0x4b5   :  { %934 = vmatpush.msrb.mxu1 %v1338_v4 }
 0x4b6   :  { %v801_v40 = vsel %vm503_vm10, 0.0, %v789_v1 }
 0x4b7   :  { %v768_v45 = vpop.f32.mrf.mxu3  ;;  %935 = vmatpush.msrb.mxu1 %v1337_v9  ;;  %v828_v47 = vmul.f32 %v811_v39, %v801_v40 }
 0x4b8   :  { %v1953_v38 = vadd.f32 %v1384_v29, %v768_v45 }
 0x4b9   :  { %936 = vmatpush.msrb.mxu1 %v1336_v24 }
 0x4ba   :  { %v778_v63 = vadd.f32 %v1953_v38, %v1783_v8 }
 0x4bc   :  { %v790_v56 = vrot.slane %v778_v63, 4  ;;  %863 = vrot.lane.b32.xlu1 %v778_v63, %s1492_s18 }
 0x4be   :  { %v791_v8 = vsel %vm503_vm10, %v789_v1, %v790_v56 }
 0x4bf   :  { %v771_v5 = vpop.f32.mrf.mxu3  ;;  %v857_v7 = vmul.f32 %v840_v3, %v791_v8  ;;  %v829_v51 = vmul.f32 %v816_v49, %v791_v8 }
 0x4c0   :  { %v1971_v18 = vadd.f32 %v1384_v29, %v771_v5 }
 0x4c1   :  { %877 = vrot.lane.b32.xlu2 %v857_v7, %s1493_s23 }
 0x4c2   :  { %v779_v10 = vadd.f32 %v1971_v18, %v1801_v20  ;;  %v850_v20 = vpop.permute.xlu1 %849 }
 0x4c4   :  { %v792_v11 = vrot.slane %v779_v10, 4  ;;  %865 = vrot.lane.b32.xlu1 %v779_v10, %s1492_s18 }
 0x4c6   :  { %v793_v14 = vsel %vm503_vm10, %v790_v56, %v792_v11 }
 0x4c7   :  { %v858_v28 = vmul.f32 %v845_v12, %v793_v14  ;;  %v830_v57 = vmul.f32 %v821_v55, %v793_v14 }
 0x4c8   :  { %v774_v13 = vpop.f32.mrf.mxu3 }
 0x4c9   :  { %v1981_v16 = vadd.f32 %v1384_v29, %v774_v13  ;;  %879 = vrot.lane.b32.xlu2 %v858_v28, %s1493_s23  ;;  %v826_v29 = vpop.permute.xlu0 %825 }
 0x4cb   :  { %v780_v17 = vadd.f32 %v1981_v16, %v1817_v33  ;;  %v1335_v33 = vld [vmem:[%s2124_s3 + $0xe8] sm:$0xff] }
 0x4cc   :  { %937 = vmatpush.msrb.mxu1 %v1335_v33 }
 0x4cd   :  { %v794_v19 = vrot.slane %v780_v17, 4  ;;  %867 = vrot.lane.b32.xlu1 %v780_v17, %s1492_s18 }
 0x4ce   :  { %938 = vmatpush.msrb.mxu1 %v1334_v31 }
 0x4cf   :  { %v795_v21 = vsel %vm503_vm10, %v792_v11, %v794_v19  ;;  %v802_v23 = vsel %vm503_vm10, %v794_v19, 0.0 }
 0x4d0   :  { %v859_v22 = vmul.f32 %v850_v20, %v795_v21  ;;  %v860_v27 = vmul.f32 %v855_v26, %v802_v23  ;;  %939 = vmatpush.msrb.mxu1 %v1333_v32  ;;  %v831_v61 = vmul.f32 %v826_v29, %v795_v21 }
 0x4d2   :  { %881 = vrot.lane.b32.xlu2 %v859_v22, %s1493_s23  ;;  %940 = vmatpush.msrb.mxu1 %v1332_v34 }
 0x4d4   :  { %941 = vmatpush.msrb.mxu1 %v1331_v36 }
 0x4d6   :  { %942 = vmatpush.msrb.mxu1 %v1330_v37 }
 0x4da   :  { %883 = vrot.lane.b32.xlu2 %v860_v27, %s1493_s23 }
 0x51b   :  { %v878_v42 = vpop.permute.xlu2 %877 }
 0x523   :  { %v880_v50 = vpop.permute.xlu2 %879 }
 0x526   :  { %v862_v43 = vpop.permute.xlu1 %861 }
 0x527   :  { %v889_v44 = vsel %vm210_vm3, %v828_v47, %v862_v43 }
 0x528   :  { %v893_v48 = vsel %vm215_vm4, %v889_v44, %v878_v42 }
 0x529   :  { %1343 = vmatmul.msk.f32.vlgmr.msrb.gmra.mxu1 %vm236_vm5, %v893_v48 }
 0x52c   :  { %v882_v58 = vpop.permute.xlu2 %881 }
 0x52e   :  { %v864_v52 = vpop.permute.xlu1 %863 }
 0x52f   :  { %v890_v53 = vsel %vm210_vm3, %v829_v51, %v864_v52 }
 0x530   :  { %v894_v54 = vsel %vm215_vm4, %v890_v53, %v880_v50 }
 0x531   :  { %1344 = vmatmul.msk.f32.gmra.mxu1 %vm236_vm5, %v894_v54 }
 0x534   :  { %v884_v45 = vpop.permute.xlu2 %883 }
 0x536   :  { %v866_v25 = vpop.permute.xlu1 %865 }
 0x537   :  { %v891_v59 = vsel %vm210_vm3, %v830_v57, %v866_v25 }
 0x538   :  { %v895_v60 = vsel %vm215_vm4, %v891_v59, %v882_v58 }
 0x539   :  { %1345 = vmatmul.msk.f32.gmra.mxu1 %vm236_vm5, %v895_v60 }
 0x53f   :  { %v868_v62 = vpop.permute.xlu1 %867 }
 0x540   :  { %v892_v63 = vsel %vm210_vm3, %v831_v61, %v868_v62 }
 0x541   :  { %v896_v0 = vsel %vm215_vm4, %v892_v63, %v884_v45 }
 0x542   :  { %1346 = vmatmul.msk.f32.gmra.mxu1 %vm236_vm5, %v896_v0 }
 0x5a6   :  { %v944_v1 = vpop.f32.mrf.mxu1 }
 0x5a7   :  { %v2028_v56 = vadd.f32 %v1385_v41, %v944_v1 }
 0x5a9   :  { %v1347_v2 = vmul.f32 -1.442695, %v2028_v56 }
 0x5ab   :  { %1437 = vpow2.f32 %v1347_v2 }
 0x5ae   :  { %v947_v3 = vpop.f32.mrf.mxu1 }
 0x5af   :  { %v2031_v8 = vadd.f32 %v1385_v41, %v947_v3 }
 0x5b1   :  { %v1438_v4 = vpop.eup %1437  ;;  %v1348_v5 = vmul.f32 -1.442695, %v2031_v8 }
 0x5b2   :  { %v972_v7 = vadd.f32 1.0, %v1438_v4 }
 0x5b3   :  { %1439 = vpow2.f32 %v1348_v5  ;;  %v1354_v5 = vld [vmem:[%s2126_s5 + $0x58] sm:$0xff] }
 0x5b4   :  { %1441 = vrcp.f32 %v972_v7  ;;  %v987_v19 = vand.u32 2147483648, %v972_v7  ;;  %v985_v22 = vand.u32 2147483647, %v972_v7  ;;  %vm981_vm5 = vweird.f32 %v972_v7  ;;  %1090 = vmatpush.msrb.mxu3 %v1354_v5  ;;  %v1388_v5 = vld [vmem:[%s2131_s10] ss:$0 sm:$0xff]  ;;  %s1259_s10 = sshll.u32 %s2134_s13, 4  ;;  %s1260_s10 = int_to_ptr.hbm [resolvable:$true] %s1259_s10 }
 0x5b6   :  { %v950_v9 = vpop.f32.mrf.mxu1  ;;  %v988_v32 = vor.u32 1.1754944e-38, %v987_v19  ;;  %vm986_vm14 = vcmp.eq.f32.partialorder %v985_v22, 8.507059e+37 }
 0x5b7   :  { %v2034_v10 = vadd.f32 %v1385_v41, %v950_v9  ;;  %v1352_v9 = vld [vmem:[%s2126_s5 + $0x48] sm:$0xff] }
 0x5b9   :  { %v1440_v11 = vpop.eup %1439  ;;  %v1349_v12 = vmul.f32 -1.442695, %v2034_v10 }
 0x5ba   :  { %v1442_v14 = vpop.eup %1441  ;;  %v973_v28 = vadd.f32 1.0, %v1440_v11  ;;  %v1351_v11 = vld [vmem:[%s2126_s5 + $0x40] sm:$0xff] }
 0x5bb   :  { %1443 = vpow2.f32 %v1349_v12  ;;  %v977_v13 = vmul.f32 %v1442_v14, %v972_v7  ;;  %vm982_vm4 = vweird.f32 %v1442_v14  ;;  %v1353_v7 = vld [vmem:[%s2126_s5 + $0x50] sm:$0xff] }
 0x5bc   :  { %1445 = vrcp.f32 %v973_v28  ;;  %vm983_vm10 = vmor %vm981_vm5, %vm982_vm4  ;;  %v1002_v40 = vand.u32 2147483648, %v973_v28  ;;  %v1000_v47 = vand.u32 2147483647, %v973_v28  ;;  %vm996_vm0 = vweird.f32 %v973_v28  ;;  %1091 = vmatpush.msrb.mxu3 %v1353_v7 }
 0x5bd   :  { %v978_v17 = vsub.f32 1.0, %v977_v13 }
 0x5be   :  { %v1003_v48 = vor.u32 1.1754944e-38, %v1002_v40  ;;  %vm1001_vm6 = vcmp.eq.f32.partialorder %v1000_v47, 8.507059e+37  ;;  %1092 = vmatpush.msrb.mxu3 %v1352_v9 }
 0x5bf   :  { %v953_v20 = vpop.f32.mrf.mxu1  ;;  %v979_v21 = vmul.f32 %v1442_v14, %v978_v17 }
 0x5c0   :  { %v2037_v23 = vadd.f32 %v1385_v41, %v953_v20  ;;  %1093 = vmatpush.msrb.mxu3 %v1351_v11 }
 0x5c1   :  { %v1444_v26 = vpop.eup %1443  ;;  %v980_v27 = vadd.f32 %v1442_v14, %v979_v21 }
 0x5c2   :  { %v1446_v24 = vpop.eup %1445  ;;  %v974_v33 = vadd.f32 1.0, %v1444_v26  ;;  %v1350_v31 = vmul.f32 -1.442695, %v2037_v23 }
 0x5c3   :  { %v984_v34 = vsel %vm983_vm10, %v1442_v14, %v980_v27  ;;  %v992_v36 = vmul.f32 %v1446_v24, %v973_v28  ;;  %vm997_vm15 = vweird.f32 %v1446_v24 }
 0x5c4   :  { %1447 = vrcp.f32 %v974_v33  ;;  %v989_v37 = vsel %vm986_vm14, %v988_v32, %v984_v34  ;;  %vm998_vm2 = vmor %vm996_vm0, %vm997_vm15  ;;  %v1017_v55 = vand.u32 2147483648, %v974_v33  ;;  %v1015_v58 = vand.u32 2147483647, %v974_v33 }
 0x5c5   :  { %1449 = vpow2.f32 %v1350_v31  ;;  %1040 = vrot.lane.b32.xlu0 %v989_v37, %s1494_s26  ;;  %v993_v39 = vsub.f32 1.0, %v992_v36  ;;  %vm1011_vm8 = vweird.f32 %v974_v33  ;;  %vm1250_vm14 = vcmask 58368  }
 0x5c6   :  { %v1018_v59 = vor.u32 1.1754944e-38, %v1017_v55  ;;  %vm1016_vm1 = vcmp.eq.f32.partialorder %v1015_v58, 8.507059e+37 }
 0x5c7   :  { %v994_v42 = vmul.f32 %v1446_v24, %v993_v39 }
 0x5c9   :  { %v995_v43 = vadd.f32 %v1446_v24, %v994_v42  ;;  %v783_v42 = vadd.f32 %v1971_v18, %v1797_v15  ;;  %v1117_v15 = vld [vmem:[%s2128_s7 + $0x10] sm:$0xff]  ;;  %v1116_v18 = vld [vmem:[%s2128_s7 + $0x8] sm:$0xff] }
 0x5ca   :  { %v1448_v44 = vpop.eup %1447 }
 0x5cb   :  { %v1450_v49 = vpop.eup %1449  ;;  %v999_v50 = vsel %vm998_vm2, %v1446_v24, %v995_v43  ;;  %v1007_v51 = vmul.f32 %v1448_v44, %v974_v33  ;;  %vm1012_vm7 = vweird.f32 %v1448_v44 }
 0x5cc   :  { %v975_v52 = vadd.f32 1.0, %v1450_v49  ;;  %v1004_v53 = vsel %vm1001_vm6, %v1003_v48, %v999_v50  ;;  %vm1013_vm9 = vmor %vm1011_vm8, %vm1012_vm7  ;;  %v1118_v49 = vld [vmem:[%s2128_s7 + $0x18] sm:$0xff] }
 0x5cd   :  { %1042 = vrot.lane.b32.xlu1 %v1004_v53, %s1494_s26  ;;  %v1008_v54 = vsub.f32 1.0, %v1007_v51  ;;  %1155 = vmatpush.msrb.mxu0 %v1118_v49 }
 0x5ce   :  { %1451 = vrcp.f32 %v975_v52  ;;  %v1032_v63 = vand.u32 2147483648, %v975_v52  ;;  %v1030_v41 = vand.u32 2147483647, %v975_v52  ;;  %vm1026_vm12 = vweird.f32 %v975_v52  ;;  %1367 = vmatpush.msra.mxu1 %v1118_v49 }
 0x5cf   :  { %v1009_v57 = vmul.f32 %v1448_v44, %v1008_v54  ;;  %1453 = vtanh.f32 %v2028_v56  ;;  %1156 = vmatpush.msrb.mxu0 %v1117_v15 }
 0x5d0   :  { %v1033_v2 = vor.u32 1.1754944e-38, %v1032_v63  ;;  %vm1031_vm4 = vcmp.eq.f32.partialorder %v1030_v41, 8.507059e+37  ;;  %1455 = vtanh.f32 %v2031_v8  ;;  %v1386_v8 = vld [vmem:[%s2127_s6 + $0x2] ss:$0 sm:$0xff]  ;;  %1368 = vmatpush.msra.mxu1 %v1117_v15  ;;  %v1203_v41 = vld [vmem:[%s2130_s9 + $0x18] sm:$0xff] }
 0x5d1   :  { %v1010_v25 = vadd.f32 %v1448_v44, %v1009_v57  ;;  %1457 = vtanh.f32 %v2034_v10  ;;  %v781_v10 = vadd.f32 %v1948_v35, %v1770_v46  ;;  %1157 = vmatpush.msrb.mxu0 %v1116_v18  ;;  %v1387_v57 = vld [vmem:[%s2129_s8] ss:$0 sm:$0xff] }
 0x5d2   :  { %1459 = vtanh.f32 %v2037_v23  ;;  %v782_v23 = vadd.f32 %v1953_v38, %v1779_v6  ;;  %1369 = vmatpush.msra.mxu1 %v1116_v18 }
 0x5d3   :  { %v1014_v60 = vsel %vm1013_vm9, %v1448_v44, %v1010_v25  ;;  %v784_v44 = vadd.f32 %v1981_v16, %v1813_v30  ;;  %v1115_v30 = vld [vmem:[%s2128_s7] sm:$0xff] }
 0x5d4   :  { %v1452_v29 = vpop.eup %1451  ;;  %v1019_v61 = vsel %vm1016_vm1, %v1018_v59, %v1014_v60  ;;  %1158 = vmatpush.msrb.mxu0 %v1115_v30  ;;  %1370 = vmatpush.msra.mxu1 %v1115_v30 }
 0x5d5   :  { %1044 = vrot.lane.b32.xlu2 %v1019_v61, %s1494_s26  ;;  %v1022_v62 = vmul.f32 %v1452_v29, %v975_v52  ;;  %vm1027_vm11 = vweird.f32 %v1452_v29  ;;  %v1454_v12 = vpop.eup %1453 }
 0x5d6   :  { %vm1028_vm13 = vmor %vm1026_vm12, %vm1027_vm11  ;;  %v1456_v13 = vpop.eup %1455 }
 0x5d7   :  { %v1023_v45 = vsub.f32 1.0, %v1022_v62  ;;  %v1458_v21 = vpop.eup %1457 }
 0x5d8   :  { %v1460_v56 = vpop.eup %1459 }
 0x5d9   :  { %v1024_v0 = vmul.f32 %v1452_v29, %v1023_v45 }
 0x5db   :  { %v1025_v1 = vadd.f32 %v1452_v29, %v1024_v0  ;;  %v1176_v0 = vld [vmem:[%s2133_s12] sm:$0x3] }
 0x5dd   :  { %v1029_v3 = vsel %vm1028_vm13, %v1452_v29, %v1025_v1  ;;  %v1202_v1 = vld [vmem:[%s2130_s9 + $0x10] sm:$0xff] }
 0x5de   :  { %v1034_v4 = vsel %vm1031_vm4, %v1033_v2, %v1029_v3  ;;  %v1201_v2 = vld [vmem:[%s2130_s9 + $0x8] sm:$0xff]  ;;  %v1200_v3 = vld [vmem:[%s2130_s9] sm:$0xff]  ;;  %s1495_s9 = smov [#allocation2]  }
 0x5df   :  { %1046 = vrot.lane.b32.xlu0 %v1034_v4, %s1494_s26  ;;  %s1257_s27 = sshll.u32 %s1495_s9, 4  ;;  %s1258_s27 = int_to_ptr.vmem [resolvable:$true] %s1257_s27 }
 0x62f   :  { %v1045_v20 = vpop.permute.xlu2 %1044 }
 0x630   :  { %v1054_v22 = vmul.f32 %v1458_v21, %v1045_v20 }
 0x637   :  { %v1041_v14 = vpop.permute.xlu0 %1040 }
 0x638   :  { %v1052_v28 = vmul.f32 %v1454_v12, %v1041_v14 }
 0x63a   :  { %1356 = vmatmul.msk.f32.vlgmr.msrb.gmra.mxu3 %vm210_vm3, %v1052_v28 }
 0x63f   :  { %v1043_v17 = vpop.permute.xlu1 %1042 }
 0x640   :  { %v1053_v19 = vmul.f32 %v1456_v13, %v1043_v17 }
 0x642   :  { %1357 = vmatmul.msk.f32.gmra.mxu3 %vm210_vm3, %v1053_v19 }
 0x64a   :  { %1358 = vmatmul.msk.f32.gmra.mxu3 %vm210_vm3, %v1054_v22 }
 0x651   :  { %v1047_v26 = vpop.permute.xlu0 %1046 }
 0x652   :  { %v1055_v27 = vmul.f32 %v1460_v56, %v1047_v26 }
 0x654   :  { %1359 = vmatmul.msk.f32.gmra.mxu3 %vm210_vm3, %v1055_v27 }
 0x6bd   :  { %v1095_v24 = vpop.f32.mrf.mxu3 }
 0x6be   :  { %v1096_v33 = vadd.f32 %v1386_v8, %v1095_v24 }
 0x6c0   :  { %v1107_v31 = vadd.f32 %v1096_v33, %v781_v10 }
 0x6c2   :  { %v1111_v32 = vmax.f32 %v1107_v31, 0.0 }
 0x6c4   :  { %1127 = vrot.lane.b32.xlu1 %v1111_v32, %s1494_s26 }
 0x6c5   :  { %v1098_v34 = vpop.f32.mrf.mxu3 }
 0x6c6   :  { %v1099_v36 = vadd.f32 %v1386_v8, %v1098_v34 }
 0x6c8   :  { %v1108_v37 = vadd.f32 %v1099_v36, %v782_v23 }
 0x6ca   :  { %v1112_v39 = vmax.f32 %v1108_v37, 0.0 }
 0x6cc   :  { %1129 = vrot.lane.b32.xlu2 %v1112_v39, %s1494_s26 }
 0x6cd   :  { %v1101_v40 = vpop.f32.mrf.mxu3 }
 0x6ce   :  { %v1102_v47 = vadd.f32 %v1386_v8, %v1101_v40 }
 0x6d0   :  { %v1109_v46 = vadd.f32 %v1102_v47, %v783_v42 }
 0x6d2   :  { %v1113_v35 = vmax.f32 %v1109_v46, 0.0 }
 0x6d4   :  { %1131 = vrot.lane.b32.xlu1 %v1113_v35, %s1494_s26 }
 0x6d7   :  { %v1104_v43 = vpop.f32.mrf.mxu3 }
 0x6d8   :  { %v1105_v48 = vadd.f32 %v1386_v8, %v1104_v43 }
 0x6da   :  { %v1110_v6 = vadd.f32 %v1105_v48, %v784_v44 }
 0x6dc   :  { %v1114_v38 = vmax.f32 %v1110_v6, 0.0 }
 0x6de   :  { %1133 = vrot.lane.b32.xlu0 %v1114_v38, %s1494_s26 }
 0x726   :  { %v1130_v50 = vpop.permute.xlu2 %1129 }
 0x736   :  { %v1128_v16 = vpop.permute.xlu1 %1127 }
 0x737   :  { %1360 = vmatmul.msk.f32.vlgmr.msrb.gmra.mxu0 %vm210_vm3, %v1128_v16 }
 0x73f   :  { %1361 = vmatmul.msk.f32.gmra.mxu0 %vm210_vm3, %v1130_v50 }
 0x746   :  { %v1132_v51 = vpop.permute.xlu1 %1131 }
 0x747   :  { %1362 = vmatmul.msk.f32.gmra.mxu0 %vm210_vm3, %v1132_v51 }
 0x750   :  { %v1134_v52 = vpop.permute.xlu0 %1133 }
 0x751   :  { %1363 = vmatmul.msk.f32.vlgmr.msra.gmra.mxu1 %vm210_vm3, %v1134_v52 }
 0x7b4   :  { %v1160_v53 = vpop.f32.mrf.mxu0 }
 0x7b5   :  { %v1161_v61 = vadd.f32 %v1387_v57, %v1160_v53 }
 0x7b7   :  { %v1172_v63 = vmax.f32 %v1161_v61, 0.0 }
 0x7bc   :  { %v1163_v54 = vpop.f32.mrf.mxu0 }
 0x7bd   :  { %v1164_v60 = vadd.f32 %v1387_v57, %v1163_v54 }
 0x7bf   :  { %v1173_v45 = vmax.f32 %v1164_v60, 0.0 }
 0x7c4   :  { %v1166_v55 = vpop.f32.mrf.mxu0 }
 0x7c5   :  { %v1167_v25 = vadd.f32 %v1387_v57, %v1166_v55 }
 0x7c7   :  { %v1174_v62 = vmax.f32 %v1167_v25, 0.0 }
 0x7ce   :  { %v1169_v58 = vpop.f32.mrf.mxu1 }
 0x7cf   :  { %v1170_v59 = vadd.f32 %v1387_v57, %v1169_v58 }
 0x7d1   :  { %v1175_v29 = vmax.f32 %v1170_v59, 0.0 }
 0x7d3   :  { %1192 = vmatpush.msrb.mxu2 %v1175_v29 }
 0x7d5   :  { %1193 = vmatpush.msrb.mxu2 %v1174_v62 }
 0x7d7   :  { %1194 = vmatpush.msrb.mxu2 %v1173_v45 }
 0x7d9   :  { %1195 = vmatpush.msrb.mxu2 %v1172_v63 }
 0x7da   :  { %1364 = vmatmul.msk.f32.vlgmr.msrb.gmra.mxu2 %vm210_vm3, %v1176_v0 }
 0x7db   :  { %1223 = vmatpush.msra.mxu2 %v1203_v41 }
 0x7dd   :  { %1224 = vmatpush.msra.mxu2 %v1202_v1 }
 0x7df   :  { %1225 = vmatpush.msra.mxu2 %v1201_v2 }
 0x7e1   :  { %1226 = vmatpush.msra.mxu2 %v1200_v3 }
 0x85d   :  { %v1197_v4 = vpop.f32.mrf.mxu2 }
 0x85e   :  { %1365 = vmatmul.msk.f32.vlgmr.msra.gmra.mxu2 %vm210_vm3, %v1197_v4 }
 0x8e1   :  { %v1228_v7 = vpop.f32.mrf.mxu2 }
 0x8e2   :  { %v1229_v9 = vadd.f32 %v1388_v5, %v1228_v7 }
 0x8e4   :  { %v1366_v11 = vmul.f32 -1.442695, %v1229_v9 }
 0x8e6   :  { %1461 = vpow2.f32 %v1366_v11 }
 0x8ec   :  { %v1462_v12 = vpop.eup %1461 }
 0x8ed   :  { %v1234_v14 = vadd.f32 1.0, %v1462_v12 }
 0x8ef   :  { %1463 = vrcp.f32 %v1234_v14  ;;  %v1246_v19 = vand.u32 2147483648, %v1234_v14  ;;  %v1244_v21 = vand.u32 2147483647, %v1234_v14  ;;  %vm1240_vm3 = vweird.f32 %v1234_v14 }
 0x8f1   :  { %v1247_v56 = vor.u32 1.1754944e-38, %v1246_v19  ;;  %vm1245_vm15 = vcmp.eq.f32.partialorder %v1244_v21, 8.507059e+37 }
 0x8f5   :  { %v1464_v28 = vpop.eup %1463 }
 0x8f6   :  { %v1236_v13 = vmul.f32 %v1464_v28, %v1234_v14  ;;  %vm1241_vm5 = vweird.f32 %v1464_v28 }
 0x8f7   :  { %vm1242_vm10 = vmor %vm1240_vm3, %vm1241_vm5 }
 0x8f8   :  { %v1237_v17 = vsub.f32 1.0, %v1236_v13 }
 0x8fa   :  { %v1238_v20 = vmul.f32 %v1464_v28, %v1237_v17 }
 0x8fc   :  { %v1239_v22 = vadd.f32 %v1464_v28, %v1238_v20 }
 0x8fe   :  { %v1243_v26 = vsel %vm1242_vm10, %v1464_v28, %v1239_v22 }
 0x8ff   :  { %v1248_v27 = vsel %vm1245_vm15, %v1247_v56, %v1243_v26 }
 0x900   :  { %1251 = vst.msk [vmem:[#allocation2] sm:$0x3] %vm1250_vm14, %v1248_v27 }
 0x901   :  { %1262 = dma.vmem_to_hbm [thread:$0]  %s1258_s27, 32, %s1260_s10, [#allocation3]  }
 0x902   :  { %1489 = dma.done.wait [#allocation3], 32  }
 0x903   :  { %1490 = vsyncadd [#allocation3], 4294967264 }
 0x904   :  { %1267 = vsyncpa [#allocation3], 1 }

// kernel: tpu_custom_call.1
= control target key start
LH: loop header
LB: loop body
LE: loop exit
PB: predicated region body
PF: predicated region fallthrough
CT: control target
= control target key end

     0   :  { %v1491_v3 = vmov 0   ;;  %s2121_s0 = inlined_call_operand.vmem [shape: f32[1,32,1], index: 0, kind: input, shape index: {}]   ;;  %s2122_s1 = inlined_call_operand.vmem [shape: f32[1,32], index: 1, kind: input, shape index: {}]   ;;  %s2123_s2 = inlined_call_operand.vmem [shape: f32[1,32], index: 2, kind: input, shape index: {}]   ;;  %s2124_s3 = inlined_call_operand.vmem [shape: f32[3,96,64], index: 3, kind: input, shape index: {}]   ;;  %s2125_s4 = inlined_call_operand.vmem [shape: f32[3,1,64], index: 4, kind: input, shape index: {}]   ;;  %s2126_s5 = inlined_call_operand.vmem [shape: f32[3,32,64], index: 5, kind: input, shape index: {}]   ;;  %s2127_s6 = inlined_call_operand.vmem [shape: f32[3,1,64], index: 6, kind: input, shape index: {}]   ;;  %s2128_s7 = inlined_call_operand.vmem [shape: f32[32,32], index: 7, kind: input, shape index: {}]   ;;  %s2129_s8 = inlined_call_operand.vmem [shape: f32[1,32], index: 8, kind: input, shape index: {}]   ;;  %s2130_s9 = inlined_call_operand.vmem [shape: f32[32,8], index: 9, kind: input, shape index: {}]   ;;  %s2131_s10 = inlined_call_operand.vmem [shape: f32[1,8], index: 10, kind: input, shape index: {}]   ;;  %s2132_s11 = inlined_call_operand.vmem [shape: f32[3,3,32,1], index: 11, kind: input, shape index: {}]   ;;  %s2133_s12 = inlined_call_operand.vmem [shape: f32[2,32], index: 12, kind: input, shape index: {}]   ;;  %s2134_s13 = inlined_call_operand.hbm [shape: f32[1,2,8], index: 13, kind: output, shape index: {}]  }
   0x1   :  { %v1268_v0 = vld [vmem:[%s2132_s11 + $0x40] sm:$0xff]  ;;  %v47_v1 = vld [vmem:[%s2121_s0 + $0x10] sm:$0xff]  ;;  %1378 = vset.pattern.permute.xlu2 %v1491_v3  ;;  %1377 = vset.pattern.permute.xlu1 %v1491_v3  ;;  %v1269_v4 = vld [vmem:[%s2132_s11 + $0x48] sm:$0xff] }
   0x2   :  { %v45_v2 = vld [vmem:[%s2121_s0] sm:$0xff]  ;;  %1376 = vset.pattern.permute.xlu0 %v1491_v3  ;;  %139 = vperm.xlu1 %1377, %v1268_v0  }
   0x3   :  { %62 = vperm.xlu2 %1378, %v47_v1   ;;  %52 = vperm.xlu0 %1376, %v45_v2  }
   0x4   :  { %18 = vsyncpa [#allocation3], 0  ;;  %v1270_v5 = vld [vmem:[%s2132_s11 + $0x50] sm:$0xff]  ;;  %v46_v6 = vld [vmem:[%s2121_s0 + $0x8] sm:$0xff]  ;;  %s1492_s18 = smov 32   ;;  %vm89_vm0 = vcmask 1040384  }
   0x5   :  { %v1271_v7 = vld [vmem:[%s2132_s11 + $0x58] sm:$0xff]  ;;  %v104_v8 = vld [vmem:[%s2132_s11] sm:$0xff]  ;;  %v105_v10 = vld [vmem:[%s2132_s11 + $0x8] sm:$0xff]  ;;  %vm153_vm1 = vcmask 1041408   ;;  %vm188_vm2 = vcmask 1045504   ;;  %s1493_s23 = smov 64  }
   0x6   :  { %v48_v9 = vld [vmem:[%s2121_s0 + $0x18] sm:$0xff]  ;;  %v106_v11 = vld [vmem:[%s2132_s11 + $0x10] sm:$0xff]  ;;  %v1379_v13 = vld [vmem:[%s2122_s1] ss:$0 sm:$0xff]  ;;  %vm210_vm3 = vcmask 261120   ;;  %vm215_vm4 = vcmask 523264  }
   0x7   :  { %v107_v12 = vld [vmem:[%s2132_s11 + $0x18] sm:$0xff]  ;;  %v1380_v14 = vld [vmem:[%s2123_s2] ss:$0 sm:$0xff]  ;;  %v230_v33 = vld [vmem:[%s2124_s3 + $0x50] sm:$0xff]  ;;  %vm236_vm5 = vcmask 785408   ;;  %s1494_s26 = smov 96  }
   0x8   :  { %v231_v32 = vld [vmem:[%s2124_s3 + $0x58] sm:$0xff]  ;;  %v229_v39 = vld [vmem:[%s2124_s3 + $0x48] sm:$0xff]  ;;  %v228_v0 = vld [vmem:[%s2124_s3 + $0x40] sm:$0xff] }
   0x9   :  { %253 = vmatpush.msra.mxu0 %v231_v32  ;;  %v227_v1 = vld [vmem:[%s2124_s3 + $0x38] sm:$0xff]  ;;  %v226_v2 = vld [vmem:[%s2124_s3 + $0x30] sm:$0xff]  ;;  %v225_v3 = vld [vmem:[%s2124_s3 + $0x28] sm:$0xff] }
   0xa   :  { %143 = vperm.xlu1 %1377, %v1269_v4   ;;  %v224_v4 = vld [vmem:[%s2124_s3 + $0x20] sm:$0xff] }
   0xb   :  { %147 = vperm.xlu2 %1378, %v1270_v5   ;;  %57 = vperm.xlu0 %1376, %v46_v6   ;;  %v223_v5 = vld [vmem:[%s2124_s3 + $0x18] sm:$0xff]  ;;  %v222_v6 = vld [vmem:[%s2124_s3 + $0x10] sm:$0xff] }
   0xc   :  { %254 = vmatpush.msra.mxu0 %v230_v33 }
   0xe   :  { %255 = vmatpush.msra.mxu0 %v229_v39 }
  0x10   :  { %256 = vmatpush.msra.mxu0 %v228_v0 }
  0x12   :  { %151 = vperm.xlu1 %1377, %v1271_v7   ;;  %257 = vmatpush.msra.mxu0 %v227_v1  ;;  %v221_v7 = vld [vmem:[%s2124_s3 + $0x8] sm:$0xff] }
  0x13   :  { %110 = vperm.xlu2 %1378, %v104_v8   ;;  %67 = vperm.xlu0 %1376, %v48_v9   ;;  %v220_v8 = vld [vmem:[%s2124_s3] sm:$0xff] }
  0x14   :  { %258 = vmatpush.msra.mxu0 %v226_v2 }
  0x16   :  { %259 = vmatpush.msra.mxu0 %v225_v3 }
  0x18   :  { %260 = vmatpush.msra.mxu0 %v224_v4 }
  0x1a   :  { %261 = vmatpush.msra.mxu0 %v223_v5 }
  0x1b   :  { %115 = vperm.xlu2 %1378, %v105_v10  }
  0x1c   :  { %262 = vmatpush.msra.mxu0 %v222_v6 }
  0x1e   :  { %263 = vmatpush.msra.mxu0 %v221_v7 }
  0x20   :  { %264 = vmatpush.msra.mxu0 %v220_v8 }
  0x23   :  { %120 = vperm.xlu2 %1378, %v106_v11  }
  0x2b   :  { %125 = vperm.xlu2 %1378, %v107_v12  }
  0x5d   :  { %v63_v19 = vpop.permute.xlu2 %62 }
  0x5e   :  { %v75_v20 = vmul.f32 %v1379_v13, %v63_v19 }
  0x60   :  { %v1613_v24 = vadd.f32 %v1380_v14, %v75_v20 }
  0x62   :  { %v93_v30 = vrot.slane %v1613_v24, 7 }
  0x65   :  { %v148_v34 = vpop.permute.xlu2 %147 }
  0x66   :  { %v157_v36 = vrot.slane %v148_v34, 6 }
  0x6d   :  { %v111_v9 = vpop.permute.xlu2 %110 }
  0x74   :  { %v140_v15 = vpop.permute.xlu1 %139 }
  0x75   :  { %v53_v16 = vpop.permute.xlu0 %52  ;;  %v154_v26 = vrot.slane %v140_v15, 6 }
  0x76   :  { %v73_v17 = vmul.f32 %v1379_v13, %v53_v16 }
  0x78   :  { %v1608_v18 = vadd.f32 %v1380_v14, %v73_v17 }
  0x7a   :  { %171 = vrot.lane.b32.xlu0 %v1608_v18, %s1492_s18  ;;  %v90_v21 = vrot.slane %v1608_v18, 7 }
  0x7c   :  { %v144_v22 = vpop.permute.xlu1 %143  ;;  %v1618_v29 = vsel %vm89_vm0, 0.0, %v90_v21 }
  0x7d   :  { %v58_v23 = vpop.permute.xlu0 %57  ;;  %v155_v27 = vrot.slane %v144_v22, 6  ;;  %v166_v35 = vmul.f32 %v154_v26, %v1618_v29  ;;  %v128_v11 = vmul.f32 %v111_v9, %v1618_v29 }
  0x7e   :  { %v74_v25 = vmul.f32 %v1379_v13, %v58_v23 }
  0x7f   :  { %v156_v37 = vsel %vm153_vm1, %v154_v26, %v155_v27  ;;  %v189_v44 = vrot.slane %v166_v35, 2  ;;  %v158_v46 = vsel %vm153_vm1, %v155_v27, %v157_v36 }
  0x80   :  { %v1615_v28 = vadd.f32 %v1380_v14, %v74_v25 }
  0x82   :  { %v91_v31 = vrot.slane %v1615_v28, 7  ;;  %173 = vrot.lane.b32.xlu0 %v1615_v28, %s1492_s18 }
  0x84   :  { %v1633_v38 = vsel %vm89_vm0, %v90_v21, %v91_v31  ;;  %v1640_v43 = vsel %vm89_vm0, %v91_v31, %v93_v30  ;;  %v152_v48 = vpop.permute.xlu1 %151 }
  0x85   :  { %v68_v40 = vpop.permute.xlu0 %67  ;;  %v167_v41 = vmul.f32 %v156_v37, %v1633_v38  ;;  %v168_v50 = vmul.f32 %v158_v46, %v1640_v43  ;;  %v159_v52 = vrot.slane %v152_v48, 6 }
  0x86   :  { %v76_v42 = vmul.f32 %v1379_v13, %v68_v40 }
  0x87   :  { %v190_v45 = vrot.slane %v167_v41, 2  ;;  %v192_v53 = vrot.slane %v168_v50, 2  ;;  %v160_v55 = vsel %vm153_vm1, %v157_v36, %v159_v52  ;;  %v1381_v36 = vld [vmem:[%s2125_s4] ss:$0 sm:$0xff] }
  0x88   :  { %v1643_v47 = vadd.f32 %v1380_v14, %v76_v42  ;;  %v116_v14 = vpop.permute.xlu2 %115 }
  0x89   :  { %v191_v49 = vsel %vm188_vm2, %v189_v44, %v190_v45  ;;  %v193_v56 = vsel %vm188_vm2, %v190_v45, %v192_v53  ;;  %v129_v17 = vmul.f32 %v116_v14, %v1633_v38 }
  0x8a   :  { %v95_v51 = vrot.slane %v1643_v47, 7  ;;  %175 = vrot.lane.b32.xlu0 %v1613_v24, %s1492_s18  ;;  %198 = vrot.lane.b32.xlu1 %v191_v49, %s1493_s23 }
  0x8c   :  { %v96_v54 = vsel %vm89_vm0, %v93_v30, %v95_v51  ;;  %v103_v59 = vsel %vm89_vm0, %v95_v51, 0.0 }
  0x8d   :  { %v169_v57 = vmul.f32 %v160_v55, %v96_v54  ;;  %v170_v61 = vmul.f32 %v159_v52, %v103_v59 }
  0x8f   :  { %v194_v58 = vrot.slane %v169_v57, 2  ;;  %v196_v62 = vrot.slane %v170_v61, 2 }
  0x90   :  { %v121_v22 = vpop.permute.xlu2 %120 }
  0x91   :  { %v195_v60 = vsel %vm188_vm2, %v192_v53, %v194_v58  ;;  %v197_v63 = vsel %vm188_vm2, %v194_v58, %v196_v62  ;;  %v130_v25 = vmul.f32 %v121_v22, %v1640_v43 }
  0x92   :  { %200 = vrot.lane.b32.xlu1 %v193_v56, %s1493_s23  ;;  %177 = vrot.lane.b32.xlu0 %v1643_v47, %s1492_s18 }
  0x98   :  { %v126_v30 = vpop.permute.xlu2 %125 }
  0x99   :  { %v131_v32 = vmul.f32 %v126_v30, %v96_v54 }
  0x9a   :  { %202 = vrot.lane.b32.xlu1 %v195_v60, %s1493_s23 }
  0xa2   :  { %204 = vrot.lane.b32.xlu1 %v197_v63, %s1493_s23 }
  0xec   :  { %v172_v10 = vpop.permute.xlu0 %171 }
  0xed   :  { %v211_v12 = vsel %vm210_vm3, %v128_v11, %v172_v10 }
  0xf4   :  { %v174_v15 = vpop.permute.xlu0 %173 }
  0xf5   :  { %v212_v19 = vsel %vm210_vm3, %v129_v17, %v174_v15 }
  0xfc   :  { %v199_v13 = vpop.permute.xlu1 %198  ;;  %v176_v23 = vpop.permute.xlu0 %175 }
  0xfd   :  { %v216_v16 = vsel %vm215_vm4, %v211_v12, %v199_v13  ;;  %v213_v26 = vsel %vm210_vm3, %v130_v25, %v176_v23  ;;  %v1288_v23 = vld [vmem:[%s2132_s11 + $0xa0] sm:$0xff] }
  0xfe   :  { %1272 = vmatmul.msk.f32.vlgmr.msra.gmra.mxu0 %vm236_vm5, %v216_v16 }
 0x104   :  { %v201_v20 = vpop.permute.xlu1 %200  ;;  %v178_v31 = vpop.permute.xlu0 %177 }
 0x105   :  { %v217_v21 = vsel %vm215_vm4, %v212_v19, %v201_v20  ;;  %v214_v33 = vsel %vm210_vm3, %v131_v32, %v178_v31 }
 0x106   :  { %1273 = vmatmul.msk.f32.gmra.mxu0 %vm236_vm5, %v217_v21 }
 0x10c   :  { %v203_v27 = vpop.permute.xlu1 %202 }
 0x10d   :  { %v218_v29 = vsel %vm215_vm4, %v213_v26, %v203_v27 }
 0x10e   :  { %1274 = vmatmul.msk.f32.gmra.mxu0 %vm236_vm5, %v218_v29 }
 0x114   :  { %v205_v34 = vpop.permute.xlu1 %204 }
 0x115   :  { %v219_v35 = vsel %vm215_vm4, %v214_v33, %v205_v34 }
 0x116   :  { %1275 = vmatmul.msk.f32.gmra.mxu0 %vm236_vm5, %v219_v35  ;;  %v1291_v35 = vld [vmem:[%s2132_s11 + $0xb8] sm:$0xff] }
 0x17b   :  { %v266_v37 = vpop.f32.mrf.mxu0 }
 0x17c   :  { %v1707_v38 = vadd.f32 %v1381_v36, %v266_v37 }
 0x17e   :  { %v1276_v39 = vmul.f32 -1.442695, %v1707_v38 }
 0x180   :  { %1389 = vpow2.f32 %v1276_v39 }
 0x183   :  { %v269_v40 = vpop.f32.mrf.mxu0 }
 0x184   :  { %v1710_v41 = vadd.f32 %v1381_v36, %v269_v40 }
 0x186   :  { %v1390_v42 = vpop.eup %1389  ;;  %v1277_v43 = vmul.f32 -1.442695, %v1710_v41 }
 0x187   :  { %v294_v44 = vadd.f32 1.0, %v1390_v42  ;;  %v381_v42 = vld [vmem:[%s2126_s5 + $0x18] sm:$0xff] }
 0x188   :  { %1391 = vpow2.f32 %v1277_v43  ;;  %v380_v43 = vld [vmem:[%s2126_s5 + $0x10] sm:$0xff]  ;;  %410 = vmatpush.msra.mxu1 %v381_v42 }
 0x189   :  { %1393 = vrcp.f32 %v294_v44  ;;  %v309_v55 = vand.u32 2147483648, %v294_v44  ;;  %v307_v58 = vand.u32 2147483647, %v294_v44  ;;  %vm303_vm7 = vweird.f32 %v294_v44 }
 0x18a   :  { %411 = vmatpush.msra.mxu1 %v380_v43 }
 0x18b   :  { %v272_v45 = vpop.f32.mrf.mxu0  ;;  %v310_v0 = vor.u32 1.1754944e-38, %v309_v55  ;;  %vm308_vm9 = vcmp.eq.f32.partialorder %v307_v58, 8.507059e+37 }
 0x18c   :  { %v1713_v46 = vadd.f32 %v1381_v36, %v272_v45  ;;  %v1284_v45 = vld [vmem:[%s2132_s11 + $0x60] sm:$0xff] }
 0x18e   :  { %v1392_v48 = vpop.eup %1391  ;;  %v1278_v49 = vmul.f32 -1.442695, %v1713_v46 }
 0x18f   :  { %v1394_v50 = vpop.eup %1393  ;;  %v295_v51 = vadd.f32 1.0, %v1392_v48  ;;  %v1290_v48 = vld [vmem:[%s2132_s11 + $0xb0] sm:$0xff] }
 0x190   :  { %1395 = vpow2.f32 %v1278_v49  ;;  %v299_v52 = vmul.f32 %v1394_v50, %v294_v44  ;;  %vm304_vm6 = vweird.f32 %v1394_v50  ;;  %v379_v44 = vld [vmem:[%s2126_s5 + $0x8] sm:$0xff] }
 0x191   :  { %1397 = vrcp.f32 %v295_v51  ;;  %vm305_vm8 = vmor %vm303_vm7, %vm304_vm6  ;;  %v324_v5 = vand.u32 2147483648, %v295_v51  ;;  %v322_v7 = vand.u32 2147483647, %v295_v51  ;;  %vm318_vm11 = vweird.f32 %v295_v51  ;;  %412 = vmatpush.msra.mxu1 %v379_v44  ;;  %v1285_v49 = vld [vmem:[%s2132_s11 + $0x68] sm:$0xff] }
 0x192   :  { %v300_v53 = vsub.f32 1.0, %v299_v52  ;;  %v378_v52 = vld [vmem:[%s2126_s5] sm:$0xff] }
 0x193   :  { %v275_v54 = vpop.f32.mrf.mxu0  ;;  %v325_v12 = vor.u32 1.1754944e-38, %v324_v5  ;;  %vm323_vm13 = vcmp.eq.f32.partialorder %v322_v7, 8.507059e+37  ;;  %413 = vmatpush.msra.mxu1 %v378_v52  ;;  %v1299_v52 = vld [vmem:[%s2124_s3 + $0x98] sm:$0xff] }
 0x194   :  { %v1716_v56 = vadd.f32 %v1381_v36, %v275_v54  ;;  %v301_v57 = vmul.f32 %v1394_v50, %v300_v53  ;;  %v1289_v36 = vld [vmem:[%s2132_s11 + $0xa8] sm:$0xff] }
 0x196   :  { %v1396_v59 = vpop.eup %1395  ;;  %v1279_v60 = vmul.f32 -1.442695, %v1716_v56  ;;  %v302_v61 = vadd.f32 %v1394_v50, %v301_v57 }
 0x197   :  { %v1398_v62 = vpop.eup %1397  ;;  %v296_v63 = vadd.f32 1.0, %v1396_v59 }
 0x198   :  { %1399 = vpow2.f32 %v1279_v60  ;;  %v306_v1 = vsel %vm305_vm8, %v1394_v50, %v302_v61  ;;  %v314_v2 = vmul.f32 %v1398_v62, %v295_v51  ;;  %vm319_vm10 = vweird.f32 %v1398_v62  ;;  %v1286_v50 = vld [vmem:[%s2132_s11 + $0x70] sm:$0xff]  ;;  %v1287_v51 = vld [vmem:[%s2132_s11 + $0x78] sm:$0xff] }
 0x199   :  { %1401 = vrcp.f32 %v296_v63  ;;  %v311_v3 = vsel %vm308_vm9, %v310_v0, %v306_v1  ;;  %vm320_vm12 = vmor %vm318_vm11, %vm319_vm10  ;;  %v339_v17 = vand.u32 2147483648, %v296_v63  ;;  %v337_v20 = vand.u32 2147483647, %v296_v63 }
 0x19a   :  { %362 = vrot.lane.b32.xlu2 %v311_v3, %s1494_s26  ;;  %v315_v4 = vsub.f32 1.0, %v314_v2  ;;  %vm333_vm15 = vweird.f32 %v296_v63  ;;  %vm503_vm10 = vcmask 1043456  }
 0x19b   :  { %v340_v25 = vor.u32 1.1754944e-38, %v339_v17  ;;  %vm338_vm2 = vcmp.eq.f32.partialorder %v337_v20, 8.507059e+37 }
 0x19c   :  { %v316_v6 = vmul.f32 %v1398_v62, %v315_v4 }
 0x19e   :  { %v1400_v8 = vpop.eup %1399  ;;  %v317_v9 = vadd.f32 %v1398_v62, %v316_v6 }
 0x19f   :  { %v1402_v10 = vpop.eup %1401  ;;  %v297_v11 = vadd.f32 1.0, %v1400_v8 }
 0x1a0   :  { %v321_v13 = vsel %vm320_vm12, %v1398_v62, %v317_v9  ;;  %v329_v14 = vmul.f32 %v1402_v10, %v296_v63  ;;  %vm334_vm14 = vweird.f32 %v1402_v10 }
 0x1a1   :  { %1403 = vrcp.f32 %v297_v11  ;;  %v326_v15 = vsel %vm323_vm13, %v325_v12, %v321_v13  ;;  %vm335_vm0 = vmor %vm333_vm15, %vm334_vm14  ;;  %v354_v31 = vand.u32 2147483648, %v297_v11  ;;  %v352_v33 = vand.u32 2147483647, %v297_v11 }
 0x1a2   :  { %364 = vrot.lane.b32.xlu0 %v326_v15, %s1494_s26  ;;  %v330_v16 = vsub.f32 1.0, %v329_v14  ;;  %vm348_vm7 = vweird.f32 %v297_v11  ;;  %1405 = vtanh.f32 %v1707_v38 }
 0x1a3   :  { %v355_v37 = vor.u32 1.1754944e-38, %v354_v31  ;;  %vm353_vm9 = vcmp.eq.f32.partialorder %v352_v33, 8.507059e+37  ;;  %1407 = vtanh.f32 %v1710_v41  ;;  %v1382_v41 = vld [vmem:[%s2127_s6] ss:$0 sm:$0xff] }
 0x1a4   :  { %v331_v19 = vmul.f32 %v1402_v10, %v330_v16  ;;  %1409 = vtanh.f32 %v1713_v46 }
 0x1a5   :  { %1411 = vtanh.f32 %v1716_v56 }
 0x1a6   :  { %v332_v21 = vadd.f32 %v1402_v10, %v331_v19 }
 0x1a7   :  { %v1404_v22 = vpop.eup %1403 }
 0x1a8   :  { %v336_v26 = vsel %vm335_vm0, %v1402_v10, %v332_v21  ;;  %v344_v27 = vmul.f32 %v1404_v22, %v297_v11  ;;  %vm349_vm6 = vweird.f32 %v1404_v22  ;;  %v1406_v53 = vpop.eup %1405 }
 0x1a9   :  { %v341_v29 = vsel %vm338_vm2, %v340_v25, %v336_v26  ;;  %vm350_vm8 = vmor %vm348_vm7, %vm349_vm6  ;;  %v1408_v57 = vpop.eup %1407 }
 0x1aa   :  { %489 = vperm.xlu0 %1376, %v1288_v23   ;;  %366 = vrot.lane.b32.xlu1 %v341_v29, %s1494_s26  ;;  %v345_v30 = vsub.f32 1.0, %v344_v27  ;;  %v1410_v60 = vpop.eup %1409 }
 0x1ab   :  { %v1412_v63 = vpop.eup %1411 }
 0x1ac   :  { %v346_v32 = vmul.f32 %v1404_v22, %v345_v30 }
 0x1ae   :  { %v347_v34 = vadd.f32 %v1404_v22, %v346_v32 }
 0x1b0   :  { %v351_v39 = vsel %vm350_vm8, %v1404_v22, %v347_v34 }
 0x1b1   :  { %v356_v40 = vsel %vm353_vm9, %v355_v37, %v351_v39 }
 0x1b2   :  { %501 = vperm.xlu0 %1376, %v1291_v35   ;;  %493 = vperm.xlu1 %1377, %v1289_v36  }
 0x1b3   :  { %368 = vrot.lane.b32.xlu2 %v356_v40, %s1494_s26 }
 0x1ba   :  { %460 = vperm.xlu1 %1377, %v1284_v45  }
 0x1bb   :  { %497 = vperm.xlu2 %1378, %v1290_v48   ;;  %v1303_v48 = vld [vmem:[%s2124_s3 + $0xb8] sm:$0xff] }
 0x1bc   :  { %601 = vmatpush.msra.mxu2 %v1303_v48 }
 0x1c2   :  { %465 = vperm.xlu1 %1377, %v1285_v49   ;;  %v1302_v49 = vld [vmem:[%s2124_s3 + $0xb0] sm:$0xff] }
 0x1c3   :  { %602 = vmatpush.msra.mxu2 %v1302_v49 }
 0x1ca   :  { %470 = vperm.xlu1 %1377, %v1286_v50   ;;  %v1301_v50 = vld [vmem:[%s2124_s3 + $0xa8] sm:$0xff] }
 0x1cb   :  { %603 = vmatpush.msra.mxu2 %v1301_v50 }
 0x1d2   :  { %475 = vperm.xlu1 %1377, %v1287_v51   ;;  %v1300_v51 = vld [vmem:[%s2124_s3 + $0xa0] sm:$0xff] }
 0x1d3   :  { %604 = vmatpush.msra.mxu2 %v1300_v51 }
 0x1d5   :  { %605 = vmatpush.msra.mxu2 %v1299_v52 }
 0x1f4   :  { %v363_v54 = vpop.permute.xlu2 %362 }
 0x1f5   :  { %v374_v55 = vmul.f32 %v1406_v53, %v363_v54  ;;  %v1298_v53 = vld [vmem:[%s2124_s3 + $0x90] sm:$0xff]  ;;  %v1297_v54 = vld [vmem:[%s2124_s3 + $0x88] sm:$0xff] }
 0x1f6   :  { %606 = vmatpush.msra.mxu2 %v1298_v53 }
 0x1f7   :  { %1280 = vmatmul.msk.f32.vlgmr.msra.gmra.mxu1 %vm210_vm3, %v374_v55  ;;  %v1296_v55 = vld [vmem:[%s2124_s3 + $0x80] sm:$0xff] }
 0x1f8   :  { %607 = vmatpush.msra.mxu2 %v1297_v54 }
 0x1fa   :  { %608 = vmatpush.msra.mxu2 %v1296_v55 }
 0x20d   :  { %v369_v38 = vpop.permute.xlu2 %368 }
 0x20e   :  { %v377_v0 = vmul.f32 %v1412_v63, %v369_v38 }
 0x214   :  { %v365_v58 = vpop.permute.xlu0 %364 }
 0x215   :  { %v375_v59 = vmul.f32 %v1408_v57, %v365_v58  ;;  %v498_v16 = vpop.permute.xlu2 %497  ;;  %v1295_v57 = vld [vmem:[%s2124_s3 + $0x78] sm:$0xff]  ;;  %v1294_v58 = vld [vmem:[%s2124_s3 + $0x70] sm:$0xff] }
 0x216   :  { %v507_v22 = vrot.slane %v498_v16, 4  ;;  %609 = vmatpush.msra.mxu2 %v1295_v57 }
 0x217   :  { %1281 = vmatmul.msk.f32.gmra.mxu1 %vm210_vm3, %v375_v59  ;;  %v1293_v59 = vld [vmem:[%s2124_s3 + $0x68] sm:$0xff] }
 0x218   :  { %610 = vmatpush.msra.mxu2 %v1294_v58 }
 0x21a   :  { %611 = vmatpush.msra.mxu2 %v1293_v59 }
 0x21c   :  { %v367_v61 = vpop.permute.xlu1 %366  ;;  %v490_v5 = vpop.permute.xlu0 %489 }
 0x21d   :  { %v376_v62 = vmul.f32 %v1410_v60, %v367_v61  ;;  %v1292_v60 = vld [vmem:[%s2124_s3 + $0x60] sm:$0xff] }
 0x21e   :  { %612 = vmatpush.msra.mxu2 %v1292_v60 }
 0x21f   :  { %1282 = vmatmul.msk.f32.gmra.mxu1 %vm210_vm3, %v376_v62 }
 0x224   :  { %v494_v3 = vpop.permute.xlu1 %493  ;;  %v502_v27 = vpop.permute.xlu0 %501 }
 0x225   :  { %v505_v7 = vrot.slane %v494_v3, 4  ;;  %v509_v32 = vrot.slane %v502_v27, 4 }
 0x227   :  { %1283 = vmatmul.msk.f32.gmra.mxu1 %vm210_vm3, %v377_v0  ;;  %v508_v25 = vsel %vm503_vm10, %v505_v7, %v507_v22  ;;  %v510_v36 = vsel %vm503_vm10, %v507_v22, %v509_v32  ;;  %v1383_v22 = vld [vmem:[%s2125_s4 + $0x1] ss:$0 sm:$0xff] }
 0x22c   :  { %v461_v61 = vpop.permute.xlu1 %460 }
 0x274   :  { %v415_v1 = vpop.f32.mrf.mxu1 }
 0x275   :  { %v1770_v46 = vadd.f32 %v1382_v41, %v415_v1 }
 0x277   :  { %v1774_v2 = vadd.f32 %v1770_v46, %v1608_v18  ;;  %v504_v18 = vrot.slane %v490_v5, 4 }
 0x279   :  { %521 = vrot.lane.b32.xlu2 %v1774_v2, %s1492_s18  ;;  %v439_v56 = vrot.slane %v1774_v2, 6  ;;  %v506_v12 = vsel %vm503_vm10, %v504_v18, %v505_v7 }
 0x27b   :  { %v1786_v9 = vsel %vm153_vm1, 0.0, %v439_v56 }
 0x27c   :  { %v516_v11 = vmul.f32 %v504_v18, %v1786_v9  ;;  %v478_v38 = vmul.f32 %v461_v61, %v1786_v9 }
 0x27e   :  { %v538_v17 = vrot.slane %v516_v11, 4 }
 0x294   :  { %v418_v4 = vpop.f32.mrf.mxu1 }
 0x295   :  { %v1779_v6 = vadd.f32 %v1382_v41, %v418_v4 }
 0x297   :  { %v1783_v8 = vadd.f32 %v1779_v6, %v1615_v28 }
 0x299   :  { %v440_v10 = vrot.slane %v1783_v8, 6  ;;  %523 = vrot.lane.b32.xlu2 %v1783_v8, %s1492_s18 }
 0x29b   :  { %v1794_v13 = vsel %vm153_vm1, %v439_v56, %v440_v10 }
 0x29c   :  { %v421_v14 = vpop.f32.mrf.mxu1  ;;  %v517_v28 = vmul.f32 %v506_v12, %v1794_v13 }
 0x29d   :  { %v1797_v15 = vadd.f32 %v1382_v41, %v421_v14 }
 0x29e   :  { %v539_v19 = vrot.slane %v517_v28, 4 }
 0x29f   :  { %v1801_v20 = vadd.f32 %v1797_v15, %v1613_v24 }
 0x2a0   :  { %v540_v21 = vsel %vm503_vm10, %v538_v17, %v539_v19 }
 0x2a1   :  { %v442_v23 = vrot.slane %v1801_v20, 6  ;;  %525 = vrot.lane.b32.xlu2 %v1801_v20, %s1492_s18  ;;  %547 = vrot.lane.b32.xlu0 %v540_v21, %s1493_s23 }
 0x2a3   :  { %v1810_v26 = vsel %vm153_vm1, %v440_v10, %v442_v23 }
 0x2a4   :  { %v424_v29 = vpop.f32.mrf.mxu1  ;;  %v518_v24 = vmul.f32 %v508_v25, %v1810_v26 }
 0x2a5   :  { %v1813_v30 = vadd.f32 %v1382_v41, %v424_v29  ;;  %v466_v41 = vpop.permute.xlu1 %465 }
 0x2a6   :  { %v541_v31 = vrot.slane %v518_v24, 4  ;;  %v479_v3 = vmul.f32 %v466_v41, %v1794_v13 }
 0x2a7   :  { %v1817_v33 = vadd.f32 %v1813_v30, %v1643_v47 }
 0x2a8   :  { %v542_v34 = vsel %vm503_vm10, %v539_v19, %v541_v31 }
 0x2a9   :  { %v444_v35 = vrot.slane %v1817_v33, 6  ;;  %527 = vrot.lane.b32.xlu2 %v1817_v33, %s1492_s18  ;;  %549 = vrot.lane.b32.xlu0 %v542_v34, %s1493_s23 }
 0x2ab   :  { %v445_v37 = vsel %vm153_vm1, %v442_v23, %v444_v35  ;;  %v452_v40 = vsel %vm153_vm1, %v444_v35, 0.0 }
 0x2ac   :  { %v519_v39 = vmul.f32 %v510_v36, %v445_v37  ;;  %v520_v43 = vmul.f32 %v509_v32, %v452_v40 }
 0x2ad   :  { %v471_v18 = vpop.permute.xlu1 %470 }
 0x2ae   :  { %v543_v42 = vrot.slane %v519_v39, 4  ;;  %v545_v44 = vrot.slane %v520_v43, 4  ;;  %v480_v10 = vmul.f32 %v471_v18, %v1810_v26 }
 0x2b0   :  { %v544_v47 = vsel %vm503_vm10, %v541_v31, %v543_v42  ;;  %v546_v45 = vsel %vm503_vm10, %v543_v42, %v545_v44 }
 0x2b1   :  { %551 = vrot.lane.b32.xlu0 %v544_v47, %s1493_s23 }
 0x2b5   :  { %v476_v28 = vpop.permute.xlu1 %475 }
 0x2b6   :  { %v481_v16 = vmul.f32 %v476_v28, %v445_v37 }
 0x2b9   :  { %553 = vrot.lane.b32.xlu0 %v546_v45, %s1493_s23 }
 0x2d3   :  { %v522_v62 = vpop.permute.xlu2 %521 }
 0x2d4   :  { %v559_v63 = vsel %vm210_vm3, %v478_v38, %v522_v62 }
 0x2f3   :  { %v524_v1 = vpop.permute.xlu2 %523 }
 0x2f4   :  { %v560_v4 = vsel %vm210_vm3, %v479_v3, %v524_v1 }
 0x2fb   :  { %v526_v9 = vpop.permute.xlu2 %525 }
 0x2fc   :  { %v561_v11 = vsel %vm210_vm3, %v480_v10, %v526_v9 }
 0x303   :  { %v528_v13 = vpop.permute.xlu2 %527 }
 0x304   :  { %v562_v17 = vsel %vm210_vm3, %v481_v16, %v528_v13 }
 0x313   :  { %v548_v0 = vpop.permute.xlu0 %547 }
 0x314   :  { %v563_v56 = vsel %vm215_vm4, %v559_v63, %v548_v0 }
 0x315   :  { %1305 = vmatmul.msk.f32.vlgmr.msra.gmra.mxu2 %vm236_vm5, %v563_v56 }
 0x31b   :  { %v550_v5 = vpop.permute.xlu0 %549 }
 0x31c   :  { %v564_v7 = vsel %vm215_vm4, %v560_v4, %v550_v5 }
 0x31d   :  { %1306 = vmatmul.msk.f32.gmra.mxu2 %vm236_vm5, %v564_v7 }
 0x323   :  { %v552_v12 = vpop.permute.xlu0 %551 }
 0x324   :  { %v565_v14 = vsel %vm215_vm4, %v561_v11, %v552_v12 }
 0x325   :  { %1307 = vmatmul.msk.f32.gmra.mxu2 %vm236_vm5, %v565_v14  ;;  %v1326_v14 = vld [vmem:[%s2132_s11 + $0x100] sm:$0xff] }
 0x32b   :  { %v554_v19 = vpop.permute.xlu0 %553 }
 0x32c   :  { %v566_v21 = vsel %vm215_vm4, %v562_v17, %v554_v19 }
 0x32d   :  { %1308 = vmatmul.msk.f32.gmra.mxu2 %vm236_vm5, %v566_v21 }
 0x398   :  { %v614_v23 = vpop.f32.mrf.mxu2 }
 0x399   :  { %v1885_v25 = vadd.f32 %v1383_v22, %v614_v23 }
 0x39b   :  { %v1309_v26 = vmul.f32 -1.442695, %v1885_v25 }
 0x39d   :  { %1413 = vpow2.f32 %v1309_v26 }
 0x3a0   :  { %v617_v27 = vpop.f32.mrf.mxu2 }
 0x3a1   :  { %v1888_v29 = vadd.f32 %v1383_v22, %v617_v27  ;;  %v1329_v27 = vld [vmem:[%s2132_s11 + $0x118] sm:$0xff] }
 0x3a3   :  { %v1414_v24 = vpop.eup %1413  ;;  %v1310_v31 = vmul.f32 -1.442695, %v1888_v29 }
 0x3a4   :  { %v642_v32 = vadd.f32 1.0, %v1414_v24  ;;  %v1327_v24 = vld [vmem:[%s2132_s11 + $0x108] sm:$0xff] }
 0x3a5   :  { %1415 = vpow2.f32 %v1310_v31 }
 0x3a6   :  { %1417 = vrcp.f32 %v642_v32  ;;  %v657_v44 = vand.u32 2147483648, %v642_v32  ;;  %v655_v49 = vand.u32 2147483647, %v642_v32  ;;  %vm651_vm11 = vweird.f32 %v642_v32 }
 0x3a8   :  { %v620_v34 = vpop.f32.mrf.mxu2  ;;  %v658_v55 = vor.u32 1.1754944e-38, %v657_v44  ;;  %vm656_vm13 = vcmp.eq.f32.partialorder %v655_v49, 8.507059e+37  ;;  %v1314_v44 = vld [vmem:[%s2126_s5 + $0x28] sm:$0xff] }
 0x3a9   :  { %v1891_v35 = vadd.f32 %v1383_v22, %v620_v34 }
 0x3ab   :  { %v1416_v36 = vpop.eup %1415  ;;  %v1311_v37 = vmul.f32 -1.442695, %v1891_v35 }
 0x3ac   :  { %v1418_v39 = vpop.eup %1417  ;;  %v643_v40 = vadd.f32 1.0, %v1416_v36  ;;  %v1322_v36 = vld [vmem:[%s2132_s11 + $0xc0] sm:$0xff] }
 0x3ad   :  { %1419 = vpow2.f32 %v1311_v37  ;;  %v647_v42 = vmul.f32 %v1418_v39, %v642_v32  ;;  %vm652_vm1 = vweird.f32 %v1418_v39  ;;  %v1328_v37 = vld [vmem:[%s2132_s11 + $0x110] sm:$0xff] }
 0x3ae   :  { %1421 = vrcp.f32 %v643_v40  ;;  %vm653_vm12 = vmor %vm651_vm11, %vm652_vm1  ;;  %v672_v61 = vand.u32 2147483648, %v643_v40  ;;  %v670_v38 = vand.u32 2147483647, %v643_v40  ;;  %vm666_vm15 = vweird.f32 %v643_v40 }
 0x3af   :  { %v648_v47 = vsub.f32 1.0, %v647_v42  ;;  %v1325_v42 = vld [vmem:[%s2132_s11 + $0xd8] sm:$0xff] }
 0x3b0   :  { %v623_v43 = vpop.f32.mrf.mxu2  ;;  %v673_v56 = vor.u32 1.1754944e-38, %v672_v61  ;;  %vm671_vm2 = vcmp.eq.f32.partialorder %v670_v38, 8.507059e+37 }
 0x3b1   :  { %v1894_v45 = vadd.f32 %v1383_v22, %v623_v43  ;;  %v649_v48 = vmul.f32 %v1418_v39, %v648_v47  ;;  %v1316_v47 = vld [vmem:[%s2126_s5 + $0x38] sm:$0xff]  ;;  %v1315_v43 = vld [vmem:[%s2126_s5 + $0x30] sm:$0xff] }
 0x3b2   :  { %760 = vmatpush.msra.mxu3 %v1316_v47 }
 0x3b3   :  { %v1420_v50 = vpop.eup %1419  ;;  %v1312_v51 = vmul.f32 -1.442695, %v1894_v45  ;;  %v650_v52 = vadd.f32 %v1418_v39, %v649_v48  ;;  %v1313_v48 = vld [vmem:[%s2126_s5 + $0x20] sm:$0xff] }
 0x3b4   :  { %v1422_v53 = vpop.eup %1421  ;;  %v644_v54 = vadd.f32 1.0, %v1420_v50  ;;  %761 = vmatpush.msra.mxu3 %v1315_v43 }
 0x3b5   :  { %1423 = vpow2.f32 %v1312_v51  ;;  %v654_v57 = vsel %vm653_vm12, %v1418_v39, %v650_v52  ;;  %v662_v58 = vmul.f32 %v1422_v53, %v643_v40  ;;  %vm667_vm14 = vweird.f32 %v1422_v53  ;;  %v1323_v39 = vld [vmem:[%s2132_s11 + $0xc8] sm:$0xff]  ;;  %v1324_v40 = vld [vmem:[%s2132_s11 + $0xd0] sm:$0xff] }
 0x3b6   :  { %1425 = vrcp.f32 %v644_v54  ;;  %v659_v59 = vsel %vm656_vm13, %v658_v55, %v654_v57  ;;  %vm668_vm0 = vmor %vm666_vm15, %vm667_vm14  ;;  %v687_v18 = vand.u32 2147483648, %v644_v54  ;;  %v685_v10 = vand.u32 2147483647, %v644_v54  ;;  %762 = vmatpush.msra.mxu3 %v1314_v44 }
 0x3b7   :  { %710 = vrot.lane.b32.xlu1 %v659_v59, %s1494_s26  ;;  %v663_v60 = vsub.f32 1.0, %v662_v58  ;;  %vm681_vm7 = vweird.f32 %v644_v54 }
 0x3b8   :  { %v688_v28 = vor.u32 1.1754944e-38, %v687_v18  ;;  %vm686_vm9 = vcmp.eq.f32.partialorder %v685_v10, 8.507059e+37  ;;  %763 = vmatpush.msra.mxu3 %v1313_v48 }
 0x3b9   :  { %v664_v62 = vmul.f32 %v1422_v53, %v663_v60 }
 0x3bb   :  { %v1424_v63 = vpop.eup %1423  ;;  %v665_v0 = vadd.f32 %v1422_v53, %v664_v62 }
 0x3bc   :  { %v1426_v41 = vpop.eup %1425  ;;  %v645_v1 = vadd.f32 1.0, %v1424_v63 }
 0x3bd   :  { %v669_v3 = vsel %vm668_vm0, %v1422_v53, %v665_v0  ;;  %v677_v4 = vmul.f32 %v1426_v41, %v644_v54  ;;  %vm682_vm6 = vweird.f32 %v1426_v41  ;;  %v1341_v0 = vld [vmem:[%s2124_s3 + $0x118] sm:$0xff] }
 0x3be   :  { %1427 = vrcp.f32 %v645_v1  ;;  %v674_v5 = vsel %vm671_vm2, %v673_v56, %v669_v3  ;;  %vm683_vm8 = vmor %vm681_vm7, %vm682_vm6  ;;  %v702_v21 = vand.u32 2147483648, %v645_v1  ;;  %v700_v23 = vand.u32 2147483647, %v645_v1  ;;  %931 = vmatpush.msrb.mxu1 %v1341_v0 }
 0x3bf   :  { %712 = vrot.lane.b32.xlu2 %v674_v5, %s1494_s26  ;;  %v678_v7 = vsub.f32 1.0, %v677_v4  ;;  %vm696_vm11 = vweird.f32 %v645_v1  ;;  %1429 = vtanh.f32 %v1885_v25  ;;  %v1338_v4 = vld [vmem:[%s2124_s3 + $0x100] sm:$0xff] }
 0x3c0   :  { %v703_v31 = vor.u32 1.1754944e-38, %v702_v21  ;;  %vm701_vm13 = vcmp.eq.f32.partialorder %v700_v23, 8.507059e+37  ;;  %1431 = vtanh.f32 %v1888_v29  ;;  %v1384_v29 = vld [vmem:[%s2127_s6 + $0x1] ss:$0 sm:$0xff] }
 0x3c1   :  { %v679_v9 = vmul.f32 %v1426_v41, %v678_v7  ;;  %1433 = vtanh.f32 %v1891_v35 }
 0x3c2   :  { %1435 = vtanh.f32 %v1894_v45 }
 0x3c3   :  { %v680_v11 = vadd.f32 %v1426_v41, %v679_v9  ;;  %v1337_v9 = vld [vmem:[%s2124_s3 + $0xf8] sm:$0xff] }
 0x3c4   :  { %v1428_v12 = vpop.eup %1427 }
 0x3c5   :  { %v684_v13 = vsel %vm683_vm8, %v1426_v41, %v680_v11  ;;  %v692_v16 = vmul.f32 %v1428_v12, %v645_v1  ;;  %vm697_vm1 = vweird.f32 %v1428_v12  ;;  %v1430_v49 = vpop.eup %1429  ;;  %v1340_v41 = vld [vmem:[%s2124_s3 + $0x110] sm:$0xff] }
 0x3c6   :  { %v689_v17 = vsel %vm686_vm9, %v688_v28, %v684_v13  ;;  %vm698_vm12 = vmor %vm696_vm11, %vm697_vm1  ;;  %v1432_v53 = vpop.eup %1431  ;;  %932 = vmatpush.msrb.mxu1 %v1340_v41  ;;  %v1385_v41 = vld [vmem:[%s2125_s4 + $0x2] ss:$0 sm:$0xff] }
 0x3c7   :  { %839 = vperm.xlu2 %1378, %v1326_v14   ;;  %714 = vrot.lane.b32.xlu0 %v689_v17, %s1494_s26  ;;  %v693_v19 = vsub.f32 1.0, %v692_v16  ;;  %v1434_v55 = vpop.eup %1433 }
 0x3c8   :  { %v1436_v25 = vpop.eup %1435 }
 0x3c9   :  { %v694_v22 = vmul.f32 %v1428_v12, %v693_v19 }
 0x3cb   :  { %v695_v26 = vadd.f32 %v1428_v12, %v694_v22 }
 0x3cd   :  { %v699_v32 = vsel %vm698_vm12, %v1428_v12, %v695_v26 }
 0x3ce   :  { %v704_v34 = vsel %vm701_vm13, %v703_v31, %v699_v32  ;;  %v1334_v31 = vld [vmem:[%s2124_s3 + $0xe0] sm:$0xff]  ;;  %v1333_v32 = vld [vmem:[%s2124_s3 + $0xd8] sm:$0xff] }
 0x3cf   :  { %854 = vperm.xlu2 %1378, %v1329_v27   ;;  %844 = vperm.xlu0 %1376, %v1327_v24   ;;  %v1336_v24 = vld [vmem:[%s2124_s3 + $0xf0] sm:$0xff] }
 0x3d0   :  { %716 = vrot.lane.b32.xlu1 %v704_v34, %s1494_s26  ;;  %v1332_v34 = vld [vmem:[%s2124_s3 + $0xd0] sm:$0xff] }
 0x3d7   :  { %810 = vperm.xlu0 %1376, %v1322_v36   ;;  %v1331_v36 = vld [vmem:[%s2124_s3 + $0xc8] sm:$0xff] }
 0x3d8   :  { %849 = vperm.xlu1 %1377, %v1328_v37   ;;  %v1330_v37 = vld [vmem:[%s2124_s3 + $0xc0] sm:$0xff] }
 0x3df   :  { %815 = vperm.xlu0 %1376, %v1323_v39  }
 0x3e7   :  { %820 = vperm.xlu0 %1376, %v1324_v40  }
 0x3ef   :  { %825 = vperm.xlu0 %1376, %v1325_v42  }
 0x419   :  { %v713_v52 = vpop.permute.xlu2 %712 }
 0x41a   :  { %v723_v54 = vmul.f32 %v1432_v53, %v713_v52 }
 0x421   :  { %v840_v3 = vpop.permute.xlu2 %839 }
 0x429   :  { %v711_v50 = vpop.permute.xlu1 %710  ;;  %v855_v26 = vpop.permute.xlu2 %854 }
 0x42a   :  { %v722_v51 = vmul.f32 %v1430_v49, %v711_v50 }
 0x42c   :  { %1318 = vmatmul.msk.f32.vlgmr.msra.gmra.mxu3 %vm210_vm3, %v722_v51 }
 0x434   :  { %1319 = vmatmul.msk.f32.gmra.mxu3 %vm210_vm3, %v723_v54 }
 0x439   :  { %v715_v57 = vpop.permute.xlu0 %714 }
 0x43a   :  { %v724_v58 = vmul.f32 %v1434_v55, %v715_v57 }
 0x43c   :  { %1320 = vmatmul.msk.f32.gmra.mxu3 %vm210_vm3, %v724_v58 }
 0x441   :  { %v845_v12 = vpop.permute.xlu0 %844 }
 0x442   :  { %v717_v59 = vpop.permute.xlu1 %716 }
 0x443   :  { %v725_v60 = vmul.f32 %v1436_v25, %v717_v59 }
 0x445   :  { %1321 = vmatmul.msk.f32.gmra.mxu3 %vm210_vm3, %v725_v60 }
 0x449   :  { %v811_v39 = vpop.permute.xlu0 %810 }
 0x451   :  { %v816_v49 = vpop.permute.xlu0 %815 }
 0x459   :  { %v821_v55 = vpop.permute.xlu0 %820 }
 0x4af   :  { %v765_v61 = vpop.f32.mrf.mxu3 }
 0x4b0   :  { %v1948_v35 = vadd.f32 %v1384_v29, %v765_v61 }
 0x4b2   :  { %v777_v62 = vadd.f32 %v1948_v35, %v1774_v2  ;;  %v1339_v2 = vld [vmem:[%s2124_s3 + $0x108] sm:$0xff] }
 0x4b3   :  { %933 = vmatpush.msrb.mxu1 %v1339_v2 }
 0x4b4   :  { %861 = vrot.lane.b32.xlu1 %v777_v62, %s1492_s18  ;;  %v789_v1 = vrot.slane %v777_v62, 4 }
 0x4b5   :  { %934 = vmatpush.msrb.mxu1 %v1338_v4 }
 0x4b6   :  { %v801_v40 = vsel %vm503_vm10, 0.0, %v789_v1 }
 0x4b7   :  { %v768_v45 = vpop.f32.mrf.mxu3  ;;  %935 = vmatpush.msrb.mxu1 %v1337_v9  ;;  %v828_v47 = vmul.f32 %v811_v39, %v801_v40 }
 0x4b8   :  { %v1953_v38 = vadd.f32 %v1384_v29, %v768_v45 }
 0x4b9   :  { %936 = vmatpush.msrb.mxu1 %v1336_v24 }
 0x4ba   :  { %v778_v63 = vadd.f32 %v1953_v38, %v1783_v8 }
 0x4bc   :  { %v790_v56 = vrot.slane %v778_v63, 4  ;;  %863 = vrot.lane.b32.xlu1 %v778_v63, %s1492_s18 }
 0x4be   :  { %v791_v8 = vsel %vm503_vm10, %v789_v1, %v790_v56 }
 0x4bf   :  { %v771_v5 = vpop.f32.mrf.mxu3  ;;  %v857_v7 = vmul.f32 %v840_v3, %v791_v8  ;;  %v829_v51 = vmul.f32 %v816_v49, %v791_v8 }
 0x4c0   :  { %v1971_v18 = vadd.f32 %v1384_v29, %v771_v5 }
 0x4c1   :  { %877 = vrot.lane.b32.xlu2 %v857_v7, %s1493_s23 }
 0x4c2   :  { %v779_v10 = vadd.f32 %v1971_v18, %v1801_v20  ;;  %v850_v20 = vpop.permute.xlu1 %849 }
 0x4c4   :  { %v792_v11 = vrot.slane %v779_v10, 4  ;;  %865 = vrot.lane.b32.xlu1 %v779_v10, %s1492_s18 }
 0x4c6   :  { %v793_v14 = vsel %vm503_vm10, %v790_v56, %v792_v11 }
 0x4c7   :  { %v858_v28 = vmul.f32 %v845_v12, %v793_v14  ;;  %v830_v57 = vmul.f32 %v821_v55, %v793_v14 }
 0x4c8   :  { %v774_v13 = vpop.f32.mrf.mxu3 }
 0x4c9   :  { %v1981_v16 = vadd.f32 %v1384_v29, %v774_v13  ;;  %879 = vrot.lane.b32.xlu2 %v858_v28, %s1493_s23  ;;  %v826_v29 = vpop.permute.xlu0 %825 }
 0x4cb   :  { %v780_v17 = vadd.f32 %v1981_v16, %v1817_v33  ;;  %v1335_v33 = vld [vmem:[%s2124_s3 + $0xe8] sm:$0xff] }
 0x4cc   :  { %937 = vmatpush.msrb.mxu1 %v1335_v33 }
 0x4cd   :  { %v794_v19 = vrot.slane %v780_v17, 4  ;;  %867 = vrot.lane.b32.xlu1 %v780_v17, %s1492_s18 }
 0x4ce   :  { %938 = vmatpush.msrb.mxu1 %v1334_v31 }
 0x4cf   :  { %v795_v21 = vsel %vm503_vm10, %v792_v11, %v794_v19  ;;  %v802_v23 = vsel %vm503_vm10, %v794_v19, 0.0 }
 0x4d0   :  { %v859_v22 = vmul.f32 %v850_v20, %v795_v21  ;;  %v860_v27 = vmul.f32 %v855_v26, %v802_v23  ;;  %939 = vmatpush.msrb.mxu1 %v1333_v32  ;;  %v831_v61 = vmul.f32 %v826_v29, %v795_v21 }
 0x4d2   :  { %881 = vrot.lane.b32.xlu2 %v859_v22, %s1493_s23  ;;  %940 = vmatpush.msrb.mxu1 %v1332_v34 }
 0x4d4   :  { %941 = vmatpush.msrb.mxu1 %v1331_v36 }
 0x4d6   :  { %942 = vmatpush.msrb.mxu1 %v1330_v37 }
 0x4da   :  { %883 = vrot.lane.b32.xlu2 %v860_v27, %s1493_s23 }
 0x51b   :  { %v878_v42 = vpop.permute.xlu2 %877 }
 0x523   :  { %v880_v50 = vpop.permute.xlu2 %879 }
 0x526   :  { %v862_v43 = vpop.permute.xlu1 %861 }
 0x527   :  { %v889_v44 = vsel %vm210_vm3, %v828_v47, %v862_v43 }
 0x528   :  { %v893_v48 = vsel %vm215_vm4, %v889_v44, %v878_v42 }
 0x529   :  { %1343 = vmatmul.msk.f32.vlgmr.msrb.gmra.mxu1 %vm236_vm5, %v893_v48 }
 0x52c   :  { %v882_v58 = vpop.permute.xlu2 %881 }
 0x52e   :  { %v864_v52 = vpop.permute.xlu1 %863 }
 0x52f   :  { %v890_v53 = vsel %vm210_vm3, %v829_v51, %v864_v52 }
 0x530   :  { %v894_v54 = vsel %vm215_vm4, %v890_v53, %v880_v50 }
 0x531   :  { %1344 = vmatmul.msk.f32.gmra.mxu1 %vm236_vm5, %v894_v54 }
 0x534   :  { %v884_v45 = vpop.permute.xlu2 %883 }
 0x536   :  { %v866_v25 = vpop.permute.xlu1 %865 }
 0x537   :  { %v891_v59 = vsel %vm210_vm3, %v830_v57, %v866_v25 }
 0x538   :  { %v895_v60 = vsel %vm215_vm4, %v891_v59, %v882_v58 }
 0x539   :  { %1345 = vmatmul.msk.f32.gmra.mxu1 %vm236_vm5, %v895_v60 }
 0x53f   :  { %v868_v62 = vpop.permute.xlu1 %867 }
 0x540   :  { %v892_v63 = vsel %vm210_vm3, %v831_v61, %v868_v62 }
 0x541   :  { %v896_v0 = vsel %vm215_vm4, %v892_v63, %v884_v45 }
 0x542   :  { %1346 = vmatmul.msk.f32.gmra.mxu1 %vm236_vm5, %v896_v0 }
 0x5a6   :  { %v944_v1 = vpop.f32.mrf.mxu1 }
 0x5a7   :  { %v2028_v56 = vadd.f32 %v1385_v41, %v944_v1 }
 0x5a9   :  { %v1347_v2 = vmul.f32 -1.442695, %v2028_v56 }
 0x5ab   :  { %1437 = vpow2.f32 %v1347_v2 }
 0x5ae   :  { %v947_v3 = vpop.f32.mrf.mxu1 }
 0x5af   :  { %v2031_v8 = vadd.f32 %v1385_v41, %v947_v3 }
 0x5b1   :  { %v1438_v4 = vpop.eup %1437  ;;  %v1348_v5 = vmul.f32 -1.442695, %v2031_v8 }
 0x5b2   :  { %v972_v7 = vadd.f32 1.0, %v1438_v4 }
 0x5b3   :  { %1439 = vpow2.f32 %v1348_v5  ;;  %v1354_v5 = vld [vmem:[%s2126_s5 + $0x58] sm:$0xff] }
 0x5b4   :  { %1441 = vrcp.f32 %v972_v7  ;;  %v987_v19 = vand.u32 2147483648, %v972_v7  ;;  %v985_v22 = vand.u32 2147483647, %v972_v7  ;;  %vm981_vm5 = vweird.f32 %v972_v7  ;;  %1090 = vmatpush.msrb.mxu3 %v1354_v5  ;;  %v1388_v5 = vld [vmem:[%s2131_s10] ss:$0 sm:$0xff]  ;;  %s1259_s10 = sshll.u32 %s2134_s13, 4  ;;  %s1260_s10 = int_to_ptr.hbm [resolvable:$true] %s1259_s10 }
 0x5b6   :  { %v950_v9 = vpop.f32.mrf.mxu1  ;;  %v988_v32 = vor.u32 1.1754944e-38, %v987_v19  ;;  %vm986_vm14 = vcmp.eq.f32.partialorder %v985_v22, 8.507059e+37 }
 0x5b7   :  { %v2034_v10 = vadd.f32 %v1385_v41, %v950_v9  ;;  %v1352_v9 = vld [vmem:[%s2126_s5 + $0x48] sm:$0xff] }
 0x5b9   :  { %v1440_v11 = vpop.eup %1439  ;;  %v1349_v12 = vmul.f32 -1.442695, %v2034_v10 }
 0x5ba   :  { %v1442_v14 = vpop.eup %1441  ;;  %v973_v28 = vadd.f32 1.0, %v1440_v11  ;;  %v1351_v11 = vld [vmem:[%s2126_s5 + $0x40] sm:$0xff] }
 0x5bb   :  { %1443 = vpow2.f32 %v1349_v12  ;;  %v977_v13 = vmul.f32 %v1442_v14, %v972_v7  ;;  %vm982_vm4 = vweird.f32 %v1442_v14  ;;  %v1353_v7 = vld [vmem:[%s2126_s5 + $0x50] sm:$0xff] }
 0x5bc   :  { %1445 = vrcp.f32 %v973_v28  ;;  %vm983_vm10 = vmor %vm981_vm5, %vm982_vm4  ;;  %v1002_v40 = vand.u32 2147483648, %v973_v28  ;;  %v1000_v47 = vand.u32 2147483647, %v973_v28  ;;  %vm996_vm0 = vweird.f32 %v973_v28  ;;  %1091 = vmatpush.msrb.mxu3 %v1353_v7 }
 0x5bd   :  { %v978_v17 = vsub.f32 1.0, %v977_v13 }
 0x5be   :  { %v1003_v48 = vor.u32 1.1754944e-38, %v1002_v40  ;;  %vm1001_vm6 = vcmp.eq.f32.partialorder %v1000_v47, 8.507059e+37  ;;  %1092 = vmatpush.msrb.mxu3 %v1352_v9 }
 0x5bf   :  { %v953_v20 = vpop.f32.mrf.mxu1  ;;  %v979_v21 = vmul.f32 %v1442_v14, %v978_v17 }
 0x5c0   :  { %v2037_v23 = vadd.f32 %v1385_v41, %v953_v20  ;;  %1093 = vmatpush.msrb.mxu3 %v1351_v11 }
 0x5c1   :  { %v1444_v26 = vpop.eup %1443  ;;  %v980_v27 = vadd.f32 %v1442_v14, %v979_v21 }
 0x5c2   :  { %v1446_v24 = vpop.eup %1445  ;;  %v974_v33 = vadd.f32 1.0, %v1444_v26  ;;  %v1350_v31 = vmul.f32 -1.442695, %v2037_v23 }
 0x5c3   :  { %v984_v34 = vsel %vm983_vm10, %v1442_v14, %v980_v27  ;;  %v992_v36 = vmul.f32 %v1446_v24, %v973_v28  ;;  %vm997_vm15 = vweird.f32 %v1446_v24 }
 0x5c4   :  { %1447 = vrcp.f32 %v974_v33  ;;  %v989_v37 = vsel %vm986_vm14, %v988_v32, %v984_v34  ;;  %vm998_vm2 = vmor %vm996_vm0, %vm997_vm15  ;;  %v1017_v55 = vand.u32 2147483648, %v974_v33  ;;  %v1015_v58 = vand.u32 2147483647, %v974_v33 }
 0x5c5   :  { %1449 = vpow2.f32 %v1350_v31  ;;  %1040 = vrot.lane.b32.xlu0 %v989_v37, %s1494_s26  ;;  %v993_v39 = vsub.f32 1.0, %v992_v36  ;;  %vm1011_vm8 = vweird.f32 %v974_v33  ;;  %vm1250_vm14 = vcmask 58368  }
 0x5c6   :  { %v1018_v59 = vor.u32 1.1754944e-38, %v1017_v55  ;;  %vm1016_vm1 = vcmp.eq.f32.partialorder %v1015_v58, 8.507059e+37 }
 0x5c7   :  { %v994_v42 = vmul.f32 %v1446_v24, %v993_v39 }
 0x5c9   :  { %v995_v43 = vadd.f32 %v1446_v24, %v994_v42  ;;  %v783_v42 = vadd.f32 %v1971_v18, %v1797_v15  ;;  %v1117_v15 = vld [vmem:[%s2128_s7 + $0x10] sm:$0xff]  ;;  %v1116_v18 = vld [vmem:[%s2128_s7 + $0x8] sm:$0xff] }
 0x5ca   :  { %v1448_v44 = vpop.eup %1447 }
 0x5cb   :  { %v1450_v49 = vpop.eup %1449  ;;  %v999_v50 = vsel %vm998_vm2, %v1446_v24, %v995_v43  ;;  %v1007_v51 = vmul.f32 %v1448_v44, %v974_v33  ;;  %vm1012_vm7 = vweird.f32 %v1448_v44 }
 0x5cc   :  { %v975_v52 = vadd.f32 1.0, %v1450_v49  ;;  %v1004_v53 = vsel %vm1001_vm6, %v1003_v48, %v999_v50  ;;  %vm1013_vm9 = vmor %vm1011_vm8, %vm1012_vm7  ;;  %v1118_v49 = vld [vmem:[%s2128_s7 + $0x18] sm:$0xff] }
 0x5cd   :  { %1042 = vrot.lane.b32.xlu1 %v1004_v53, %s1494_s26  ;;  %v1008_v54 = vsub.f32 1.0, %v1007_v51  ;;  %1155 = vmatpush.msrb.mxu0 %v1118_v49 }
 0x5ce   :  { %1451 = vrcp.f32 %v975_v52  ;;  %v1032_v63 = vand.u32 2147483648, %v975_v52  ;;  %v1030_v41 = vand.u32 2147483647, %v975_v52  ;;  %vm1026_vm12 = vweird.f32 %v975_v52  ;;  %1367 = vmatpush.msra.mxu1 %v1118_v49 }
 0x5cf   :  { %v1009_v57 = vmul.f32 %v1448_v44, %v1008_v54  ;;  %1453 = vtanh.f32 %v2028_v56  ;;  %1156 = vmatpush.msrb.mxu0 %v1117_v15 }
 0x5d0   :  { %v1033_v2 = vor.u32 1.1754944e-38, %v1032_v63  ;;  %vm1031_vm4 = vcmp.eq.f32.partialorder %v1030_v41, 8.507059e+37  ;;  %1455 = vtanh.f32 %v2031_v8  ;;  %v1386_v8 = vld [vmem:[%s2127_s6 + $0x2] ss:$0 sm:$0xff]  ;;  %1368 = vmatpush.msra.mxu1 %v1117_v15  ;;  %v1203_v41 = vld [vmem:[%s2130_s9 + $0x18] sm:$0xff] }
 0x5d1   :  { %v1010_v25 = vadd.f32 %v1448_v44, %v1009_v57  ;;  %1457 = vtanh.f32 %v2034_v10  ;;  %v781_v10 = vadd.f32 %v1948_v35, %v1770_v46  ;;  %1157 = vmatpush.msrb.mxu0 %v1116_v18  ;;  %v1387_v57 = vld [vmem:[%s2129_s8] ss:$0 sm:$0xff] }
 0x5d2   :  { %1459 = vtanh.f32 %v2037_v23  ;;  %v782_v23 = vadd.f32 %v1953_v38, %v1779_v6  ;;  %1369 = vmatpush.msra.mxu1 %v1116_v18 }
 0x5d3   :  { %v1014_v60 = vsel %vm1013_vm9, %v1448_v44, %v1010_v25  ;;  %v784_v44 = vadd.f32 %v1981_v16, %v1813_v30  ;;  %v1115_v30 = vld [vmem:[%s2128_s7] sm:$0xff] }
 0x5d4   :  { %v1452_v29 = vpop.eup %1451  ;;  %v1019_v61 = vsel %vm1016_vm1, %v1018_v59, %v1014_v60  ;;  %1158 = vmatpush.msrb.mxu0 %v1115_v30  ;;  %1370 = vmatpush.msra.mxu1 %v1115_v30 }
 0x5d5   :  { %1044 = vrot.lane.b32.xlu2 %v1019_v61, %s1494_s26  ;;  %v1022_v62 = vmul.f32 %v1452_v29, %v975_v52  ;;  %vm1027_vm11 = vweird.f32 %v1452_v29  ;;  %v1454_v12 = vpop.eup %1453 }
 0x5d6   :  { %vm1028_vm13 = vmor %vm1026_vm12, %vm1027_vm11  ;;  %v1456_v13 = vpop.eup %1455 }
 0x5d7   :  { %v1023_v45 = vsub.f32 1.0, %v1022_v62  ;;  %v1458_v21 = vpop.eup %1457 }
 0x5d8   :  { %v1460_v56 = vpop.eup %1459 }
 0x5d9   :  { %v1024_v0 = vmul.f32 %v1452_v29, %v1023_v45 }
 0x5db   :  { %v1025_v1 = vadd.f32 %v1452_v29, %v1024_v0  ;;  %v1176_v0 = vld [vmem:[%s2133_s12] sm:$0x3] }
 0x5dd   :  { %v1029_v3 = vsel %vm1028_vm13, %v1452_v29, %v1025_v1  ;;  %v1202_v1 = vld [vmem:[%s2130_s9 + $0x10] sm:$0xff] }
 0x5de   :  { %v1034_v4 = vsel %vm1031_vm4, %v1033_v2, %v1029_v3  ;;  %v1201_v2 = vld [vmem:[%s2130_s9 + $0x8] sm:$0xff]  ;;  %v1200_v3 = vld [vmem:[%s2130_s9] sm:$0xff]  ;;  %s1495_s9 = smov [#allocation2]  }
 0x5df   :  { %1046 = vrot.lane.b32.xlu0 %v1034_v4, %s1494_s26  ;;  %s1257_s27 = sshll.u32 %s1495_s9, 4  ;;  %s1258_s27 = int_to_ptr.vmem [resolvable:$true] %s1257_s27 }
 0x62f   :  { %v1045_v20 = vpop.permute.xlu2 %1044 }
 0x630   :  { %v1054_v22 = vmul.f32 %v1458_v21, %v1045_v20 }
 0x637   :  { %v1041_v14 = vpop.permute.xlu0 %1040 }
 0x638   :  { %v1052_v28 = vmul.f32 %v1454_v12, %v1041_v14 }
 0x63a   :  { %1356 = vmatmul.msk.f32.vlgmr.msrb.gmra.mxu3 %vm210_vm3, %v1052_v28 }
 0x63f   :  { %v1043_v17 = vpop.permute.xlu1 %1042 }
 0x640   :  { %v1053_v19 = vmul.f32 %v1456_v13, %v1043_v17 }
 0x642   :  { %1357 = vmatmul.msk.f32.gmra.mxu3 %vm210_vm3, %v1053_v19 }
 0x64a   :  { %1358 = vmatmul.msk.f32.gmra.mxu3 %vm210_vm3, %v1054_v22 }
 0x651   :  { %v1047_v26 = vpop.permute.xlu0 %1046 }
 0x652   :  { %v1055_v27 = vmul.f32 %v1460_v56, %v1047_v26 }
 0x654   :  { %1359 = vmatmul.msk.f32.gmra.mxu3 %vm210_vm3, %v1055_v27 }
 0x6bd   :  { %v1095_v24 = vpop.f32.mrf.mxu3 }
 0x6be   :  { %v1096_v33 = vadd.f32 %v1386_v8, %v1095_v24 }
 0x6c0   :  { %v1107_v31 = vadd.f32 %v1096_v33, %v781_v10 }
 0x6c2   :  { %v1111_v32 = vmax.f32 %v1107_v31, 0.0 }
 0x6c4   :  { %1127 = vrot.lane.b32.xlu1 %v1111_v32, %s1494_s26 }
 0x6c5   :  { %v1098_v34 = vpop.f32.mrf.mxu3 }
 0x6c6   :  { %v1099_v36 = vadd.f32 %v1386_v8, %v1098_v34 }
 0x6c8   :  { %v1108_v37 = vadd.f32 %v1099_v36, %v782_v23 }
 0x6ca   :  { %v1112_v39 = vmax.f32 %v1108_v37, 0.0 }
 0x6cc   :  { %1129 = vrot.lane.b32.xlu2 %v1112_v39, %s1494_s26 }
 0x6cd   :  { %v1101_v40 = vpop.f32.mrf.mxu3 }
 0x6ce   :  { %v1102_v47 = vadd.f32 %v1386_v8, %v1101_v40 }
 0x6d0   :  { %v1109_v46 = vadd.f32 %v1102_v47, %v783_v42 }
 0x6d2   :  { %v1113_v35 = vmax.f32 %v1109_v46, 0.0 }
 0x6d4   :  { %1131 = vrot.lane.b32.xlu1 %v1113_v35, %s1494_s26 }
 0x6d7   :  { %v1104_v43 = vpop.f32.mrf.mxu3 }
 0x6d8   :  { %v1105_v48 = vadd.f32 %v1386_v8, %v1104_v43 }
 0x6da   :  { %v1110_v6 = vadd.f32 %v1105_v48, %v784_v44 }
 0x6dc   :  { %v1114_v38 = vmax.f32 %v1110_v6, 0.0 }
 0x6de   :  { %1133 = vrot.lane.b32.xlu0 %v1114_v38, %s1494_s26 }
 0x726   :  { %v1130_v50 = vpop.permute.xlu2 %1129 }
 0x736   :  { %v1128_v16 = vpop.permute.xlu1 %1127 }
 0x737   :  { %1360 = vmatmul.msk.f32.vlgmr.msrb.gmra.mxu0 %vm210_vm3, %v1128_v16 }
 0x73f   :  { %1361 = vmatmul.msk.f32.gmra.mxu0 %vm210_vm3, %v1130_v50 }
 0x746   :  { %v1132_v51 = vpop.permute.xlu1 %1131 }
 0x747   :  { %1362 = vmatmul.msk.f32.gmra.mxu0 %vm210_vm3, %v1132_v51 }
 0x750   :  { %v1134_v52 = vpop.permute.xlu0 %1133 }
 0x751   :  { %1363 = vmatmul.msk.f32.vlgmr.msra.gmra.mxu1 %vm210_vm3, %v1134_v52 }
 0x7b4   :  { %v1160_v53 = vpop.f32.mrf.mxu0 }
 0x7b5   :  { %v1161_v61 = vadd.f32 %v1387_v57, %v1160_v53 }
 0x7b7   :  { %v1172_v63 = vmax.f32 %v1161_v61, 0.0 }
 0x7bc   :  { %v1163_v54 = vpop.f32.mrf.mxu0 }
 0x7bd   :  { %v1164_v60 = vadd.f32 %v1387_v57, %v1163_v54 }
 0x7bf   :  { %v1173_v45 = vmax.f32 %v1164_v60, 0.0 }
 0x7c4   :  { %v1166_v55 = vpop.f32.mrf.mxu0 }
 0x7c5   :  { %v1167_v25 = vadd.f32 %v1387_v57, %v1166_v55 }
 0x7c7   :  { %v1174_v62 = vmax.f32 %v1167_v25, 0.0 }
 0x7ce   :  { %v1169_v58 = vpop.f32.mrf.mxu1 }
 0x7cf   :  { %v1170_v59 = vadd.f32 %v1387_v57, %v1169_v58 }
 0x7d1   :  { %v1175_v29 = vmax.f32 %v1170_v59, 0.0 }
 0x7d3   :  { %1192 = vmatpush.msrb.mxu2 %v1175_v29 }
 0x7d5   :  { %1193 = vmatpush.msrb.mxu2 %v1174_v62 }
 0x7d7   :  { %1194 = vmatpush.msrb.mxu2 %v1173_v45 }
 0x7d9   :  { %1195 = vmatpush.msrb.mxu2 %v1172_v63 }
 0x7da   :  { %1364 = vmatmul.msk.f32.vlgmr.msrb.gmra.mxu2 %vm210_vm3, %v1176_v0 }
 0x7db   :  { %1223 = vmatpush.msra.mxu2 %v1203_v41 }
 0x7dd   :  { %1224 = vmatpush.msra.mxu2 %v1202_v1 }
 0x7df   :  { %1225 = vmatpush.msra.mxu2 %v1201_v2 }
 0x7e1   :  { %1226 = vmatpush.msra.mxu2 %v1200_v3 }
 0x85d   :  { %v1197_v4 = vpop.f32.mrf.mxu2 }
 0x85e   :  { %1365 = vmatmul.msk.f32.vlgmr.msra.gmra.mxu2 %vm210_vm3, %v1197_v4 }
 0x8e1   :  { %v1228_v7 = vpop.f32.mrf.mxu2 }
 0x8e2   :  { %v1229_v9 = vadd.f32 %v1388_v5, %v1228_v7 }
 0x8e4   :  { %v1366_v11 = vmul.f32 -1.442695, %v1229_v9 }
 0x8e6   :  { %1461 = vpow2.f32 %v1366_v11 }
 0x8ec   :  { %v1462_v12 = vpop.eup %1461 }
 0x8ed   :  { %v1234_v14 = vadd.f32 1.0, %v1462_v12 }
 0x8ef   :  { %1463 = vrcp.f32 %v1234_v14  ;;  %v1246_v19 = vand.u32 2147483648, %v1234_v14  ;;  %v1244_v21 = vand.u32 2147483647, %v1234_v14  ;;  %vm1240_vm3 = vweird.f32 %v1234_v14 }
 0x8f1   :  { %v1247_v56 = vor.u32 1.1754944e-38, %v1246_v19  ;;  %vm1245_vm15 = vcmp.eq.f32.partialorder %v1244_v21, 8.507059e+37 }
 0x8f5   :  { %v1464_v28 = vpop.eup %1463 }
 0x8f6   :  { %v1236_v13 = vmul.f32 %v1464_v28, %v1234_v14  ;;  %vm1241_vm5 = vweird.f32 %v1464_v28 }
 0x8f7   :  { %vm1242_vm10 = vmor %vm1240_vm3, %vm1241_vm5 }
 0x8f8   :  { %v1237_v17 = vsub.f32 1.0, %v1236_v13 }
 0x8fa   :  { %v1238_v20 = vmul.f32 %v1464_v28, %v1237_v17 }
 0x8fc   :  { %v1239_v22 = vadd.f32 %v1464_v28, %v1238_v20 }
 0x8fe   :  { %v1243_v26 = vsel %vm1242_vm10, %v1464_v28, %v1239_v22 }
 0x8ff   :  { %v1248_v27 = vsel %vm1245_vm15, %v1247_v56, %v1243_v26 }
 0x900   :  { %1251 = vst.msk [vmem:[#allocation2] sm:$0x3] %vm1250_vm14, %v1248_v27 }
 0x901   :  { %1262 = dma.vmem_to_hbm [thread:$0]  %s1258_s27, 32, %s1260_s10, [#allocation3]  }
 0x902   :  { %1489 = dma.done.wait [#allocation3], 32  }
 0x903   :  { %1490 = vsyncadd [#allocation3], 4294967264 }
 0x904   :  { %1267 = vsyncpa [#allocation3], 1 }

</bundles_post_ra>
